<compile_context>
chip_gen: v7x
topology: tpu7x:2x2x1
jax: 0.10.0
libtpu: 0.0.40
codegen_flags: <defaults>
</compile_context>

<pallas_src>
import functools

import jax
import jax.numpy as jnp
from jax import lax
from jax.experimental import pallas as pl
from jax.experimental.pallas import tpu as pltpu

# ----- scaled-down BERT-style config (deterministic synthetic weights) -----
VOCAB = 256
D_MODEL = 128          # lane-dense: activations are exactly one 128-lane vreg wide
N_LAYERS = 2
N_HEADS = 4
D_HEAD = 32            # D_MODEL == N_HEADS * D_HEAD
D_FF = 512
MAX_POS = 64
LN_EPS = 1e-12

B = 2
S = 8


# ----------------------------- in-kernel helpers -----------------------------

def _layernorm(x, gamma, beta):
    # Standard BERT LayerNorm, f32 math.
    mu = jnp.mean(x, axis=-1, keepdims=True)
    xc = x - mu
    var = jnp.mean(xc * xc, axis=-1, keepdims=True)
    return xc * lax.rsqrt(var + LN_EPS) * gamma + beta


def _gelu_tanh(x):
    # TODO(synk): HF bert-base uses erf-GELU; tanh approximation differs by <1e-3 here.
    return 0.5 * x * (1.0 + jnp.tanh(0.7978845608028654 * (x + 0.044715 * x * x * x)))


# ----------------------------- fused encoder kernel -----------------------------

def _encoder_kernel(ids_ref,                                   # SMEM (B, S) int32 token ids
                    embed_ref, posadd_ref, lne_ref,
                    wqkv_ref, bqkv_ref, wo_ref, bo_ref, ln1_ref,
                    wi_ref, bi_ref, wo2_ref, bo2_ref, ln2_ref,
                    out_ref, *, seq, n_layers):
    b = pl.program_id(0)
    bf16 = jnp.bfloat16

    # ---- embeddings: per-row dynamic gather driven by SMEM token ids ----
    rows = [embed_ref[pl.ds(ids_ref[b, i], 1), :] for i in range(seq)]
    x = jnp.concatenate(rows, axis=0)                          # (S, D) f32
    x = x + posadd_ref[...]                                    # position + token-type slab
    lne = lne_ref[...]
    x = _layernorm(x, lne[0:1, :], lne[1:2, :])

    for l in range(n_layers):
        # ---- multi-head self-attention (fused QKV; scale folded into Q weights) ----
        qkv = jnp.dot(x.astype(bf16), wqkv_ref[l],
                      preferred_element_type=jnp.float32) + bqkv_ref[l]      # (S, 3D) f32
        ctx_heads = []
        for h in range(N_HEADS):
            lo = h * D_HEAD
            q_h = qkv[:, lo:lo + D_HEAD].astype(bf16)                        # (S, D_HEAD)
            k_h = qkv[:, D_MODEL + lo:D_MODEL + lo + D_HEAD].astype(bf16)
            v_h = qkv[:, 2 * D_MODEL + lo:2 * D_MODEL + lo + D_HEAD].astype(bf16)
            s = lax.dot_general(q_h, k_h, (((1,), (1,)), ((), ())),
                                preferred_element_type=jnp.float32)          # (S, S)
            s = s - jnp.max(s, axis=-1, keepdims=True)
            p = jnp.exp(s)
            denom = jnp.sum(p, axis=-1, keepdims=True)
            ctx_h = jnp.dot(p.astype(bf16), v_h, preferred_element_type=jnp.float32)
            # deferred softmax normalization: EUP reciprocal on S elems, scale S*D_HEAD.
            ctx_h = ctx_h * pl.reciprocal(denom, approx=True)
            ctx_heads.append(ctx_h)
        ctx = jnp.concatenate(ctx_heads, axis=-1)                            # (S, D)
        attn = jnp.dot(ctx.astype(bf16), wo_ref[l],
                       preferred_element_type=jnp.float32) + bo_ref[l]       # one ctx@Wo per layer
        ln1 = ln1_ref[l]
        x = _layernorm(x + attn, ln1[0:1, :], ln1[1:2, :])

        # ---- feed-forward ----
        hmid = jnp.dot(x.astype(bf16), wi_ref[l],
                       preferred_element_type=jnp.float32) + bi_ref[l]
        hmid = _gelu_tanh(hmid)
        ffn = jnp.dot(hmid.astype(bf16), wo2_ref[l],
                      preferred_element_type=jnp.float32) + bo2_ref[l]
        ln2 = ln2_ref[l]
        x = _layernorm(x + ffn, ln2[0:1, :], ln2[1:2, :])

    out_ref[0] = x                                             # (S, 128): lane-dense store


# ----------------------------- wrapper -----------------------------

def bert_encoder(prepped, input_ids):
    b, s = input_ids.shape
    ids = input_ids.astype(jnp.int32)
    posadd = prepped["posadd"][:s]                             # (S, D) f32, constant per S

    def _resident(shape):
        # full-array block, constant index_map -> DMA'd once, VMEM-resident over the grid.
        zeros = (0,) * len(shape)
        return pl.BlockSpec(shape, lambda i, ids_ref, _z=zeros: _z)

    in_specs = [
        _resident((VOCAB, D_MODEL)),                  # embed (f32)
        _resident((s, D_MODEL)),                      # posadd
        _resident((2, D_MODEL)),                      # emb_ln
        _resident((N_LAYERS, D_MODEL, 3 * D_MODEL)),  # wqkv (bf16, Q-scaled)
        _resident((N_LAYERS, 1, 3 * D_MODEL)),        # bqkv
        _resident((N_LAYERS, D_MODEL, D_MODEL)),      # wo (bf16)
        _resident((N_LAYERS, 1, D_MODEL)),            # bo
        _resident((N_LAYERS, 2, D_MODEL)),            # ln1
        _resident((N_LAYERS, D_MODEL, D_FF)),         # wi (bf16)
        _resident((N_LAYERS, 1, D_FF)),               # bi
        _resident((N_LAYERS, D_FF, D_MODEL)),         # wo2 (bf16)
        _resident((N_LAYERS, 1, D_MODEL)),            # bo2
        _resident((N_LAYERS, 2, D_MODEL)),            # ln2
    ]

    grid_spec = pltpu.PrefetchScalarGridSpec(
        num_scalar_prefetch=1,                        # ids -> SMEM
        grid=(b,),                                    # one sequence per program
        in_specs=in_specs,
        out_specs=pl.BlockSpec((1, s, D_MODEL), lambda i, ids_ref: (i, 0, 0)),
    )

    out = pl.pallas_call(
        functools.partial(_encoder_kernel, seq=s, n_layers=N_LAYERS),
        out_shape=jax.ShapeDtypeStruct((b, s, D_MODEL), jnp.float32),
        grid_spec=grid_spec,
        compiler_params=pltpu.CompilerParams(dimension_semantics=("parallel",)),
    )(ids,
      prepped["embed"], posadd, prepped["emb_ln"],
      prepped["wqkv"], prepped["bqkv"], prepped["wo"], prepped["bo"], prepped["ln1"],
      prepped["wi"], prepped["bi"], prepped["wo2"], prepped["bo2"], prepped["ln2"])
    return out


def forward(prepped, x):
    # TextEncoder.forward: return self.text_encoder(x).last_hidden_state
    return bert_encoder(prepped, x)


# ----------------------------- params -----------------------------

def init_params(key):
    ks = jax.random.split(key, 8)

    def normal(k, shape, scale=0.02):
        return scale * jax.random.normal(k, shape, dtype=jnp.float32)

    ln_stack = jnp.stack([jnp.ones((N_LAYERS, D_MODEL), jnp.float32),
                          jnp.zeros((N_LAYERS, D_MODEL), jnp.float32)], axis=1)   # (L, 2, D)
    return {
        "embed":    normal(ks[0], (VOCAB, D_MODEL), 1.0),
        "pos_emb":  normal(ks[1], (MAX_POS, D_MODEL)),
        "type_emb": normal(ks[2], (2, D_MODEL)),
        "emb_ln":   jnp.stack([jnp.ones((D_MODEL,), jnp.float32),
                               jnp.zeros((D_MODEL,), jnp.float32)]),              # (2, D)
        "wqkv":     normal(ks[3], (N_LAYERS, D_MODEL, 3 * D_MODEL)),
        "bqkv":     jnp.zeros((N_LAYERS, 1, 3 * D_MODEL), jnp.float32),
        "wo":       normal(ks[4], (N_LAYERS, D_MODEL, D_MODEL)),
        "bo":       jnp.zeros((N_LAYERS, 1, D_MODEL), jnp.float32),
        "ln1":      ln_stack,
        "wi":       normal(ks[5], (N_LAYERS, D_MODEL, D_FF)),
        "bi":       jnp.zeros((N_LAYERS, 1, D_FF), jnp.float32),
        "wo2":      normal(ks[6], (N_LAYERS, D_FF, D_MODEL)),
        "bo2":      jnp.zeros((N_LAYERS, 1, D_MODEL), jnp.float32),
        "ln2":      ln_stack,
    }


def prepare_params(params):
    # One-time weight prep (outside jit): fold 1/sqrt(D_HEAD) into the Q projection
    # (weights AND bias) and cast all MXU weight operands to bf16 (halves weight DMA).
    scale_vec = jnp.concatenate([jnp.full((D_MODEL,), D_HEAD ** -0.5, jnp.float32),
                                 jnp.ones((2 * D_MODEL,), jnp.float32)])
    return {
        # f32 table keeps dynamic per-row gather sublane-aligned (tiny; real-size table
        # would stay in HBM and be gathered the same way).
        "embed":  params["embed"],
        "posadd": params["pos_emb"] + params["type_emb"][0:1],            # (MAX_POS, D)
        "emb_ln": params["emb_ln"],
        "wqkv":   (params["wqkv"] * scale_vec).astype(jnp.bfloat16),
        "bqkv":   params["bqkv"] * scale_vec,
        "wo":     params["wo"].astype(jnp.bfloat16),
        "bo":     params["bo"],
        "ln1":    params["ln1"],
        "wi":     params["wi"].astype(jnp.bfloat16),
        "bi":     params["bi"],
        "wo2":    params["wo2"].astype(jnp.bfloat16),
        "bo2":    params["bo2"],
        "ln2":    params["ln2"],
    }


if __name__ == "__main__":
    key = jax.random.PRNGKey(0)
    pkey, ikey = jax.random.split(key)
    params = init_params(pkey)
    prepped = prepare_params(params)

    x = jax.random.randint(ikey, (B, S), 0, VOCAB, dtype=jnp.int32)   # token ids

    out = jax.jit(forward)(prepped, x)
    out = jax.block_until_ready(out)

    assert out.shape == (B, S, D_MODEL)
    assert out.dtype == jnp.float32
    assert bool(jnp.all(jnp.isfinite(out)))
    print("KERNEL_OK")
</pallas_src>

<mosaic_0001>
module attributes {stable_mosaic.version = 11 : i64} {
  func.func @_encoder_kernel(%arg0: i32, %arg1: memref<2x8xi32, #tpu.memory_space<smem>>, %arg2: memref<256x128xf32, #tpu.memory_space<vmem>>, %arg3: memref<8x128xf32, #tpu.memory_space<vmem>>, %arg4: memref<2x128xf32, #tpu.memory_space<vmem>>, %arg5: memref<2x128x384xbf16, #tpu.memory_space<vmem>>, %arg6: memref<2x1x384xf32, #tpu.memory_space<vmem>>, %arg7: memref<2x128x128xbf16, #tpu.memory_space<vmem>>, %arg8: memref<2x1x128xf32, #tpu.memory_space<vmem>>, %arg9: memref<2x2x128xf32, #tpu.memory_space<vmem>>, %arg10: memref<2x128x512xbf16, #tpu.memory_space<vmem>>, %arg11: memref<2x1x512xf32, #tpu.memory_space<vmem>>, %arg12: memref<2x512x128xbf16, #tpu.memory_space<vmem>>, %arg13: memref<2x1x128xf32, #tpu.memory_space<vmem>>, %arg14: memref<2x2x128xf32, #tpu.memory_space<vmem>>, %arg15: memref<1x8x128xf32, #tpu.memory_space<vmem>>) attributes {dimension_semantics = [#tpu.dimension_semantics<parallel>], iteration_bounds = array<i64: 2>, scalar_prefetch = 1 : i64, scratch_operands = 0 : i64, tpu.core_type = #tpu.core_type<tc>, window_params = [{pipeline_mode = #tpu.pipeline_mode<synchronous>, transform_indices = @transform_0, window_bounds = array<i64: 256, 128>}, {pipeline_mode = #tpu.pipeline_mode<synchronous>, transform_indices = @transform_1, window_bounds = array<i64: 8, 128>}, {pipeline_mode = #tpu.pipeline_mode<synchronous>, transform_indices = @transform_2, window_bounds = array<i64: 2, 128>}, {pipeline_mode = #tpu.pipeline_mode<synchronous>, transform_indices = @transform_3, window_bounds = array<i64: 2, 128, 384>}, {pipeline_mode = #tpu.pipeline_mode<synchronous>, transform_indices = @transform_4, window_bounds = array<i64: 2, 1, 384>}, {pipeline_mode = #tpu.pipeline_mode<synchronous>, transform_indices = @transform_5, window_bounds = array<i64: 2, 128, 128>}, {pipeline_mode = #tpu.pipeline_mode<synchronous>, transform_indices = @transform_6, window_bounds = array<i64: 2, 1, 128>}, {pipeline_mode = #tpu.pipeline_mode<synchronous>, transform_indices = @transform_7, window_bounds = array<i64: 2, 2, 128>}, {pipeline_mode = #tpu.pipeline_mode<synchronous>, transform_indices = @transform_8, window_bounds = array<i64: 2, 128, 512>}, {pipeline_mode = #tpu.pipeline_mode<synchronous>, transform_indices = @transform_9, window_bounds = array<i64: 2, 1, 512>}, {pipeline_mode = #tpu.pipeline_mode<synchronous>, transform_indices = @transform_10, window_bounds = array<i64: 2, 512, 128>}, {pipeline_mode = #tpu.pipeline_mode<synchronous>, transform_indices = @transform_11, window_bounds = array<i64: 2, 1, 128>}, {pipeline_mode = #tpu.pipeline_mode<synchronous>, transform_indices = @transform_12, window_bounds = array<i64: 2, 2, 128>}, {transform_indices = @transform_13, window_bounds = array<i64: 1, 8, 128>}]} {
    %0 = arith.index_cast %arg0 : i32 to index
    %c0 = arith.constant 0 : index
    %1 = memref.load %arg1[%0, %c0] : memref<2x8xi32, #tpu.memory_space<smem>>
    %2 = arith.index_cast %1 : i32 to index
    %c0_0 = arith.constant 0 : index
    %3 = vector.load %arg2[%2, %c0_0] : memref<256x128xf32, #tpu.memory_space<vmem>>, vector<1x128xf32>
    %4 = arith.index_cast %arg0 : i32 to index
    %c1 = arith.constant 1 : index
    %5 = memref.load %arg1[%4, %c1] : memref<2x8xi32, #tpu.memory_space<smem>>
    %6 = arith.index_cast %5 : i32 to index
    %c0_1 = arith.constant 0 : index
    %7 = vector.load %arg2[%6, %c0_1] : memref<256x128xf32, #tpu.memory_space<vmem>>, vector<1x128xf32>
    %8 = arith.index_cast %arg0 : i32 to index
    %c2 = arith.constant 2 : index
    %9 = memref.load %arg1[%8, %c2] : memref<2x8xi32, #tpu.memory_space<smem>>
    %10 = arith.index_cast %9 : i32 to index
    %c0_2 = arith.constant 0 : index
    %11 = vector.load %arg2[%10, %c0_2] : memref<256x128xf32, #tpu.memory_space<vmem>>, vector<1x128xf32>
    %12 = arith.index_cast %arg0 : i32 to index
    %c3 = arith.constant 3 : index
    %13 = memref.load %arg1[%12, %c3] : memref<2x8xi32, #tpu.memory_space<smem>>
    %14 = arith.index_cast %13 : i32 to index
    %c0_3 = arith.constant 0 : index
    %15 = vector.load %arg2[%14, %c0_3] : memref<256x128xf32, #tpu.memory_space<vmem>>, vector<1x128xf32>
    %16 = arith.index_cast %arg0 : i32 to index
    %c4 = arith.constant 4 : index
    %17 = memref.load %arg1[%16, %c4] : memref<2x8xi32, #tpu.memory_space<smem>>
    %18 = arith.index_cast %17 : i32 to index
    %c0_4 = arith.constant 0 : index
    %19 = vector.load %arg2[%18, %c0_4] : memref<256x128xf32, #tpu.memory_space<vmem>>, vector<1x128xf32>
    %20 = arith.index_cast %arg0 : i32 to index
    %c5 = arith.constant 5 : index
    %21 = memref.load %arg1[%20, %c5] : memref<2x8xi32, #tpu.memory_space<smem>>
    %22 = arith.index_cast %21 : i32 to index
    %c0_5 = arith.constant 0 : index
    %23 = vector.load %arg2[%22, %c0_5] : memref<256x128xf32, #tpu.memory_space<vmem>>, vector<1x128xf32>
    %24 = arith.index_cast %arg0 : i32 to index
    %c6 = arith.constant 6 : index
    %25 = memref.load %arg1[%24, %c6] : memref<2x8xi32, #tpu.memory_space<smem>>
    %26 = arith.index_cast %25 : i32 to index
    %c0_6 = arith.constant 0 : index
    %27 = vector.load %arg2[%26, %c0_6] : memref<256x128xf32, #tpu.memory_space<vmem>>, vector<1x128xf32>
    %28 = arith.index_cast %arg0 : i32 to index
    %c7 = arith.constant 7 : index
    %29 = memref.load %arg1[%28, %c7] : memref<2x8xi32, #tpu.memory_space<smem>>
    %30 = arith.index_cast %29 : i32 to index
    %c0_7 = arith.constant 0 : index
    %31 = vector.load %arg2[%30, %c0_7] : memref<256x128xf32, #tpu.memory_space<vmem>>, vector<1x128xf32>
    %32 = tpu.concatenate %3, %7, %11, %15, %19, %23, %27, %31 in 0 : vector<1x128xf32>, vector<1x128xf32>, vector<1x128xf32>, vector<1x128xf32>, vector<1x128xf32>, vector<1x128xf32>, vector<1x128xf32>, vector<1x128xf32> -> vector<8x128xf32>
    %c0_8 = arith.constant 0 : index
    %c0_9 = arith.constant 0 : index
    %33 = vector.load %arg3[%c0_8, %c0_9] : memref<8x128xf32, #tpu.memory_space<vmem>>, vector<8x128xf32>
    %34 = arith.addf %32, %33 : vector<8x128xf32>
    %c0_10 = arith.constant 0 : index
    %c0_11 = arith.constant 0 : index
    %35 = vector.load %arg4[%c0_10, %c0_11] : memref<2x128xf32, #tpu.memory_space<vmem>>, vector<2x128xf32>
    %36 = vector.extract_strided_slice %35 {offsets = [0, 0], sizes = [1, 128], strides = [1, 1]} : vector<2x128xf32> to vector<1x128xf32>
    %37 = vector.extract_strided_slice %35 {offsets = [1, 0], sizes = [1, 128], strides = [1, 1]} : vector<2x128xf32> to vector<1x128xf32>
    %cst = arith.constant dense<0.000000e+00> : vector<8xf32>
    %38 = vector.multi_reduction <add>, %34, %cst [1] : vector<8x128xf32> to vector<8xf32>
    %39 = vector.shape_cast %38 : vector<8xf32> to vector<8x1xf32>
    %cst_12 = arith.constant 1.280000e+02 : f32
    %40 = vector.broadcast %cst_12 : f32 to vector<8x1xf32>
    %41 = arith.divf %39, %40 : vector<8x1xf32>
    %42 = vector.broadcast %41 : vector<8x1xf32> to vector<8x128xf32>
    %43 = arith.subf %34, %42 : vector<8x128xf32>
    %44 = arith.mulf %43, %43 : vector<8x128xf32>
    %cst_13 = arith.constant dense<0.000000e+00> : vector<8xf32>
    %45 = vector.multi_reduction <add>, %44, %cst_13 [1] : vector<8x128xf32> to vector<8xf32>
    %46 = vector.shape_cast %45 : vector<8xf32> to vector<8x1xf32>
    %cst_14 = arith.constant 1.280000e+02 : f32
    %47 = vector.broadcast %cst_14 : f32 to vector<8x1xf32>
    %48 = arith.divf %46, %47 : vector<8x1xf32>
    %cst_15 = arith.constant 9.99999996E-13 : f32
    %49 = vector.broadcast %cst_15 : f32 to vector<8x1xf32>
    %50 = arith.addf %48, %49 : vector<8x1xf32>
    %51 = math.rsqrt %50 : vector<8x1xf32>
    %52 = vector.broadcast %51 : vector<8x1xf32> to vector<8x128xf32>
    %53 = arith.mulf %43, %52 : vector<8x128xf32>
    %54 = vector.broadcast %36 : vector<1x128xf32> to vector<8x128xf32>
    %55 = arith.mulf %53, %54 : vector<8x128xf32>
    %56 = vector.broadcast %37 : vector<1x128xf32> to vector<8x128xf32>
    %57 = arith.addf %55, %56 : vector<8x128xf32>
    %58 = arith.truncf %57 : vector<8x128xf32> to vector<8x128xbf16>
    %c0_16 = arith.constant 0 : index
    %c0_17 = arith.constant 0 : index
    %c0_18 = arith.constant 0 : index
    %59 = vector.load %arg5[%c0_16, %c0_17, %c0_18] : memref<2x128x384xbf16, #tpu.memory_space<vmem>>, vector<1x128x384xbf16>
    %60 = vector.shape_cast %59 : vector<1x128x384xbf16> to vector<128x384xbf16>
    %cst_19 = arith.constant dense<0.000000e+00> : vector<8x384xf32>
    %61 = tpu.matmul %58, %60, %cst_19 {dimension_numbers = #tpu.dot_dimension_numbers<[1], [0], [0], [1], [0, 0, 1, 1], [], []>} : vector<8x128xbf16>, vector<128x384xbf16>, vector<8x384xf32> -> vector<8x384xf32>
    %c0_20 = arith.constant 0 : index
    %c0_21 = arith.constant 0 : index
    %c0_22 = arith.constant 0 : index
    %62 = vector.load %arg6[%c0_20, %c0_21, %c0_22] : memref<2x1x384xf32, #tpu.memory_space<vmem>>, vector<1x1x384xf32>
    %63 = vector.shape_cast %62 : vector<1x1x384xf32> to vector<1x384xf32>
    %64 = vector.broadcast %63 : vector<1x384xf32> to vector<8x384xf32>
    %65 = arith.addf %61, %64 : vector<8x384xf32>
    %66 = vector.extract_strided_slice %65 {offsets = [0, 0], sizes = [8, 32], strides = [1, 1]} : vector<8x384xf32> to vector<8x32xf32>
    %67 = arith.truncf %66 : vector<8x32xf32> to vector<8x32xbf16>
    %68 = vector.extract_strided_slice %65 {offsets = [0, 128], sizes = [8, 32], strides = [1, 1]} : vector<8x384xf32> to vector<8x32xf32>
    %69 = arith.truncf %68 : vector<8x32xf32> to vector<8x32xbf16>
    %70 = vector.extract_strided_slice %65 {offsets = [0, 256], sizes = [8, 32], strides = [1, 1]} : vector<8x384xf32> to vector<8x32xf32>
    %71 = arith.truncf %70 : vector<8x32xf32> to vector<8x32xbf16>
    %cst_23 = arith.constant dense<0.000000e+00> : vector<8x8xf32>
    %72 = tpu.matmul %67, %69, %cst_23 {dimension_numbers = #tpu.dot_dimension_numbers<[1], [1], [0], [0], [0, 0, 1, 0], [], []>} : vector<8x32xbf16>, vector<8x32xbf16>, vector<8x8xf32> -> vector<8x8xf32>
    %cst_24 = arith.constant dense<0xFF800000> : vector<8xf32>
    %73 = vector.multi_reduction <maximumf>, %72, %cst_24 [1] : vector<8x8xf32> to vector<8xf32>
    %74 = vector.shape_cast %73 : vector<8xf32> to vector<8x1xf32>
    %75 = vector.broadcast %74 : vector<8x1xf32> to vector<8x8xf32>
    %76 = arith.subf %72, %75 : vector<8x8xf32>
    %77 = math.exp %76 : vector<8x8xf32>
    %cst_25 = arith.constant dense<0.000000e+00> : vector<8xf32>
    %78 = vector.multi_reduction <add>, %77, %cst_25 [1] : vector<8x8xf32> to vector<8xf32>
    %79 = vector.shape_cast %78 : vector<8xf32> to vector<8x1xf32>
    %80 = arith.truncf %77 : vector<8x8xf32> to vector<8x8xbf16>
    %cst_26 = arith.constant dense<0.000000e+00> : vector<8x32xf32>
    %81 = tpu.matmul %80, %71, %cst_26 {dimension_numbers = #tpu.dot_dimension_numbers<[1], [0], [0], [1], [0, 0, 1, 1], [], []>} : vector<8x8xbf16>, vector<8x32xbf16>, vector<8x32xf32> -> vector<8x32xf32>
    %82 = tpu.reciprocal %79 {approx = true} : vector<8x1xf32> -> vector<8x1xf32>
    %83 = vector.broadcast %82 : vector<8x1xf32> to vector<8x32xf32>
    %84 = arith.mulf %81, %83 : vector<8x32xf32>
    %85 = vector.extract_strided_slice %65 {offsets = [0, 32], sizes = [8, 32], strides = [1, 1]} : vector<8x384xf32> to vector<8x32xf32>
    %86 = arith.truncf %85 : vector<8x32xf32> to vector<8x32xbf16>
    %87 = vector.extract_strided_slice %65 {offsets = [0, 160], sizes = [8, 32], strides = [1, 1]} : vector<8x384xf32> to vector<8x32xf32>
    %88 = arith.truncf %87 : vector<8x32xf32> to vector<8x32xbf16>
    %89 = vector.extract_strided_slice %65 {offsets = [0, 288], sizes = [8, 32], strides = [1, 1]} : vector<8x384xf32> to vector<8x32xf32>
    %90 = arith.truncf %89 : vector<8x32xf32> to vector<8x32xbf16>
    %cst_27 = arith.constant dense<0.000000e+00> : vector<8x8xf32>
    %91 = tpu.matmul %86, %88, %cst_27 {dimension_numbers = #tpu.dot_dimension_numbers<[1], [1], [0], [0], [0, 0, 1, 0], [], []>} : vector<8x32xbf16>, vector<8x32xbf16>, vector<8x8xf32> -> vector<8x8xf32>
    %cst_28 = arith.constant dense<0xFF800000> : vector<8xf32>
    %92 = vector.multi_reduction <maximumf>, %91, %cst_28 [1] : vector<8x8xf32> to vector<8xf32>
    %93 = vector.shape_cast %92 : vector<8xf32> to vector<8x1xf32>
    %94 = vector.broadcast %93 : vector<8x1xf32> to vector<8x8xf32>
    %95 = arith.subf %91, %94 : vector<8x8xf32>
    %96 = math.exp %95 : vector<8x8xf32>
    %cst_29 = arith.constant dense<0.000000e+00> : vector<8xf32>
    %97 = vector.multi_reduction <add>, %96, %cst_29 [1] : vector<8x8xf32> to vector<8xf32>
    %98 = vector.shape_cast %97 : vector<8xf32> to vector<8x1xf32>
    %99 = arith.truncf %96 : vector<8x8xf32> to vector<8x8xbf16>
    %cst_30 = arith.constant dense<0.000000e+00> : vector<8x32xf32>
    %100 = tpu.matmul %99, %90, %cst_30 {dimension_numbers = #tpu.dot_dimension_numbers<[1], [0], [0], [1], [0, 0, 1, 1], [], []>} : vector<8x8xbf16>, vector<8x32xbf16>, vector<8x32xf32> -> vector<8x32xf32>
    %101 = tpu.reciprocal %98 {approx = true} : vector<8x1xf32> -> vector<8x1xf32>
    %102 = vector.broadcast %101 : vector<8x1xf32> to vector<8x32xf32>
    %103 = arith.mulf %100, %102 : vector<8x32xf32>
    %104 = vector.extract_strided_slice %65 {offsets = [0, 64], sizes = [8, 32], strides = [1, 1]} : vector<8x384xf32> to vector<8x32xf32>
    %105 = arith.truncf %104 : vector<8x32xf32> to vector<8x32xbf16>
    %106 = vector.extract_strided_slice %65 {offsets = [0, 192], sizes = [8, 32], strides = [1, 1]} : vector<8x384xf32> to vector<8x32xf32>
    %107 = arith.truncf %106 : vector<8x32xf32> to vector<8x32xbf16>
    %108 = vector.extract_strided_slice %65 {offsets = [0, 320], sizes = [8, 32], strides = [1, 1]} : vector<8x384xf32> to vector<8x32xf32>
    %109 = arith.truncf %108 : vector<8x32xf32> to vector<8x32xbf16>
    %cst_31 = arith.constant dense<0.000000e+00> : vector<8x8xf32>
    %110 = tpu.matmul %105, %107, %cst_31 {dimension_numbers = #tpu.dot_dimension_numbers<[1], [1], [0], [0], [0, 0, 1, 0], [], []>} : vector<8x32xbf16>, vector<8x32xbf16>, vector<8x8xf32> -> vector<8x8xf32>
    %cst_32 = arith.constant dense<0xFF800000> : vector<8xf32>
    %111 = vector.multi_reduction <maximumf>, %110, %cst_32 [1] : vector<8x8xf32> to vector<8xf32>
    %112 = vector.shape_cast %111 : vector<8xf32> to vector<8x1xf32>
    %113 = vector.broadcast %112 : vector<8x1xf32> to vector<8x8xf32>
    %114 = arith.subf %110, %113 : vector<8x8xf32>
    %115 = math.exp %114 : vector<8x8xf32>
    %cst_33 = arith.constant dense<0.000000e+00> : vector<8xf32>
    %116 = vector.multi_reduction <add>, %115, %cst_33 [1] : vector<8x8xf32> to vector<8xf32>
    %117 = vector.shape_cast %116 : vector<8xf32> to vector<8x1xf32>
    %118 = arith.truncf %115 : vector<8x8xf32> to vector<8x8xbf16>
    %cst_34 = arith.constant dense<0.000000e+00> : vector<8x32xf32>
    %119 = tpu.matmul %118, %109, %cst_34 {dimension_numbers = #tpu.dot_dimension_numbers<[1], [0], [0], [1], [0, 0, 1, 1], [], []>} : vector<8x8xbf16>, vector<8x32xbf16>, vector<8x32xf32> -> vector<8x32xf32>
    %120 = tpu.reciprocal %117 {approx = true} : vector<8x1xf32> -> vector<8x1xf32>
    %121 = vector.broadcast %120 : vector<8x1xf32> to vector<8x32xf32>
    %122 = arith.mulf %119, %121 : vector<8x32xf32>
    %123 = vector.extract_strided_slice %65 {offsets = [0, 96], sizes = [8, 32], strides = [1, 1]} : vector<8x384xf32> to vector<8x32xf32>
    %124 = arith.truncf %123 : vector<8x32xf32> to vector<8x32xbf16>
    %125 = vector.extract_strided_slice %65 {offsets = [0, 224], sizes = [8, 32], strides = [1, 1]} : vector<8x384xf32> to vector<8x32xf32>
    %126 = arith.truncf %125 : vector<8x32xf32> to vector<8x32xbf16>
    %127 = vector.extract_strided_slice %65 {offsets = [0, 352], sizes = [8, 32], strides = [1, 1]} : vector<8x384xf32> to vector<8x32xf32>
    %128 = arith.truncf %127 : vector<8x32xf32> to vector<8x32xbf16>
    %cst_35 = arith.constant dense<0.000000e+00> : vector<8x8xf32>
    %129 = tpu.matmul %124, %126, %cst_35 {dimension_numbers = #tpu.dot_dimension_numbers<[1], [1], [0], [0], [0, 0, 1, 0], [], []>} : vector<8x32xbf16>, vector<8x32xbf16>, vector<8x8xf32> -> vector<8x8xf32>
    %cst_36 = arith.constant dense<0xFF800000> : vector<8xf32>
    %130 = vector.multi_reduction <maximumf>, %129, %cst_36 [1] : vector<8x8xf32> to vector<8xf32>
    %131 = vector.shape_cast %130 : vector<8xf32> to vector<8x1xf32>
    %132 = vector.broadcast %131 : vector<8x1xf32> to vector<8x8xf32>
    %133 = arith.subf %129, %132 : vector<8x8xf32>
    %134 = math.exp %133 : vector<8x8xf32>
    %cst_37 = arith.constant dense<0.000000e+00> : vector<8xf32>
    %135 = vector.multi_reduction <add>, %134, %cst_37 [1] : vector<8x8xf32> to vector<8xf32>
    %136 = vector.shape_cast %135 : vector<8xf32> to vector<8x1xf32>
    %137 = arith.truncf %134 : vector<8x8xf32> to vector<8x8xbf16>
    %cst_38 = arith.constant dense<0.000000e+00> : vector<8x32xf32>
    %138 = tpu.matmul %137, %128, %cst_38 {dimension_numbers = #tpu.dot_dimension_numbers<[1], [0], [0], [1], [0, 0, 1, 1], [], []>} : vector<8x8xbf16>, vector<8x32xbf16>, vector<8x32xf32> -> vector<8x32xf32>
    %139 = tpu.reciprocal %136 {approx = true} : vector<8x1xf32> -> vector<8x1xf32>
    %140 = vector.broadcast %139 : vector<8x1xf32> to vector<8x32xf32>
    %141 = arith.mulf %138, %140 : vector<8x32xf32>
    %142 = tpu.concatenate %84, %103, %122, %141 in 1 : vector<8x32xf32>, vector<8x32xf32>, vector<8x32xf32>, vector<8x32xf32> -> vector<8x128xf32>
    %143 = arith.truncf %142 : vector<8x128xf32> to vector<8x128xbf16>
    %c0_39 = arith.constant 0 : index
    %c0_40 = arith.constant 0 : index
    %c0_41 = arith.constant 0 : index
    %144 = vector.load %arg7[%c0_39, %c0_40, %c0_41] : memref<2x128x128xbf16, #tpu.memory_space<vmem>>, vector<1x128x128xbf16>
    %145 = vector.shape_cast %144 : vector<1x128x128xbf16> to vector<128x128xbf16>
    %cst_42 = arith.constant dense<0.000000e+00> : vector<8x128xf32>
    %146 = tpu.matmul %143, %145, %cst_42 {dimension_numbers = #tpu.dot_dimension_numbers<[1], [0], [0], [1], [0, 0, 1, 1], [], []>} : vector<8x128xbf16>, vector<128x128xbf16>, vector<8x128xf32> -> vector<8x128xf32>
    %c0_43 = arith.constant 0 : index
    %c0_44 = arith.constant 0 : index
    %c0_45 = arith.constant 0 : index
    %147 = vector.load %arg8[%c0_43, %c0_44, %c0_45] : memref<2x1x128xf32, #tpu.memory_space<vmem>>, vector<1x1x128xf32>
    %148 = vector.shape_cast %147 : vector<1x1x128xf32> to vector<1x128xf32>
    %149 = vector.broadcast %148 : vector<1x128xf32> to vector<8x128xf32>
    %150 = arith.addf %146, %149 : vector<8x128xf32>
    %c0_46 = arith.constant 0 : index
    %c0_47 = arith.constant 0 : index
    %c0_48 = arith.constant 0 : index
    %151 = vector.load %arg9[%c0_46, %c0_47, %c0_48] : memref<2x2x128xf32, #tpu.memory_space<vmem>>, vector<1x2x128xf32>
    %152 = vector.shape_cast %151 : vector<1x2x128xf32> to vector<2x128xf32>
    %153 = arith.addf %57, %150 : vector<8x128xf32>
    %154 = vector.extract_strided_slice %152 {offsets = [0, 0], sizes = [1, 128], strides = [1, 1]} : vector<2x128xf32> to vector<1x128xf32>
    %155 = vector.extract_strided_slice %152 {offsets = [1, 0], sizes = [1, 128], strides = [1, 1]} : vector<2x128xf32> to vector<1x128xf32>
    %cst_49 = arith.constant dense<0.000000e+00> : vector<8xf32>
    %156 = vector.multi_reduction <add>, %153, %cst_49 [1] : vector<8x128xf32> to vector<8xf32>
    %157 = vector.shape_cast %156 : vector<8xf32> to vector<8x1xf32>
    %cst_50 = arith.constant 1.280000e+02 : f32
    %158 = vector.broadcast %cst_50 : f32 to vector<8x1xf32>
    %159 = arith.divf %157, %158 : vector<8x1xf32>
    %160 = vector.broadcast %159 : vector<8x1xf32> to vector<8x128xf32>
    %161 = arith.subf %153, %160 : vector<8x128xf32>
    %162 = arith.mulf %161, %161 : vector<8x128xf32>
    %cst_51 = arith.constant dense<0.000000e+00> : vector<8xf32>
    %163 = vector.multi_reduction <add>, %162, %cst_51 [1] : vector<8x128xf32> to vector<8xf32>
    %164 = vector.shape_cast %163 : vector<8xf32> to vector<8x1xf32>
    %cst_52 = arith.constant 1.280000e+02 : f32
    %165 = vector.broadcast %cst_52 : f32 to vector<8x1xf32>
    %166 = arith.divf %164, %165 : vector<8x1xf32>
    %cst_53 = arith.constant 9.99999996E-13 : f32
    %167 = vector.broadcast %cst_53 : f32 to vector<8x1xf32>
    %168 = arith.addf %166, %167 : vector<8x1xf32>
    %169 = math.rsqrt %168 : vector<8x1xf32>
    %170 = vector.broadcast %169 : vector<8x1xf32> to vector<8x128xf32>
    %171 = arith.mulf %161, %170 : vector<8x128xf32>
    %172 = vector.broadcast %154 : vector<1x128xf32> to vector<8x128xf32>
    %173 = arith.mulf %171, %172 : vector<8x128xf32>
    %174 = vector.broadcast %155 : vector<1x128xf32> to vector<8x128xf32>
    %175 = arith.addf %173, %174 : vector<8x128xf32>
    %176 = arith.truncf %175 : vector<8x128xf32> to vector<8x128xbf16>
    %c0_54 = arith.constant 0 : index
    %c0_55 = arith.constant 0 : index
    %c0_56 = arith.constant 0 : index
    %177 = vector.load %arg10[%c0_54, %c0_55, %c0_56] : memref<2x128x512xbf16, #tpu.memory_space<vmem>>, vector<1x128x512xbf16>
    %178 = vector.shape_cast %177 : vector<1x128x512xbf16> to vector<128x512xbf16>
    %cst_57 = arith.constant dense<0.000000e+00> : vector<8x512xf32>
    %179 = tpu.matmul %176, %178, %cst_57 {dimension_numbers = #tpu.dot_dimension_numbers<[1], [0], [0], [1], [0, 0, 1, 1], [], []>} : vector<8x128xbf16>, vector<128x512xbf16>, vector<8x512xf32> -> vector<8x512xf32>
    %c0_58 = arith.constant 0 : index
    %c0_59 = arith.constant 0 : index
    %c0_60 = arith.constant 0 : index
    %180 = vector.load %arg11[%c0_58, %c0_59, %c0_60] : memref<2x1x512xf32, #tpu.memory_space<vmem>>, vector<1x1x512xf32>
    %181 = vector.shape_cast %180 : vector<1x1x512xf32> to vector<1x512xf32>
    %182 = vector.broadcast %181 : vector<1x512xf32> to vector<8x512xf32>
    %183 = arith.addf %179, %182 : vector<8x512xf32>
    %cst_61 = arith.constant 5.000000e-01 : f32
    %184 = vector.broadcast %cst_61 : f32 to vector<8x512xf32>
    %185 = arith.mulf %184, %183 : vector<8x512xf32>
    %cst_62 = arith.constant 4.471500e-02 : f32
    %186 = vector.broadcast %cst_62 : f32 to vector<8x512xf32>
    %187 = arith.mulf %186, %183 : vector<8x512xf32>
    %188 = arith.mulf %187, %183 : vector<8x512xf32>
    %189 = arith.mulf %188, %183 : vector<8x512xf32>
    %190 = arith.addf %183, %189 : vector<8x512xf32>
    %cst_63 = arith.constant 0.797884583 : f32
    %191 = vector.broadcast %cst_63 : f32 to vector<8x512xf32>
    %192 = arith.mulf %191, %190 : vector<8x512xf32>
    %193 = math.tanh %192 : vector<8x512xf32>
    %cst_64 = arith.constant 1.000000e+00 : f32
    %194 = vector.broadcast %cst_64 : f32 to vector<8x512xf32>
    %195 = arith.addf %194, %193 : vector<8x512xf32>
    %196 = arith.mulf %185, %195 : vector<8x512xf32>
    %197 = arith.truncf %196 : vector<8x512xf32> to vector<8x512xbf16>
    %c0_65 = arith.constant 0 : index
    %c0_66 = arith.constant 0 : index
    %c0_67 = arith.constant 0 : index
    %198 = vector.load %arg12[%c0_65, %c0_66, %c0_67] : memref<2x512x128xbf16, #tpu.memory_space<vmem>>, vector<1x512x128xbf16>
    %199 = vector.shape_cast %198 : vector<1x512x128xbf16> to vector<512x128xbf16>
    %cst_68 = arith.constant dense<0.000000e+00> : vector<8x128xf32>
    %200 = tpu.matmul %197, %199, %cst_68 {dimension_numbers = #tpu.dot_dimension_numbers<[1], [0], [0], [1], [0, 0, 1, 1], [], []>} : vector<8x512xbf16>, vector<512x128xbf16>, vector<8x128xf32> -> vector<8x128xf32>
    %c0_69 = arith.constant 0 : index
    %c0_70 = arith.constant 0 : index
    %c0_71 = arith.constant 0 : index
    %201 = vector.load %arg13[%c0_69, %c0_70, %c0_71] : memref<2x1x128xf32, #tpu.memory_space<vmem>>, vector<1x1x128xf32>
    %202 = vector.shape_cast %201 : vector<1x1x128xf32> to vector<1x128xf32>
    %203 = vector.broadcast %202 : vector<1x128xf32> to vector<8x128xf32>
    %204 = arith.addf %200, %203 : vector<8x128xf32>
    %c0_72 = arith.constant 0 : index
    %c0_73 = arith.constant 0 : index
    %c0_74 = arith.constant 0 : index
    %205 = vector.load %arg14[%c0_72, %c0_73, %c0_74] : memref<2x2x128xf32, #tpu.memory_space<vmem>>, vector<1x2x128xf32>
    %206 = vector.shape_cast %205 : vector<1x2x128xf32> to vector<2x128xf32>
    %207 = arith.addf %175, %204 : vector<8x128xf32>
    %208 = vector.extract_strided_slice %206 {offsets = [0, 0], sizes = [1, 128], strides = [1, 1]} : vector<2x128xf32> to vector<1x128xf32>
    %209 = vector.extract_strided_slice %206 {offsets = [1, 0], sizes = [1, 128], strides = [1, 1]} : vector<2x128xf32> to vector<1x128xf32>
    %cst_75 = arith.constant dense<0.000000e+00> : vector<8xf32>
    %210 = vector.multi_reduction <add>, %207, %cst_75 [1] : vector<8x128xf32> to vector<8xf32>
    %211 = vector.shape_cast %210 : vector<8xf32> to vector<8x1xf32>
    %cst_76 = arith.constant 1.280000e+02 : f32
    %212 = vector.broadcast %cst_76 : f32 to vector<8x1xf32>
    %213 = arith.divf %211, %212 : vector<8x1xf32>
    %214 = vector.broadcast %213 : vector<8x1xf32> to vector<8x128xf32>
    %215 = arith.subf %207, %214 : vector<8x128xf32>
    %216 = arith.mulf %215, %215 : vector<8x128xf32>
    %cst_77 = arith.constant dense<0.000000e+00> : vector<8xf32>
    %217 = vector.multi_reduction <add>, %216, %cst_77 [1] : vector<8x128xf32> to vector<8xf32>
    %218 = vector.shape_cast %217 : vector<8xf32> to vector<8x1xf32>
    %cst_78 = arith.constant 1.280000e+02 : f32
    %219 = vector.broadcast %cst_78 : f32 to vector<8x1xf32>
    %220 = arith.divf %218, %219 : vector<8x1xf32>
    %cst_79 = arith.constant 9.99999996E-13 : f32
    %221 = vector.broadcast %cst_79 : f32 to vector<8x1xf32>
    %222 = arith.addf %220, %221 : vector<8x1xf32>
    %223 = math.rsqrt %222 : vector<8x1xf32>
    %224 = vector.broadcast %223 : vector<8x1xf32> to vector<8x128xf32>
    %225 = arith.mulf %215, %224 : vector<8x128xf32>
    %226 = vector.broadcast %208 : vector<1x128xf32> to vector<8x128xf32>
    %227 = arith.mulf %225, %226 : vector<8x128xf32>
    %228 = vector.broadcast %209 : vector<1x128xf32> to vector<8x128xf32>
    %229 = arith.addf %227, %228 : vector<8x128xf32>
    %230 = arith.truncf %229 : vector<8x128xf32> to vector<8x128xbf16>
    %c1_80 = arith.constant 1 : index
    %c0_81 = arith.constant 0 : index
    %c0_82 = arith.constant 0 : index
    %231 = vector.load %arg5[%c1_80, %c0_81, %c0_82] : memref<2x128x384xbf16, #tpu.memory_space<vmem>>, vector<1x128x384xbf16>
    %232 = vector.shape_cast %231 : vector<1x128x384xbf16> to vector<128x384xbf16>
    %cst_83 = arith.constant dense<0.000000e+00> : vector<8x384xf32>
    %233 = tpu.matmul %230, %232, %cst_83 {dimension_numbers = #tpu.dot_dimension_numbers<[1], [0], [0], [1], [0, 0, 1, 1], [], []>} : vector<8x128xbf16>, vector<128x384xbf16>, vector<8x384xf32> -> vector<8x384xf32>
    %c1_84 = arith.constant 1 : index
    %c0_85 = arith.constant 0 : index
    %c0_86 = arith.constant 0 : index
    %234 = vector.load %arg6[%c1_84, %c0_85, %c0_86] : memref<2x1x384xf32, #tpu.memory_space<vmem>>, vector<1x1x384xf32>
    %235 = vector.shape_cast %234 : vector<1x1x384xf32> to vector<1x384xf32>
    %236 = vector.broadcast %235 : vector<1x384xf32> to vector<8x384xf32>
    %237 = arith.addf %233, %236 : vector<8x384xf32>
    %238 = vector.extract_strided_slice %237 {offsets = [0, 0], sizes = [8, 32], strides = [1, 1]} : vector<8x384xf32> to vector<8x32xf32>
    %239 = arith.truncf %238 : vector<8x32xf32> to vector<8x32xbf16>
    %240 = vector.extract_strided_slice %237 {offsets = [0, 128], sizes = [8, 32], strides = [1, 1]} : vector<8x384xf32> to vector<8x32xf32>
    %241 = arith.truncf %240 : vector<8x32xf32> to vector<8x32xbf16>
    %242 = vector.extract_strided_slice %237 {offsets = [0, 256], sizes = [8, 32], strides = [1, 1]} : vector<8x384xf32> to vector<8x32xf32>
    %243 = arith.truncf %242 : vector<8x32xf32> to vector<8x32xbf16>
    %cst_87 = arith.constant dense<0.000000e+00> : vector<8x8xf32>
    %244 = tpu.matmul %239, %241, %cst_87 {dimension_numbers = #tpu.dot_dimension_numbers<[1], [1], [0], [0], [0, 0, 1, 0], [], []>} : vector<8x32xbf16>, vector<8x32xbf16>, vector<8x8xf32> -> vector<8x8xf32>
    %cst_88 = arith.constant dense<0xFF800000> : vector<8xf32>
    %245 = vector.multi_reduction <maximumf>, %244, %cst_88 [1] : vector<8x8xf32> to vector<8xf32>
    %246 = vector.shape_cast %245 : vector<8xf32> to vector<8x1xf32>
    %247 = vector.broadcast %246 : vector<8x1xf32> to vector<8x8xf32>
    %248 = arith.subf %244, %247 : vector<8x8xf32>
    %249 = math.exp %248 : vector<8x8xf32>
    %cst_89 = arith.constant dense<0.000000e+00> : vector<8xf32>
    %250 = vector.multi_reduction <add>, %249, %cst_89 [1] : vector<8x8xf32> to vector<8xf32>
    %251 = vector.shape_cast %250 : vector<8xf32> to vector<8x1xf32>
    %252 = arith.truncf %249 : vector<8x8xf32> to vector<8x8xbf16>
    %cst_90 = arith.constant dense<0.000000e+00> : vector<8x32xf32>
    %253 = tpu.matmul %252, %243, %cst_90 {dimension_numbers = #tpu.dot_dimension_numbers<[1], [0], [0], [1], [0, 0, 1, 1], [], []>} : vector<8x8xbf16>, vector<8x32xbf16>, vector<8x32xf32> -> vector<8x32xf32>
    %254 = tpu.reciprocal %251 {approx = true} : vector<8x1xf32> -> vector<8x1xf32>
    %255 = vector.broadcast %254 : vector<8x1xf32> to vector<8x32xf32>
    %256 = arith.mulf %253, %255 : vector<8x32xf32>
    %257 = vector.extract_strided_slice %237 {offsets = [0, 32], sizes = [8, 32], strides = [1, 1]} : vector<8x384xf32> to vector<8x32xf32>
    %258 = arith.truncf %257 : vector<8x32xf32> to vector<8x32xbf16>
    %259 = vector.extract_strided_slice %237 {offsets = [0, 160], sizes = [8, 32], strides = [1, 1]} : vector<8x384xf32> to vector<8x32xf32>
    %260 = arith.truncf %259 : vector<8x32xf32> to vector<8x32xbf16>
    %261 = vector.extract_strided_slice %237 {offsets = [0, 288], sizes = [8, 32], strides = [1, 1]} : vector<8x384xf32> to vector<8x32xf32>
    %262 = arith.truncf %261 : vector<8x32xf32> to vector<8x32xbf16>
    %cst_91 = arith.constant dense<0.000000e+00> : vector<8x8xf32>
    %263 = tpu.matmul %258, %260, %cst_91 {dimension_numbers = #tpu.dot_dimension_numbers<[1], [1], [0], [0], [0, 0, 1, 0], [], []>} : vector<8x32xbf16>, vector<8x32xbf16>, vector<8x8xf32> -> vector<8x8xf32>
    %cst_92 = arith.constant dense<0xFF800000> : vector<8xf32>
    %264 = vector.multi_reduction <maximumf>, %263, %cst_92 [1] : vector<8x8xf32> to vector<8xf32>
    %265 = vector.shape_cast %264 : vector<8xf32> to vector<8x1xf32>
    %266 = vector.broadcast %265 : vector<8x1xf32> to vector<8x8xf32>
    %267 = arith.subf %263, %266 : vector<8x8xf32>
    %268 = math.exp %267 : vector<8x8xf32>
    %cst_93 = arith.constant dense<0.000000e+00> : vector<8xf32>
    %269 = vector.multi_reduction <add>, %268, %cst_93 [1] : vector<8x8xf32> to vector<8xf32>
    %270 = vector.shape_cast %269 : vector<8xf32> to vector<8x1xf32>
    %271 = arith.truncf %268 : vector<8x8xf32> to vector<8x8xbf16>
    %cst_94 = arith.constant dense<0.000000e+00> : vector<8x32xf32>
    %272 = tpu.matmul %271, %262, %cst_94 {dimension_numbers = #tpu.dot_dimension_numbers<[1], [0], [0], [1], [0, 0, 1, 1], [], []>} : vector<8x8xbf16>, vector<8x32xbf16>, vector<8x32xf32> -> vector<8x32xf32>
    %273 = tpu.reciprocal %270 {approx = true} : vector<8x1xf32> -> vector<8x1xf32>
    %274 = vector.broadcast %273 : vector<8x1xf32> to vector<8x32xf32>
    %275 = arith.mulf %272, %274 : vector<8x32xf32>
    %276 = vector.extract_strided_slice %237 {offsets = [0, 64], sizes = [8, 32], strides = [1, 1]} : vector<8x384xf32> to vector<8x32xf32>
    %277 = arith.truncf %276 : vector<8x32xf32> to vector<8x32xbf16>
    %278 = vector.extract_strided_slice %237 {offsets = [0, 192], sizes = [8, 32], strides = [1, 1]} : vector<8x384xf32> to vector<8x32xf32>
    %279 = arith.truncf %278 : vector<8x32xf32> to vector<8x32xbf16>
    %280 = vector.extract_strided_slice %237 {offsets = [0, 320], sizes = [8, 32], strides = [1, 1]} : vector<8x384xf32> to vector<8x32xf32>
    %281 = arith.truncf %280 : vector<8x32xf32> to vector<8x32xbf16>
    %cst_95 = arith.constant dense<0.000000e+00> : vector<8x8xf32>
    %282 = tpu.matmul %277, %279, %cst_95 {dimension_numbers = #tpu.dot_dimension_numbers<[1], [1], [0], [0], [0, 0, 1, 0], [], []>} : vector<8x32xbf16>, vector<8x32xbf16>, vector<8x8xf32> -> vector<8x8xf32>
    %cst_96 = arith.constant dense<0xFF800000> : vector<8xf32>
    %283 = vector.multi_reduction <maximumf>, %282, %cst_96 [1] : vector<8x8xf32> to vector<8xf32>
    %284 = vector.shape_cast %283 : vector<8xf32> to vector<8x1xf32>
    %285 = vector.broadcast %284 : vector<8x1xf32> to vector<8x8xf32>
    %286 = arith.subf %282, %285 : vector<8x8xf32>
    %287 = math.exp %286 : vector<8x8xf32>
    %cst_97 = arith.constant dense<0.000000e+00> : vector<8xf32>
    %288 = vector.multi_reduction <add>, %287, %cst_97 [1] : vector<8x8xf32> to vector<8xf32>
    %289 = vector.shape_cast %288 : vector<8xf32> to vector<8x1xf32>
    %290 = arith.truncf %287 : vector<8x8xf32> to vector<8x8xbf16>
    %cst_98 = arith.constant dense<0.000000e+00> : vector<8x32xf32>
    %291 = tpu.matmul %290, %281, %cst_98 {dimension_numbers = #tpu.dot_dimension_numbers<[1], [0], [0], [1], [0, 0, 1, 1], [], []>} : vector<8x8xbf16>, vector<8x32xbf16>, vector<8x32xf32> -> vector<8x32xf32>
    %292 = tpu.reciprocal %289 {approx = true} : vector<8x1xf32> -> vector<8x1xf32>
    %293 = vector.broadcast %292 : vector<8x1xf32> to vector<8x32xf32>
    %294 = arith.mulf %291, %293 : vector<8x32xf32>
    %295 = vector.extract_strided_slice %237 {offsets = [0, 96], sizes = [8, 32], strides = [1, 1]} : vector<8x384xf32> to vector<8x32xf32>
    %296 = arith.truncf %295 : vector<8x32xf32> to vector<8x32xbf16>
    %297 = vector.extract_strided_slice %237 {offsets = [0, 224], sizes = [8, 32], strides = [1, 1]} : vector<8x384xf32> to vector<8x32xf32>
    %298 = arith.truncf %297 : vector<8x32xf32> to vector<8x32xbf16>
    %299 = vector.extract_strided_slice %237 {offsets = [0, 352], sizes = [8, 32], strides = [1, 1]} : vector<8x384xf32> to vector<8x32xf32>
    %300 = arith.truncf %299 : vector<8x32xf32> to vector<8x32xbf16>
    %cst_99 = arith.constant dense<0.000000e+00> : vector<8x8xf32>
    %301 = tpu.matmul %296, %298, %cst_99 {dimension_numbers = #tpu.dot_dimension_numbers<[1], [1], [0], [0], [0, 0, 1, 0], [], []>} : vector<8x32xbf16>, vector<8x32xbf16>, vector<8x8xf32> -> vector<8x8xf32>
    %cst_100 = arith.constant dense<0xFF800000> : vector<8xf32>
    %302 = vector.multi_reduction <maximumf>, %301, %cst_100 [1] : vector<8x8xf32> to vector<8xf32>
    %303 = vector.shape_cast %302 : vector<8xf32> to vector<8x1xf32>
    %304 = vector.broadcast %303 : vector<8x1xf32> to vector<8x8xf32>
    %305 = arith.subf %301, %304 : vector<8x8xf32>
    %306 = math.exp %305 : vector<8x8xf32>
    %cst_101 = arith.constant dense<0.000000e+00> : vector<8xf32>
    %307 = vector.multi_reduction <add>, %306, %cst_101 [1] : vector<8x8xf32> to vector<8xf32>
    %308 = vector.shape_cast %307 : vector<8xf32> to vector<8x1xf32>
    %309 = arith.truncf %306 : vector<8x8xf32> to vector<8x8xbf16>
    %cst_102 = arith.constant dense<0.000000e+00> : vector<8x32xf32>
    %310 = tpu.matmul %309, %300, %cst_102 {dimension_numbers = #tpu.dot_dimension_numbers<[1], [0], [0], [1], [0, 0, 1, 1], [], []>} : vector<8x8xbf16>, vector<8x32xbf16>, vector<8x32xf32> -> vector<8x32xf32>
    %311 = tpu.reciprocal %308 {approx = true} : vector<8x1xf32> -> vector<8x1xf32>
    %312 = vector.broadcast %311 : vector<8x1xf32> to vector<8x32xf32>
    %313 = arith.mulf %310, %312 : vector<8x32xf32>
    %314 = tpu.concatenate %256, %275, %294, %313 in 1 : vector<8x32xf32>, vector<8x32xf32>, vector<8x32xf32>, vector<8x32xf32> -> vector<8x128xf32>
    %315 = arith.truncf %314 : vector<8x128xf32> to vector<8x128xbf16>
    %c1_103 = arith.constant 1 : index
    %c0_104 = arith.constant 0 : index
    %c0_105 = arith.constant 0 : index
    %316 = vector.load %arg7[%c1_103, %c0_104, %c0_105] : memref<2x128x128xbf16, #tpu.memory_space<vmem>>, vector<1x128x128xbf16>
    %317 = vector.shape_cast %316 : vector<1x128x128xbf16> to vector<128x128xbf16>
    %cst_106 = arith.constant dense<0.000000e+00> : vector<8x128xf32>
    %318 = tpu.matmul %315, %317, %cst_106 {dimension_numbers = #tpu.dot_dimension_numbers<[1], [0], [0], [1], [0, 0, 1, 1], [], []>} : vector<8x128xbf16>, vector<128x128xbf16>, vector<8x128xf32> -> vector<8x128xf32>
    %c1_107 = arith.constant 1 : index
    %c0_108 = arith.constant 0 : index
    %c0_109 = arith.constant 0 : index
    %319 = vector.load %arg8[%c1_107, %c0_108, %c0_109] : memref<2x1x128xf32, #tpu.memory_space<vmem>>, vector<1x1x128xf32>
    %320 = vector.shape_cast %319 : vector<1x1x128xf32> to vector<1x128xf32>
    %321 = vector.broadcast %320 : vector<1x128xf32> to vector<8x128xf32>
    %322 = arith.addf %318, %321 : vector<8x128xf32>
    %c1_110 = arith.constant 1 : index
    %c0_111 = arith.constant 0 : index
    %c0_112 = arith.constant 0 : index
    %323 = vector.load %arg9[%c1_110, %c0_111, %c0_112] : memref<2x2x128xf32, #tpu.memory_space<vmem>>, vector<1x2x128xf32>
    %324 = vector.shape_cast %323 : vector<1x2x128xf32> to vector<2x128xf32>
    %325 = arith.addf %229, %322 : vector<8x128xf32>
    %326 = vector.extract_strided_slice %324 {offsets = [0, 0], sizes = [1, 128], strides = [1, 1]} : vector<2x128xf32> to vector<1x128xf32>
    %327 = vector.extract_strided_slice %324 {offsets = [1, 0], sizes = [1, 128], strides = [1, 1]} : vector<2x128xf32> to vector<1x128xf32>
    %cst_113 = arith.constant dense<0.000000e+00> : vector<8xf32>
    %328 = vector.multi_reduction <add>, %325, %cst_113 [1] : vector<8x128xf32> to vector<8xf32>
    %329 = vector.shape_cast %328 : vector<8xf32> to vector<8x1xf32>
    %cst_114 = arith.constant 1.280000e+02 : f32
    %330 = vector.broadcast %cst_114 : f32 to vector<8x1xf32>
    %331 = arith.divf %329, %330 : vector<8x1xf32>
    %332 = vector.broadcast %331 : vector<8x1xf32> to vector<8x128xf32>
    %333 = arith.subf %325, %332 : vector<8x128xf32>
    %334 = arith.mulf %333, %333 : vector<8x128xf32>
    %cst_115 = arith.constant dense<0.000000e+00> : vector<8xf32>
    %335 = vector.multi_reduction <add>, %334, %cst_115 [1] : vector<8x128xf32> to vector<8xf32>
    %336 = vector.shape_cast %335 : vector<8xf32> to vector<8x1xf32>
    %cst_116 = arith.constant 1.280000e+02 : f32
    %337 = vector.broadcast %cst_116 : f32 to vector<8x1xf32>
    %338 = arith.divf %336, %337 : vector<8x1xf32>
    %cst_117 = arith.constant 9.99999996E-13 : f32
    %339 = vector.broadcast %cst_117 : f32 to vector<8x1xf32>
    %340 = arith.addf %338, %339 : vector<8x1xf32>
    %341 = math.rsqrt %340 : vector<8x1xf32>
    %342 = vector.broadcast %341 : vector<8x1xf32> to vector<8x128xf32>
    %343 = arith.mulf %333, %342 : vector<8x128xf32>
    %344 = vector.broadcast %326 : vector<1x128xf32> to vector<8x128xf32>
    %345 = arith.mulf %343, %344 : vector<8x128xf32>
    %346 = vector.broadcast %327 : vector<1x128xf32> to vector<8x128xf32>
    %347 = arith.addf %345, %346 : vector<8x128xf32>
    %348 = arith.truncf %347 : vector<8x128xf32> to vector<8x128xbf16>
    %c1_118 = arith.constant 1 : index
    %c0_119 = arith.constant 0 : index
    %c0_120 = arith.constant 0 : index
    %349 = vector.load %arg10[%c1_118, %c0_119, %c0_120] : memref<2x128x512xbf16, #tpu.memory_space<vmem>>, vector<1x128x512xbf16>
    %350 = vector.shape_cast %349 : vector<1x128x512xbf16> to vector<128x512xbf16>
    %cst_121 = arith.constant dense<0.000000e+00> : vector<8x512xf32>
    %351 = tpu.matmul %348, %350, %cst_121 {dimension_numbers = #tpu.dot_dimension_numbers<[1], [0], [0], [1], [0, 0, 1, 1], [], []>} : vector<8x128xbf16>, vector<128x512xbf16>, vector<8x512xf32> -> vector<8x512xf32>
    %c1_122 = arith.constant 1 : index
    %c0_123 = arith.constant 0 : index
    %c0_124 = arith.constant 0 : index
    %352 = vector.load %arg11[%c1_122, %c0_123, %c0_124] : memref<2x1x512xf32, #tpu.memory_space<vmem>>, vector<1x1x512xf32>
    %353 = vector.shape_cast %352 : vector<1x1x512xf32> to vector<1x512xf32>
    %354 = vector.broadcast %353 : vector<1x512xf32> to vector<8x512xf32>
    %355 = arith.addf %351, %354 : vector<8x512xf32>
    %cst_125 = arith.constant 5.000000e-01 : f32
    %356 = vector.broadcast %cst_125 : f32 to vector<8x512xf32>
    %357 = arith.mulf %356, %355 : vector<8x512xf32>
    %cst_126 = arith.constant 4.471500e-02 : f32
    %358 = vector.broadcast %cst_126 : f32 to vector<8x512xf32>
    %359 = arith.mulf %358, %355 : vector<8x512xf32>
    %360 = arith.mulf %359, %355 : vector<8x512xf32>
    %361 = arith.mulf %360, %355 : vector<8x512xf32>
    %362 = arith.addf %355, %361 : vector<8x512xf32>
    %cst_127 = arith.constant 0.797884583 : f32
    %363 = vector.broadcast %cst_127 : f32 to vector<8x512xf32>
    %364 = arith.mulf %363, %362 : vector<8x512xf32>
    %365 = math.tanh %364 : vector<8x512xf32>
    %cst_128 = arith.constant 1.000000e+00 : f32
    %366 = vector.broadcast %cst_128 : f32 to vector<8x512xf32>
    %367 = arith.addf %366, %365 : vector<8x512xf32>
    %368 = arith.mulf %357, %367 : vector<8x512xf32>
    %369 = arith.truncf %368 : vector<8x512xf32> to vector<8x512xbf16>
    %c1_129 = arith.constant 1 : index
    %c0_130 = arith.constant 0 : index
    %c0_131 = arith.constant 0 : index
    %370 = vector.load %arg12[%c1_129, %c0_130, %c0_131] : memref<2x512x128xbf16, #tpu.memory_space<vmem>>, vector<1x512x128xbf16>
    %371 = vector.shape_cast %370 : vector<1x512x128xbf16> to vector<512x128xbf16>
    %cst_132 = arith.constant dense<0.000000e+00> : vector<8x128xf32>
    %372 = tpu.matmul %369, %371, %cst_132 {dimension_numbers = #tpu.dot_dimension_numbers<[1], [0], [0], [1], [0, 0, 1, 1], [], []>} : vector<8x512xbf16>, vector<512x128xbf16>, vector<8x128xf32> -> vector<8x128xf32>
    %c1_133 = arith.constant 1 : index
    %c0_134 = arith.constant 0 : index
    %c0_135 = arith.constant 0 : index
    %373 = vector.load %arg13[%c1_133, %c0_134, %c0_135] : memref<2x1x128xf32, #tpu.memory_space<vmem>>, vector<1x1x128xf32>
    %374 = vector.shape_cast %373 : vector<1x1x128xf32> to vector<1x128xf32>
    %375 = vector.broadcast %374 : vector<1x128xf32> to vector<8x128xf32>
    %376 = arith.addf %372, %375 : vector<8x128xf32>
    %c1_136 = arith.constant 1 : index
    %c0_137 = arith.constant 0 : index
    %c0_138 = arith.constant 0 : index
    %377 = vector.load %arg14[%c1_136, %c0_137, %c0_138] : memref<2x2x128xf32, #tpu.memory_space<vmem>>, vector<1x2x128xf32>
    %378 = vector.shape_cast %377 : vector<1x2x128xf32> to vector<2x128xf32>
    %379 = arith.addf %347, %376 : vector<8x128xf32>
    %380 = vector.extract_strided_slice %378 {offsets = [0, 0], sizes = [1, 128], strides = [1, 1]} : vector<2x128xf32> to vector<1x128xf32>
    %381 = vector.extract_strided_slice %378 {offsets = [1, 0], sizes = [1, 128], strides = [1, 1]} : vector<2x128xf32> to vector<1x128xf32>
    %cst_139 = arith.constant dense<0.000000e+00> : vector<8xf32>
    %382 = vector.multi_reduction <add>, %379, %cst_139 [1] : vector<8x128xf32> to vector<8xf32>
    %383 = vector.shape_cast %382 : vector<8xf32> to vector<8x1xf32>
    %cst_140 = arith.constant 1.280000e+02 : f32
    %384 = vector.broadcast %cst_140 : f32 to vector<8x1xf32>
    %385 = arith.divf %383, %384 : vector<8x1xf32>
    %386 = vector.broadcast %385 : vector<8x1xf32> to vector<8x128xf32>
    %387 = arith.subf %379, %386 : vector<8x128xf32>
    %388 = arith.mulf %387, %387 : vector<8x128xf32>
    %cst_141 = arith.constant dense<0.000000e+00> : vector<8xf32>
    %389 = vector.multi_reduction <add>, %388, %cst_141 [1] : vector<8x128xf32> to vector<8xf32>
    %390 = vector.shape_cast %389 : vector<8xf32> to vector<8x1xf32>
    %cst_142 = arith.constant 1.280000e+02 : f32
    %391 = vector.broadcast %cst_142 : f32 to vector<8x1xf32>
    %392 = arith.divf %390, %391 : vector<8x1xf32>
    %cst_143 = arith.constant 9.99999996E-13 : f32
    %393 = vector.broadcast %cst_143 : f32 to vector<8x1xf32>
    %394 = arith.addf %392, %393 : vector<8x1xf32>
    %395 = math.rsqrt %394 : vector<8x1xf32>
    %396 = vector.broadcast %395 : vector<8x1xf32> to vector<8x128xf32>
    %397 = arith.mulf %387, %396 : vector<8x128xf32>
    %398 = vector.broadcast %380 : vector<1x128xf32> to vector<8x128xf32>
    %399 = arith.mulf %397, %398 : vector<8x128xf32>
    %400 = vector.broadcast %381 : vector<1x128xf32> to vector<8x128xf32>
    %401 = arith.addf %399, %400 : vector<8x128xf32>
    %c0_144 = arith.constant 0 : index
    %c0_145 = arith.constant 0 : index
    %c0_146 = arith.constant 0 : index
    %402 = vector.load %arg15[%c0_144, %c0_145, %c0_146] : memref<1x8x128xf32, #tpu.memory_space<vmem>>, vector<1x8x128xf32>
    %403 = vector.shape_cast %402 : vector<1x8x128xf32> to vector<8x128xf32>
    %404 = vector.shape_cast %401 : vector<8x128xf32> to vector<1x8x128xf32>
    tpu.vector_store %arg15[%c0_144, %c0_145, %c0_146], %404 {strides = array<i32>} : memref<1x8x128xf32, #tpu.memory_space<vmem>>, vector<1x8x128xf32>,
    return
  }
  func.func @transform_0(%arg0: i32, %arg1: memref<2x8xi32, #tpu.memory_space<smem>>) -> (i32, i32) {
    %c0_i32 = arith.constant 0 : i32
    %c0_i32_0 = arith.constant 0 : i32
    %c0_i32_1 = arith.constant 0 : i32
    return %c0_i32, %c0_i32_0 : i32, i32
  }
  func.func @transform_1(%arg0: i32, %arg1: memref<2x8xi32, #tpu.memory_space<smem>>) -> (i32, i32) {
    %c0_i32 = arith.constant 0 : i32
    %c0_i32_0 = arith.constant 0 : i32
    %c0_i32_1 = arith.constant 0 : i32
    return %c0_i32, %c0_i32_0 : i32, i32
  }
  func.func @transform_2(%arg0: i32, %arg1: memref<2x8xi32, #tpu.memory_space<smem>>) -> (i32, i32) {
    %c0_i32 = arith.constant 0 : i32
    %c0_i32_0 = arith.constant 0 : i32
    %c0_i32_1 = arith.constant 0 : i32
    return %c0_i32, %c0_i32_0 : i32, i32
  }
  func.func @transform_3(%arg0: i32, %arg1: memref<2x8xi32, #tpu.memory_space<smem>>) -> (i32, i32, i32) {
    %c0_i32 = arith.constant 0 : i32
    %c0_i32_0 = arith.constant 0 : i32
    %c0_i32_1 = arith.constant 0 : i32
    %c0_i32_2 = arith.constant 0 : i32
    return %c0_i32, %c0_i32_0, %c0_i32_1 : i32, i32, i32
  }
  func.func @transform_4(%arg0: i32, %arg1: memref<2x8xi32, #tpu.memory_space<smem>>) -> (i32, i32, i32) {
    %c0_i32 = arith.constant 0 : i32
    %c0_i32_0 = arith.constant 0 : i32
    %c0_i32_1 = arith.constant 0 : i32
    %c0_i32_2 = arith.constant 0 : i32
    return %c0_i32, %c0_i32_0, %c0_i32_1 : i32, i32, i32
  }
  func.func @transform_5(%arg0: i32, %arg1: memref<2x8xi32, #tpu.memory_space<smem>>) -> (i32, i32, i32) {
    %c0_i32 = arith.constant 0 : i32
    %c0_i32_0 = arith.constant 0 : i32
    %c0_i32_1 = arith.constant 0 : i32
    %c0_i32_2 = arith.constant 0 : i32
    return %c0_i32, %c0_i32_0, %c0_i32_1 : i32, i32, i32
  }
  func.func @transform_6(%arg0: i32, %arg1: memref<2x8xi32, #tpu.memory_space<smem>>) -> (i32, i32, i32) {
    %c0_i32 = arith.constant 0 : i32
    %c0_i32_0 = arith.constant 0 : i32
    %c0_i32_1 = arith.constant 0 : i32
    %c0_i32_2 = arith.constant 0 : i32
    return %c0_i32, %c0_i32_0, %c0_i32_1 : i32, i32, i32
  }
  func.func @transform_7(%arg0: i32, %arg1: memref<2x8xi32, #tpu.memory_space<smem>>) -> (i32, i32, i32) {
    %c0_i32 = arith.constant 0 : i32
    %c0_i32_0 = arith.constant 0 : i32
    %c0_i32_1 = arith.constant 0 : i32
    %c0_i32_2 = arith.constant 0 : i32
    return %c0_i32, %c0_i32_0, %c0_i32_1 : i32, i32, i32
  }
  func.func @transform_8(%arg0: i32, %arg1: memref<2x8xi32, #tpu.memory_space<smem>>) -> (i32, i32, i32) {
    %c0_i32 = arith.constant 0 : i32
    %c0_i32_0 = arith.constant 0 : i32
    %c0_i32_1 = arith.constant 0 : i32
    %c0_i32_2 = arith.constant 0 : i32
    return %c0_i32, %c0_i32_0, %c0_i32_1 : i32, i32, i32
  }
  func.func @transform_9(%arg0: i32, %arg1: memref<2x8xi32, #tpu.memory_space<smem>>) -> (i32, i32, i32) {
    %c0_i32 = arith.constant 0 : i32
    %c0_i32_0 = arith.constant 0 : i32
    %c0_i32_1 = arith.constant 0 : i32
    %c0_i32_2 = arith.constant 0 : i32
    return %c0_i32, %c0_i32_0, %c0_i32_1 : i32, i32, i32
  }
  func.func @transform_10(%arg0: i32, %arg1: memref<2x8xi32, #tpu.memory_space<smem>>) -> (i32, i32, i32) {
    %c0_i32 = arith.constant 0 : i32
    %c0_i32_0 = arith.constant 0 : i32
    %c0_i32_1 = arith.constant 0 : i32
    %c0_i32_2 = arith.constant 0 : i32
    return %c0_i32, %c0_i32_0, %c0_i32_1 : i32, i32, i32
  }
  func.func @transform_11(%arg0: i32, %arg1: memref<2x8xi32, #tpu.memory_space<smem>>) -> (i32, i32, i32) {
    %c0_i32 = arith.constant 0 : i32
    %c0_i32_0 = arith.constant 0 : i32
    %c0_i32_1 = arith.constant 0 : i32
    %c0_i32_2 = arith.constant 0 : i32
    return %c0_i32, %c0_i32_0, %c0_i32_1 : i32, i32, i32
  }
  func.func @transform_12(%arg0: i32, %arg1: memref<2x8xi32, #tpu.memory_space<smem>>) -> (i32, i32, i32) {
    %c0_i32 = arith.constant 0 : i32
    %c0_i32_0 = arith.constant 0 : i32
    %c0_i32_1 = arith.constant 0 : i32
    %c0_i32_2 = arith.constant 0 : i32
    return %c0_i32, %c0_i32_0, %c0_i32_1 : i32, i32, i32
  }
  func.func @transform_13(%arg0: i32, %arg1: memref<2x8xi32, #tpu.memory_space<smem>>) -> (i32, i32, i32) {
    %c0_i32 = arith.constant 0 : i32
    %c0_i32_0 = arith.constant 0 : i32
    %c0_i32_1 = arith.constant 0 : i32
    return %arg0, %c0_i32, %c0_i32_0 : i32, i32, i32
  }
}

</mosaic_0001>

<bundles_post_ra>
// kernel: forward.1
= control target key start
LH: loop header
LB: loop body
LE: loop exit
PB: predicated region body
PF: predicated region fallthrough
CT: control target
= control target key end

     0   :  { %s5931_s0 = inlined_call_operand.vmem [shape: s32[2,8], index: 0, kind: input, shape index: {}]   ;;  %s5932_s1 = inlined_call_operand.hbm [shape: f32[256,128], index: 1, kind: input, shape index: {}]   ;;  %s5933_s2 = inlined_call_operand.vmem [shape: f32[8,128], index: 2, kind: input, shape index: {}]   ;;  %s5934_s3 = inlined_call_operand.hbm [shape: f32[2,128], index: 3, kind: input, shape index: {}]   ;;  %s5935_s4 = inlined_call_operand.hbm [shape: bf16[2,128,384], index: 4, kind: input, shape index: {}]   ;;  %s5936_s5 = inlined_call_operand.vmem [shape: f32[2,1,384], index: 5, kind: input, shape index: {}]   ;;  %s5937_s6 = inlined_call_operand.hbm [shape: bf16[2,128,128], index: 6, kind: input, shape index: {}]   ;;  %s5938_s7 = inlined_call_operand.hbm [shape: f32[2,1,128], index: 7, kind: input, shape index: {}]   ;;  %s5939_s8 = inlined_call_operand.vmem [shape: f32[2,2,128], index: 8, kind: input, shape index: {}]   ;;  %s5940_s9 = inlined_call_operand.hbm [shape: bf16[2,128,512], index: 9, kind: input, shape index: {}]   ;;  %s5941_s10 = inlined_call_operand.vmem [shape: f32[2,1,512], index: 10, kind: input, shape index: {}]   ;;  %s5942_s11 = inlined_call_operand.hbm [shape: bf16[2,512,128], index: 11, kind: input, shape index: {}]   ;;  %s5943_s12 = inlined_call_operand.hbm [shape: f32[2,1,128], index: 12, kind: input, shape index: {}]   ;;  %s5944_s13 = inlined_call_operand.vmem [shape: f32[2,2,128], index: 13, kind: input, shape index: {}]   ;;  %s5945_s14 = inlined_call_operand.hbm [shape: f32[2,8,128], index: 14, kind: output, shape index: {}]  }
   0x1   :  { %5962 = sst [smem:[#allocation33_spill]] %s5932_s1  ;;  %s19_s15 = sshll.u32 %s5931_s0, 4  ;;  %s20_s15 = int_to_ptr.vmem [resolvable:$true] %s19_s15 }
   0x2   :  { %5963 = sst [smem:[#allocation34_spill]] %s5934_s3  ;;  %s4908_s16 = scalar_lea.vmem %s20_s15, 32 }
   0x3   :  { %5964 = sst [smem:[#allocation35_spill]] %s5945_s14  ;;  %p4909_p0 = scmp.ne.s32.totalorder %s20_s15, %s4908_s16 }
   0x4   :  { %p4913_p1 = scmp.lt.s32.totalorder %s20_s15, %s20_s15  ;;  %p4914_p2 = scmp.lt.s32.totalorder %s4908_s16, %s4908_s16 }
   0x6   :  { %p4915_p3 = por %p4914_p2, %p4913_p1 }
   0x8   :  { %p4916_p4 = pnand %p4915_p3, %p4909_p0 }
   0xa   :  { %4919 = shalt.err (!%p4916_p4)  }
   0xb   :  { %s5230_s17 = smov [#allocation3]  }
   0xc   :  { %22 = dma.vmem_to_smem %s20_s15, 32, %s5230_s17, [#allocation2] }
   0xd   :  { %5188 = dma.done.wait [#allocation2], 32 }
   0xe   :  { %5189 = vsyncadd [#allocation2], 4294967264 }
   0xf   :  { %24 = sfence }
  0x10   :  { %25 = vsyncpa [#allocation5], 0 }
  0x11   :  { %26 = vsyncpa [#allocation8], 0 }
  0x12   :  { %27 = vsyncpa [#allocation11], 0 }
  0x13   :  { %28 = vsyncpa [#allocation14], 0 }
  0x14   :  { %29 = vsyncpa [#allocation17], 0 }
  0x15   :  { %30 = vsyncpa [#allocation6], 0 }
  0x16   :  { %32 = vsyncpa [#allocation6 + $0x1], 0  ;;  %s5333_s0 = smov 0   ;;  %s5335_s18 = smov 0  }
  0x17   :  { %s5337_s19 = smov 0   ;;  %s5339_s20 = smov 0  }
  0x18 LB: > { %5965 = sst [smem:[#allocation26_spill]] %s5216_s0  ;;  %s5354_s21 = sadd.s32 4294967295, %s5228_s20   ;;  %s5228_s20 = sphi %s5339_s20, %s6000_s20   ;;  %s5224_s19 = sphi %s5337_s19, %s6002_s19   ;;  %s5220_s18 = sphi %s5335_s18, %s6004_s18   ;;  %s5216_s0 = sphi %s5333_s0, %s6003_s0  }
  0x19   : > { %5966 = sst [smem:[#allocation27_spill]] %s5224_s19  ;;  %s3901_s22 = sadd.s32 4294967294, %s5228_s20  }
  0x1a   : > { %5967 = sst [smem:[#allocation28_spill]] %s5228_s20  ;;  %s5358_s23 = sadd.s32 1, %s5228_s20  }
  0x1b   : > { %5968 = sst [smem:[#allocation29_spill]] %s5358_s23  ;;  %s318_s24 = sadd.s32 1, %s5224_s19 }
  0x1c   : > { %s315_s25 = ssub.s32 %s5228_s20, %s5358_s23  ;;  %p328_p5 = scmp.ne.s32.totalorder %s5224_s19, %s5220_s18 }
  0x1d   : > { %p316_p6 = scmp.eq.s32.totalorder %s315_s25, 0  ;;  %p329_p7 = scmp.eq.s32.totalorder %s5354_s21, 1 }
  0x1e   : > { %p334_p8 = scmp.ne.s32.totalorder %s5220_s18, %s5216_s0  ;;  %p335_p9 = scmp.eq.s32.totalorder %s3901_s22, 1 }
  0x1f   : > { %s5369_s26 = scalar_select %p316_p6, %s5224_s19, %s318_s24  }
  0x20   : > { %p5371_p10 = por %p329_p7, %p328_p5  ;;  %p5375_p11 = por %p335_p9, %p334_p8 }
  0x21   : > { %5969 = sst [smem:[#allocation30_spill]] %s5369_s26  ;;  %p3902_p12 = scmp.ge.s32.totalorder %s5228_s20, 1 }
  0x22   : > { %s5970_s27 = scalar_select %p5371_p10, 1, 0 }
  0x23   : > { %s5972_s28 = scalar_select %p5375_p11, 1, 0 }
  0x24   : > { %5971 = sst [smem:[#allocation31_spill]] %s5970_s27  ;;  %p342_p13 = scmp.lt.s32.totalorder %s5228_s20, 3 }
  0x25   : > { %5973 = sst [smem:[#allocation32_spill]] %s5972_s28  ;;  %p5950_p0 = scmp.eq.s32.totalorder %s5354_s21, 0 }
  0x26   : > { %p5382_p1 = pnand %p3902_p12, %p342_p13  ;;  %s5231_s30 = smov [#allocation7]  }
  0x27   : > { %s371_s15 = sshll.u32 %s5231_s30, 4  ;;  %s5232_s16 = smov [#allocation10]   ;;  %s372_s15 = int_to_ptr.vmem [resolvable:$true] %s371_s15 }
  0x28   : > { %s5974_s29 = scalar_select %p5382_p1, 1, 0 }
  0x29   : > { %p4508_p2 = pneg %p5382_p1  ;;  %s397_s17 = sshll.u32 %s5232_s16, 4  ;;  %s5394_s17 = int_to_ptr.vmem [resolvable:$true] %s397_s17 }
  0x2a   : > { %s5976_s3 = sld [smem:[#allocation34_spill]] }
  0x2b   : > { %p5390_p3 = pnand %p5950_p0, %p4508_p2 }
  0x2d   : > { %p5404_p5 = pneg %p5390_p3 }
  0x30   : > { %s4920_s26 = scalar_lea.hbm %s5976_s3, 32 }
  0x31   : > { %p4921_p4 = scmp.ne.s32.totalorder %s5976_s3, %s4920_s26  ;;  %p4927_p8 = scmp.lt.u32.totalorder %s4920_s26, %s5976_s3 }
  0x33   : > { %p4923_p6 = pnand %p5404_p5, %p4921_p4 }
  0x35   : > { %p4924_p7 = pneg %p4923_p6 }
  0x37   : > { %p4929_p9 = pnand %p4927_p8, %p4924_p7 }
  0x39   : > { %4932 = shalt.err (!%p4929_p9)
}
  0x3a   : > { %s4933_s24 = scalar_lea.vmem %s372_s15, 32  ;;  %p4941_p0 = scmp.lt.s32.totalorder %s372_s15, %s372_s15 }
  0x3b   : > { %p4934_p12 = scmp.ne.s32.totalorder %s372_s15, %s4933_s24  ;;  %p4942_p11 = scmp.lt.s32.totalorder %s4933_s24, %s4933_s24 }
  0x3d   : > { %p4936_p13 = pnand %p4934_p12, %p5404_p5  ;;  %p4943_p10 = por %p4942_p11, %p4941_p0 }
  0x3f   : > { %p4937_p2 = pneg %p4936_p13 }
  0x41   : > { %p4944_p1 = pnand %p4943_p10, %p4937_p2 }
  0x43   : > { %4947 = shalt.err (!%p4944_p1)
}
  0x44   : > { %4514 = dma.hbm_to_vmem [thread:$0]  (!%p5390_p3), %s5976_s3, 32, %s372_s15, [#allocation8]  }
  0x45   : > { %s4948_s25 = scalar_lea.hbm %s5937_s6, 2048 }
  0x46   : > { %p4949_p4 = scmp.ne.s32.totalorder %s5937_s6, %s4948_s25  ;;  %p4955_p10 = scmp.lt.u32.totalorder %s4948_s25, %s5937_s6 }
  0x48   : > { %p4951_p6 = pnand %p4949_p4, %p5404_p5 }
  0x4a   : > { %p4952_p11 = pneg %p4951_p6 }
  0x4c   : > { %p4957_p0 = pnand %p4955_p10, %p4952_p11 }
  0x4e   : > { %4960 = shalt.err (!%p4957_p0)
}
  0x4f   : > { %s4961_s15 = scalar_lea.vmem %s5394_s17, 2048  ;;  %p4969_p9 = scmp.lt.s32.totalorder %s5394_s17, %s5394_s17 }
  0x50   : > { %p4962_p1 = scmp.ne.s32.totalorder %s5394_s17, %s4961_s15  ;;  %p4970_p12 = scmp.lt.s32.totalorder %s4961_s15, %s4961_s15 }
  0x52   : > { %p4964_p7 = pnand %p4962_p1, %p5404_p5  ;;  %p4971_p13 = por %p4970_p12, %p4969_p9 }
  0x54   : > { %p4965_p8 = pneg %p4964_p7 }
  0x56   : > { %p4972_p2 = pnand %p4971_p13, %p4965_p8 }
  0x58   : > { %4975 = shalt.err (!%p4972_p2)
}
  0x59   : > { %s5958_s0 = smov 64   ;;  %s5959_s20 = smov 4  }
  0x5a   : > { %4520 = dma.hbm_to_vmem [thread:$0]  (!%p5390_p3), %s5937_s6, 2048, %s5394_s17, [#allocation11], %s5958_s0, %s5958_s0, %s5959_s20  }
  0x5b   : > { %s5235_s26 = smov [#allocation13]   ;;  %s4976_s24 = scalar_lea.hbm %s5940_s9, 8192 }
  0x5c   : > { %s426_s28 = sshll.u32 %s5235_s26, 4  ;;  %p4977_p4 = scmp.ne.s32.totalorder %s5940_s9, %s4976_s24  ;;  %s427_s28 = int_to_ptr.vmem [resolvable:$true] %s426_s28 }
  0x5d   : > { %p4983_p10 = scmp.lt.u32.totalorder %s4976_s24, %s5940_s9 }
  0x5e   : > { %p4979_p6 = pnand %p4977_p4, %p5404_p5 }
  0x60   : > { %p4980_p11 = pneg %p4979_p6 }
  0x62   : > { %p4985_p0 = pnand %p4983_p10, %p4980_p11 }
  0x64   : > { %4988 = shalt.err (!%p4985_p0)
}
  0x65   : > { %s4989_s17 = scalar_lea.vmem %s427_s28, 8192  ;;  %p4997_p9 = scmp.lt.s32.totalorder %s427_s28, %s427_s28 }
  0x66   : > { %p4990_p1 = scmp.ne.s32.totalorder %s427_s28, %s4989_s17  ;;  %p4998_p12 = scmp.lt.s32.totalorder %s4989_s17, %s4989_s17 }
  0x68   : > { %p4992_p7 = pnand %p4990_p1, %p5404_p5  ;;  %p4999_p13 = por %p4998_p12, %p4997_p9 }
  0x6a   : > { %p4993_p8 = pneg %p4992_p7 }
  0x6c   : > { %p5000_p2 = pnand %p4999_p13, %p4993_p8 }
  0x6e   : > { %5003 = shalt.err (!%p5000_p2)
}
  0x6f   : > { %s5236_s3 = smov 256   ;;  %s5960_s19 = smov 16  }
  0x70   : > { %4526 = dma.hbm_to_vmem [thread:$0]  (!%p5390_p3), %s5940_s9, 8192, %s427_s28, [#allocation14], %s5236_s3, %s5236_s3, %s5960_s19  }
  0x71   : > { %s5238_s23 = smov [#allocation4]   ;;  %s5978_s1 = sld [smem:[#allocation33_spill]] }
  0x72   : > { %s354_s26 = sshll.u32 %s5238_s23, 4  ;;  %s355_s26 = int_to_ptr.vmem [resolvable:$true] %s354_s26 }
  0x77   : > { %s5004_s24 = scalar_lea.hbm %s5978_s1, 4096 }
  0x78   : > { %p5005_p4 = scmp.ne.s32.totalorder %s5978_s1, %s5004_s24  ;;  %p5011_p10 = scmp.lt.u32.totalorder %s5004_s24, %s5978_s1 }
  0x7a   : > { %p5007_p6 = pnand %p5005_p4, %p5404_p5 }
  0x7c   : > { %p5008_p11 = pneg %p5007_p6 }
  0x7e   : > { %p5013_p0 = pnand %p5011_p10, %p5008_p11 }
  0x80   : > { %5016 = shalt.err (!%p5013_p0)
}
  0x81   : > { %s5017_s28 = scalar_lea.vmem %s355_s26, 4096  ;;  %p5025_p9 = scmp.lt.s32.totalorder %s355_s26, %s355_s26 }
  0x82   : > { %p5018_p1 = scmp.ne.s32.totalorder %s355_s26, %s5017_s28  ;;  %p5026_p12 = scmp.lt.s32.totalorder %s5017_s28, %s5017_s28 }
  0x84   : > { %p5020_p7 = pnand %p5018_p1, %p5404_p5  ;;  %p5027_p13 = por %p5026_p12, %p5025_p9 }
  0x86   : > { %p5021_p8 = pneg %p5020_p7 }
  0x88   : > { %p5028_p2 = pnand %p5027_p13, %p5021_p8 }
  0x8a   : > { %5031 = shalt.err (!%p5028_p2)
}
  0x8b   : > { %s5239_s3 = smov 128   ;;  %s5240_s14 = smov 8  }
  0x8c   : > { %4511 = dma.hbm_to_vmem [thread:$0]  (!%p5390_p3), %s5978_s1, 4096, %s355_s26, [#allocation5], %s5239_s3, %s5239_s3, %s5240_s14  }
  0x8d   : > { %s5241_s27 = smov [#allocation9]   ;;  %s5032_s24 = scalar_lea.hbm %s5935_s4, 6144 }
  0x8e   : > { %s381_s23 = sshll.u32 %s5241_s27, 4  ;;  %p5033_p4 = scmp.ne.s32.totalorder %s5935_s4, %s5032_s24  ;;  %s382_s23 = int_to_ptr.vmem [resolvable:$true] %s381_s23 }
  0x8f   : > { %p5039_p10 = scmp.lt.u32.totalorder %s5032_s24, %s5935_s4 }
  0x90   : > { %p5035_p6 = pnand %p5033_p4, %p5404_p5 }
  0x92   : > { %p5036_p11 = pneg %p5035_p6 }
  0x94   : > { %p5041_p0 = pnand %p5039_p10, %p5036_p11 }
  0x96   : > { %5044 = shalt.err (!%p5041_p0)
}
  0x97   : > { %s5045_s26 = scalar_lea.vmem %s382_s23, 6144  ;;  %p5053_p9 = scmp.lt.s32.totalorder %s382_s23, %s382_s23 }
  0x98   : > { %p5046_p1 = scmp.ne.s32.totalorder %s382_s23, %s5045_s26  ;;  %p5054_p12 = scmp.lt.s32.totalorder %s5045_s26, %s5045_s26 }
  0x9a   : > { %p5048_p7 = pnand %p5046_p1, %p5404_p5  ;;  %p5055_p13 = por %p5054_p12, %p5053_p9 }
  0x9c   : > { %p5049_p8 = pneg %p5048_p7 }
  0x9e   : > { %p5056_p2 = pnand %p5055_p13, %p5049_p8 }
  0xa0   : > { %5059 = shalt.err (!%p5056_p2)
}
  0xa1   : > { %s5242_s3 = smov 192   ;;  %s5243_s14 = smov 12  }
  0xa2   : > { %4517 = dma.hbm_to_vmem [thread:$0]  (!%p5390_p3), %s5935_s4, 6144, %s382_s23, [#allocation8], %s5242_s3, %s5242_s3, %s5243_s14  }
  0xa3   : > { %s5244_s20 = smov [#allocation12]   ;;  %s5060_s24 = scalar_lea.hbm %s5938_s7, 32 }
  0xa4   : > { %s410_s27 = sshll.u32 %s5244_s20, 4  ;;  %p5061_p4 = scmp.ne.s32.totalorder %s5938_s7, %s5060_s24  ;;  %s411_s27 = int_to_ptr.vmem [resolvable:$true] %s410_s27 }
  0xa5   : > { %p5067_p10 = scmp.lt.u32.totalorder %s5060_s24, %s5938_s7 }
  0xa6   : > { %p5063_p6 = pnand %p5061_p4, %p5404_p5 }
  0xa8   : > { %p5064_p11 = pneg %p5063_p6 }
  0xaa   : > { %p5069_p0 = pnand %p5067_p10, %p5064_p11 }
  0xac   : > { %5072 = shalt.err (!%p5069_p0)
}
  0xad   : > { %s5073_s23 = scalar_lea.vmem %s411_s27, 32  ;;  %p5081_p9 = scmp.lt.s32.totalorder %s411_s27, %s411_s27 }
  0xae   : > { %p5074_p1 = scmp.ne.s32.totalorder %s411_s27, %s5073_s23  ;;  %p5082_p12 = scmp.lt.s32.totalorder %s5073_s23, %s5073_s23 }
  0xb0   : > { %p5076_p7 = pnand %p5074_p1, %p5404_p5  ;;  %p5083_p13 = por %p5082_p12, %p5081_p9 }
  0xb2   : > { %p5077_p8 = pneg %p5076_p7 }
  0xb4   : > { %p5084_p2 = pnand %p5083_p13, %p5077_p8 }
  0xb6   : > { %5087 = shalt.err (!%p5084_p2)
}
  0xb7   : > { %s5245_s3 = smov 1   ;;  %s5979_s14 = smov 16  }
  0xb8   : > { %4523 = dma.hbm_to_vmem [thread:$0]  (!%p5390_p3), %s5938_s7, 32, %s411_s27, [#allocation11], %s5979_s14, %s5979_s14, %s5245_s3  }
  0xb9   : > { %s5246_s20 = smov [#allocation15]   ;;  %s5247_s16 = smov [#allocation16]  }
  0xba   : > { %s442_s25 = sshll.u32 %s5246_s20, 4  ;;  %s455_s24 = sshll.u32 %s5247_s16, 4  ;;  %s443_s25 = int_to_ptr.vmem [resolvable:$true] %s442_s25  ;;  %s456_s24 = int_to_ptr.vmem [resolvable:$true] %s455_s24 }
  0xbb   : > { %s5088_s28 = scalar_lea.hbm %s5942_s11, 8192 }
  0xbc   : > { %p5089_p4 = scmp.ne.s32.totalorder %s5942_s11, %s5088_s28  ;;  %p5095_p10 = scmp.lt.u32.totalorder %s5088_s28, %s5942_s11 }
  0xbe   : > { %p5091_p6 = pnand %p5089_p4, %p5404_p5 }
  0xc0   : > { %p5092_p11 = pneg %p5091_p6 }
  0xc2   : > { %p5097_p0 = pnand %p5095_p10, %p5092_p11 }
  0xc4   : > { %5100 = shalt.err (!%p5097_p0)
}
  0xc5   : > { %s5101_s27 = scalar_lea.vmem %s443_s25, 8192  ;;  %p5109_p9 = scmp.lt.s32.totalorder %s443_s25, %s443_s25 }
  0xc6   : > { %p5102_p1 = scmp.ne.s32.totalorder %s443_s25, %s5101_s27  ;;  %p5110_p12 = scmp.lt.s32.totalorder %s5101_s27, %s5101_s27 }
  0xc8   : > { %p5104_p7 = pnand %p5102_p1, %p5404_p5  ;;  %p5111_p13 = por %p5110_p12, %p5109_p9 }
  0xca   : > { %p5105_p8 = pneg %p5104_p7 }
  0xcc   : > { %p5112_p2 = pnand %p5111_p13, %p5105_p8 }
  0xce   : > { %5115 = shalt.err (!%p5112_p2)
}
  0xcf   : > { %s5980_s0 = smov 4   ;;  %s5981_s20 = smov 64  }
  0xd0   : > { %4529 = dma.hbm_to_vmem [thread:$0]  (!%p5390_p3), %s5942_s11, 8192, %s443_s25, [#allocation14], %s5981_s20, %s5981_s20, %s5980_s0  }
  0xd1   : > { %s5116_s28 = scalar_lea.hbm %s5943_s12, 32 }
  0xd2   : > { %p5117_p4 = scmp.ne.s32.totalorder %s5943_s12, %s5116_s28  ;;  %p5123_p10 = scmp.lt.u32.totalorder %s5116_s28, %s5943_s12 }
  0xd4   : > { %p5119_p6 = pnand %p5117_p4, %p5404_p5 }
  0xd6   : > { %p5120_p11 = pneg %p5119_p6 }
  0xd8   : > { %p5125_p0 = pnand %p5123_p10, %p5120_p11 }
  0xda   : > { %5128 = shalt.err (!%p5125_p0)
}
  0xdb   : > { %s5129_s1 = scalar_lea.vmem %s456_s24, 32  ;;  %p5137_p9 = scmp.lt.s32.totalorder %s456_s24, %s456_s24 }
  0xdc   : > { %p5130_p1 = scmp.ne.s32.totalorder %s456_s24, %s5129_s1  ;;  %p5138_p12 = scmp.lt.s32.totalorder %s5129_s1, %s5129_s1 }
  0xde   : > { %p5132_p7 = pnand %p5130_p1, %p5404_p5  ;;  %p5139_p13 = por %p5138_p12, %p5137_p9 }
  0xe0   : > { %p5133_p8 = pneg %p5132_p7 }
  0xe2   : > { %p5140_p2 = pnand %p5139_p13, %p5133_p8 }
  0xe4   : > { %5143 = shalt.err (!%p5140_p2)
}
  0xe5   : > { %4532 = dma.hbm_to_vmem [thread:$0]  (!%p5390_p3), %s5943_s12, 32, %s456_s24, [#allocation17], %s5979_s14, %s5979_s14, %s5245_s3  }
  0xe6   : > { %p5982_p4 = scmp.ne.s32.totalorder %s5974_s29, 0 }
  0xe7   : > { %p5983_p5 = scmp.eq.s32.totalorder (!%p5982_p4), %s5354_s21, 0 }
  0xe8   : > { %474 = sbr.rel (%p5982_p4) target bundleno = 5861 (0x16e5), region = 72 }
  0xef   : > { %5191 = dma.done.wait (%p5983_p5), [#allocation5], 4096   ;;  %p5984_p6 = pmov %p5983_p5 }
  0xf0   : > { %p5985_p11 = pmov %p5983_p5 }
  0xf1   : > { %5193 = vsyncadd (%p5984_p6), [#allocation5], 4294963200 }
  0xf2   : > { %5195 = dma.done.wait (%p5985_p11), [#allocation8], 6176   ;;  %p5986_p10 = pmov %p5983_p5 }
  0xf3   : > { %p5987_p0 = pmov %p5983_p5 }
  0xf4   : > { %5197 = vsyncadd (%p5986_p10), [#allocation8], 4294961120 }
  0xf5   : > { %5199 = dma.done.wait (%p5987_p0), [#allocation11], 2080   ;;  %p5988_p3 = pmov %p5987_p0 }
  0xf6   : > { %p5989_p1 = pmov %p5987_p0 }
  0xf7   : > { %5201 = vsyncadd (%p5988_p3), [#allocation11], 4294965216 }
  0xf8   : > { %5203 = dma.done.wait (%p5989_p1), [#allocation14], 16384   ;;  %p5990_p7 = pmov %p5987_p0 }
  0xf9   : > { %p5991_p8 = pmov %p5987_p0 }
  0xfa   : > { %5205 = vsyncadd (%p5990_p7), [#allocation14], 4294950912 }
  0xfb   : > { %5207 = dma.done.wait (%p5991_p8), [#allocation17], 32   ;;  %p5992_p9 = pmov %p5987_p0 }
  0xfc   : > { %s5587_s29 = sshll.u32 %s5354_s21, 7  ;;  %vm595_vm0 = vcmask 1040384   ;;  %vm597_vm1 = vcmask 1041408   ;;  %vm599_vm2 = vcmask 1042432   ;;  %vm601_vm3 = vcmask 1043456   ;;  %v609_v17 = vld [vmem:[%s5933_s2] sm:$0xff] }
  0xfd   : > { %5209 = vsyncadd (%p5992_p9), [#allocation17], 4294967264  ;;  %s543_s22 = sld [smem:[#allocation3 + %s5587_s29]]  ;;  %s546_s30 = sadd.s32 1, %s5587_s29  ;;  %vm603_vm4 = vcmask 1044480   ;;  %vm605_vm5 = vcmask 1045504   ;;  %v624_v56 = vlaneseq }
  0xfe   : > { %s547_s3 = sld [smem:[#allocation3 + %s546_s30]]  ;;  %s550_s14 = sadd.s32 2, %s5587_s29  ;;  %vm607_vm6 = vcmask 1046528   ;;  %v4610_v24 = vld [vmem:[#allocation9 + $0x4] ss:$12 sps:$4 sm:$0xff]   ;;  %v5248_v26 = vmov 0.0  }
  0xff   : > { %s551_s24 = sld [smem:[#allocation3 + %s550_s14]]  ;;  %s554_s20 = sadd.s32 3, %s5587_s29  ;;  %v4612_v25 = vld [vmem:[#allocation9] ss:$12 sps:$4 sm:$0xff]   ;;  %4298 = vmatprep.subr.bf16.mxu1 %v5248_v26  ;;  %v4613_v27 = vld [vmem:[#allocation9 + $0x8] ss:$12 sps:$4 sm:$0xff]   ;;  %812 = vmatprep.subr.bf16.mxu0 %v4610_v24 }
 0x100   : > { %s555_s16 = sld [smem:[#allocation3 + %s554_s20]]  ;;  %s558_s15 = sadd.s32 4, %s5587_s29  ;;  %v4614_v28 = vld [vmem:[#allocation9 + $0x1c] ss:$12 sps:$4 sm:$0xff]   ;;  %v4616_v29 = vld [vmem:[#allocation9 + $0x18] ss:$12 sps:$4 sm:$0xff]   ;;  %813 = vmatpush1.bf16.msra.mxu0 %v4612_v25  ;;  %4299 = vmatpush3.bf16.msra.mxu1 %v4613_v27 }
 0x101   : > { %s559_s17 = sld [smem:[#allocation3 + %s558_s15]]  ;;  %s562_s28 = sadd.s32 5, %s5587_s29  ;;  %v4617_v30 = vld [vmem:[#allocation9 + $0x20] ss:$12 sps:$4 sm:$0xff]   ;;  %814 = vmatprep.subr.bf16.mxu0 %v4614_v28  ;;  %4300 = vmatprep.subr.bf16.mxu1 %v5248_v26  ;;  %v4620_v36 = vld [vmem:[#allocation9 + $0x30] ss:$12 sps:$4 sm:$0xff]  }
 0x102   : > { %s563_s21 = sld [smem:[#allocation3 + %s562_s28]]  ;;  %s566_s26 = sadd.s32 6, %s5587_s29  ;;  %v4618_v31 = vld [vmem:[#allocation9 + $0x34] ss:$12 sps:$4 sm:$0xff]   ;;  %v4621_v37 = vld [vmem:[#allocation9 + $0x38] ss:$12 sps:$4 sm:$0xff]  }
 0x103   : > { %s567_s23 = sld [smem:[#allocation3 + %s566_s26]]  ;;  %s544_s19 = scalar_lea.vmem [#allocation4], %s543_s22  ;;  %v4622_v38 = vld [vmem:[#allocation9 + $0x4c] ss:$12 sps:$4 sm:$0xff]   ;;  %v4624_v39 = vld [vmem:[#allocation9 + $0x48] ss:$12 sps:$4 sm:$0xff]  }
 0x104   : > { %v545_v0 = vld [vmem:[%s544_s19] sm:$0x1]  ;;  %s570_s27 = sadd.s32 7, %s5587_s29  ;;  %s548_s1 = scalar_lea.vmem [#allocation4], %s547_s3  ;;  %815 = vmatpush1.bf16.msra.mxu0 %v4616_v29  ;;  %4301 = vmatpush3.bf16.msra.mxu1 %v4617_v30  ;;  %v4626_v41 = vld [vmem:[#allocation9 + $0x64] ss:$12 sps:$4 sm:$0xff]  }
 0x105   : > { %v549_v1 = vld [vmem:[%s548_s1] sm:$0x1]  ;;  %s571_s25 = sld [smem:[#allocation3 + %s570_s27]]  ;;  %s552_s0 = scalar_lea.vmem [#allocation4], %s551_s24  ;;  %816 = vmatprep.subr.bf16.mxu0 %v4618_v31  ;;  %4302 = vmatprep.subr.bf16.mxu1 %v5248_v26  ;;  %v4628_v42 = vld [vmem:[#allocation9 + $0x60] ss:$12 sps:$4 sm:$0xff]  }
 0x106   : > { %v553_v2 = vld [vmem:[%s552_s0] sm:$0x1]  ;;  %v575_v3 = vrot.slane %v549_v1, 7  ;;  %s556_s30 = scalar_lea.vmem [#allocation4], %s555_s16  ;;  %v4629_v43 = vld [vmem:[#allocation9 + $0x68] ss:$12 sps:$4 sm:$0xff]  }
 0x107   : > { %v557_v4 = vld [vmem:[%s556_s30] sm:$0x1]  ;;  %v578_v5 = vrot.slane %v553_v2, 6  ;;  %s560_s14 = scalar_lea.vmem [#allocation4], %s559_s17  ;;  %v4632_v45 = vld [vmem:[#allocation9 + $0x78] ss:$12 sps:$4 sm:$0xff]  }
 0x108   : > { %v561_v6 = vld [vmem:[%s560_s14] sm:$0x1]  ;;  %v581_v7 = vrot.slane %v557_v4, 5  ;;  %v596_v8 = vsel %vm595_vm0, %v545_v0, %v575_v3  ;;  %s564_s20 = scalar_lea.vmem [#allocation4], %s563_s21  ;;  %817 = vmatpush1.bf16.msra.mxu0 %v4620_v36  ;;  %4303 = vmatpush3.bf16.msra.mxu1 %v4621_v37  ;;  %v4633_v46 = vld [vmem:[#allocation9 + $0x80] ss:$12 sps:$4 sm:$0xff]  }
 0x109   : > { %v565_v9 = vld [vmem:[%s564_s20] sm:$0x1]  ;;  %v584_v10 = vrot.slane %v561_v6, 4  ;;  %v598_v11 = vsel %vm597_vm1, %v596_v8, %v578_v5  ;;  %s568_s22 = scalar_lea.vmem [#allocation4], %s567_s23  ;;  %4304 = vmatprep.subr.bf16.mxu1 %v5248_v26  ;;  %818 = vmatprep.subr.bf16.mxu0 %v4622_v38  ;;  %v4634_v47 = vld [vmem:[#allocation9 + $0x94] ss:$12 sps:$4 sm:$0xff]  }
 0x10a   : > { %v569_v12 = vld [vmem:[%s568_s22] sm:$0x1]  ;;  %v587_v13 = vrot.slane %v565_v9, 3  ;;  %v600_v14 = vsel %vm599_vm2, %v598_v11, %v581_v7  ;;  %v5249_v48 = vmov 0   ;;  %vm5250_vm7 = vmmov 0   ;;  %s5251_s28 = smov 96  }
 0x10b   : > { %v590_v15 = vrot.slane %v569_v12, 2  ;;  %v602_v16 = vsel %vm601_vm3, %v600_v14, %v584_v10  ;;  %s572_s16 = scalar_lea.vmem [#allocation4], %s571_s25  ;;  %v4625_v40 = vld [vmem:[#allocation9 + $0x50] ss:$12 sps:$4 sm:$0xff]   ;;  %844 = vmatprep.mubr.bf16.mxu0 %v5249_v48  ;;  %4314 = vmatprep.mubr.msk.bf16.mxu1 %vm5250_vm7, %v5248_v26  ;;  %v4637_v50 = vld [vmem:[#allocation9 + $0x98] ss:$12 sps:$4 sm:$0xff]  }
 0x10c   : > { %v573_v18 = vld [vmem:[%s572_s16] sm:$0x1]  ;;  %v604_v19 = vsel %vm603_vm4, %v602_v16, %v587_v13  ;;  %819 = vmatpush1.bf16.msra.mxu0 %v4624_v39  ;;  %4305 = vmatpush3.bf16.msra.mxu1 %v4625_v40  ;;  %v4638_v51 = vld [vmem:[#allocation9 + $0xac] ss:$12 sps:$4 sm:$0xff]   ;;  %v4640_v52 = vld [vmem:[#allocation9 + $0xa8] ss:$12 sps:$4 sm:$0xff]  }
 0x10d   : > { %v593_v20 = vrot.slane %v573_v18, 1  ;;  %v606_v21 = vsel %vm605_vm5, %v604_v19, %v590_v15  ;;  %4306 = vmatprep.subr.bf16.mxu1 %v5248_v26  ;;  %v4630_v44 = vld [vmem:[#allocation9 + $0x7c] ss:$12 sps:$4 sm:$0xff]   ;;  %820 = vmatprep.subr.bf16.mxu0 %v4626_v41  ;;  %v5620_v58 = vshrl.u32 %v624_v56, 7  ;;  %vm896_vm8 = vcmask 261120   ;;  %s5252_s21 = smov 32  }
 0x10e   : > { %v4636_v49 = vld [vmem:[#allocation9 + $0x90] ss:$12 sps:$4 sm:$0xff]   ;;  %vm943_vm9 = vcmask 64512   ;;  %s5253_s26 = smov 64   ;;  %vm1348_vm10 = vcmask 523264   ;;  %vm1350_vm11 = vcmask 785408  }
 0x10f   : > { %v608_v22 = vsel %vm607_vm6, %v606_v21, %v593_v20  ;;  %v4641_v53 = vld [vmem:[#allocation9 + $0xb0] ss:$12 sps:$4 sm:$0xff]   ;;  %v5623_v59 = vsub.s32 0, %v5620_v58  ;;  %v5626_v61 = vsub.s32 1, %v5620_v58  ;;  %v5643_v7 = vsub.s32 2, %v5620_v58  ;;  %s538_s16 = sand.u32 1, %s5220_s18  }
 0x110   : > { %v610_v23 = vadd.f32 %v609_v17, %v608_v22  ;;  %821 = vmatpush1.bf16.msra.mxu0 %v4628_v42  ;;  %4307 = vmatpush3.bf16.msra.mxu1 %v4629_v43  ;;  %v611_v60 = vld [vmem:[#allocation7] sm:$0x3]  ;;  %s3920_s15 = sshll.u32 %s538_s16, 3  ;;  %s5994_s1 = sld [smem:[#allocation35_spill]] }
 0x111   : > { %822 = vmatprep.subr.bf16.mxu0 %v4630_v44  ;;  %4308 = vmatprep.subr.bf16.mxu1 %v5248_v26  ;;  %v627_v62 = vrot.slane %v611_v60, %v5623_v59  ;;  %v632_v1 = vrot.slane %v611_v60, %v5626_v61  ;;  %v667_v5 = vld [vmem:[%s5936_s5] sm:$0x7]  ;;  %s3754_s0 = scalar_lea.sflag [#allocation6], %s538_s16  ;;  %s5254_s14 = smov [#allocation18]  }
 0x112   : > { %612 = vadd.xlane.f32.xlu0 %v610_v23  ;;  %v672_v6 = vrot.slane %v667_v5, %v5623_v59  ;;  %v676_v8 = vrot.slane %v667_v5, %v5626_v61  ;;  %v680_v14 = vrot.slane %v667_v5, %v5643_v7  ;;  %s5148_s20 = sshll.u32 %s5254_s14, 4  ;;  %s5149_s20 = int_to_ptr.vmem [resolvable:$false] %s5148_s20 }
 0x113   : > { %s5150_s22 = scalar_lea.vmem %s5149_s20, 256 }
 0x114   : > { %823 = vmatpush1.bf16.msra.mxu0 %v4632_v45  ;;  %4309 = vmatpush3.bf16.msra.mxu1 %v4633_v46 }
 0x115   : > { %824 = vmatprep.subr.bf16.mxu0 %v4634_v47  ;;  %4310 = vmatprep.subr.bf16.mxu1 %v5248_v26 }
 0x116   : > { %s5889_s25 = scalar_lea.hbm %s5994_s1, %s5587_s29 }
 0x118   : > { %825 = vmatpush1.bf16.msra.mxu0 %v4636_v49  ;;  %4311 = vmatpush3.bf16.msra.mxu1 %v4637_v50 }
 0x119   : > { %826 = vmatprep.subr.bf16.mxu0 %v4638_v51  ;;  %4312 = vmatprep.subr.bf16.mxu1 %v5248_v26 }
 0x11c   : > { %827 = vmatpush1.bf16.msra.mxu0 %v4640_v52  ;;  %4313 = vmatpush3.bf16.msra.mxu1 %v4641_v53 }
 0x11d   : > { %4318 = vmatprep.subr.bf16.mxu1 %v5248_v26  ;;  %4342 = vmatprep.subr.bf16.mxu0 %v5248_v26 }
 0x19f   : > { %v613_v32 = vpop.xlane.xlu0 %612 }
 0x1a0   : > { %v615_v33 = vmul.f32 0.0078125, %v613_v32 }
 0x1a2   : > { %v616_v34 = vsub.f32 %v610_v23, %v615_v33 }
 0x1a4   : > { %v617_v35 = vmul.f32 %v616_v34, %v616_v34 }
 0x1a6   : > { %618 = vadd.xlane.f32.xlu0 %v617_v35 }
 0x233   : > { %v619_v54 = vpop.xlane.xlu0 %618 }
 0x234   : > { %v620_v55 = vmul.f32 0.0078125, %v619_v54 }
 0x236   : > { %v621_v57 = vadd.f32 1e-12, %v620_v55 }
 0x238   : > { %4850 = vrsqrt.f32 %v621_v57 }
 0x242   : > { %v4851_v63 = vpop.eup %4850 }
 0x243   : > { %v623_v0 = vmul.f32 %v4851_v63, %v616_v34 }
 0x245   : > { %v628_v2 = vmul.f32 %v627_v62, %v623_v0 }
 0x247   : > { %v5630_v3 = vadd.f32 %v632_v1, %v628_v2 }
 0x249   : > { %v634_v4 = vpack.c.bf16 %v5630_v3, %v5630_v3 }
 0x24b   : > { %845 = vmatmul.mubr.bf16.vlgmr.msra.gmra.mrb[0].mxu0 %v634_v4  ;;  %4315 = vmatmul.mubr.bf16.vlgmr.msra.gmra.mrb[0].mxu1 %v634_v4 }
 0x24c   : > { %4320 = vmatprep.mubr.msk.bf16.mxu1 %vm5250_vm7, %v5248_v26  ;;  %4344 = vmatprep.mubr.msk.bf16.mxu0 %vm5250_vm7, %v5248_v26 }
 0x31e   : > { %v846_v9 = vpop.f32.mrb[0].mxu0  ;;  %v887_v10 = vpop.f32.mrb[0].mxu1 }
 0x31f   : > { %v847_v11 = vadd.f32 %v846_v9, %v672_v6  ;;  %v848_v12 = vpop.f32.mrb[1].mxu0  ;;  %v4316_v13 = vpop.f32.mrb[1].mxu1  ;;  %v888_v22 = vadd.f32 %v887_v10, %v680_v14 }
 0x320   : > { %v849_v15 = vadd.f32 %v848_v12, %v676_v8  ;;  %v850_v16 = vpop.f32.mrb[2].mxu0  ;;  %v890_v17 = vpop.f32.mrb[2].mxu1 }
 0x321   : > { %v893_v18 = vpack.c.bf16 %v847_v11, %v847_v11  ;;  %v851_v19 = vpop.f32.mrb[3].mxu0  ;;  %v4317_v20 = vpop.f32.mrb[3].mxu1  ;;  %v5651_v24 = vpack.c.bf16 %v888_v22, %v888_v22 }
 0x322   : > { %v894_v21 = vpack.c.bf16 %v849_v15, %v849_v15 }
 0x323   : > { %1003 = vrot.lane.b32.xlu0 %v893_v18, %s5251_s28  ;;  %v958_v25 = vsel %vm601_vm3, %v5651_v24, 0 }
 0x324   : > { %v901_v23 = vsel %vm896_vm8, %v894_v21, 0 }
 0x325   : > { %4319 = vmatpush3.bf16.xpose.msra.mxu1 %v901_v23 }
 0x326   : > { %4324 = vmatprep.subr.bf16.mxu1 %v5248_v26 }
 0x327   : > { %1225 = vrot.lane.b32.xlu0 %v893_v18, %s5252_s21 }
 0x32c   : > { %4321 = vmatmul.mubr.msk.bf16.vlgmr.msra.gmra.mrb[4].mxu1 %vm896_vm8, %v893_v18 }
 0x32d   : > { %4325 = vmatpush3.bf16.msra.mxu1 %v958_v25  ;;  %4326 = vmatprep.mubr.msk.bf16.mxu1 %vm5250_vm7, %v5248_v26 }
 0x32e   : > { %4330 = vmatprep.subr.bf16.mxu1 %v5248_v26 }
 0x395   : > { %v1004_v43 = vpop.permute.xlu0 %1003 }
 0x399   : > { %v1226_v45 = vpop.permute.xlu0 %1225 }
 0x3ff   : > { %v937_v27 = vpop.f32.mrb[4].mxu1 }
 0x400   : > { %v4322_v28 = vpop.f32.mrb[5].mxu1  ;;  %v944_v29 = vsel %vm943_vm9, %v937_v27, -inf }
 0x401   : > { %945 = vmax.xlane.f32.xlu1 %v944_v29  ;;  %v940_v30 = vpop.f32.mrb[6].mxu1 }
 0x402   : > { %v4323_v31 = vpop.f32.mrb[7].mxu1 }
 0x412   : > { %1006 = vrot.lane.b32.xlu1 %v894_v21, %s5251_s28 }
 0x416   : > { %1117 = vrot.lane.b32.xlu1 %v894_v21, %s5253_s26 }
 0x41a   : > { %1115 = vrot.lane.b32.xlu1 %v893_v18, %s5253_s26 }
 0x41e   : > { %1227 = vrot.lane.b32.xlu1 %v894_v21, %s5252_s21 }
 0x48e   : > { %v946_v32 = vpop.xlane.xlu1 %945 }
 0x48f   : > { %v947_v33 = vsub.f32 %v937_v27, %v946_v32 }
 0x491   : > { %v948_v34 = vmul.f32 1.442695, %v947_v33  ;;  %v4642_v33 = vld [vmem:[#allocation10] sm:$0xff]  }
 0x492   : > { %v1007_v35 = vpop.permute.xlu1 %1006 }
 0x493   : > { %4852 = vpow2.f32 %v948_v34  ;;  %v1012_v44 = vsel %vm896_vm8, %v1007_v35, 0  ;;  %v4643_v34 = vld [vmem:[#allocation10 + $0x8] sm:$0xff]   ;;  %v4644_v35 = vld [vmem:[#allocation10 + $0x10] sm:$0xff]  }
 0x496   : > { %v1118_v36 = vpop.permute.xlu1 %1117 }
 0x497   : > { %v1123_v37 = vsel %vm896_vm8, %v1118_v36, 0 }
 0x498   : > { %4343 = vmatpush3.bf16.xpose.msra.mxu0 %v1123_v37  ;;  %v4645_v37 = vld [vmem:[#allocation10 + $0x18] sm:$0xff]  }
 0x499   : > { %4354 = vmatprep.subr.bf16.mxu0 %v5248_v26 }
 0x49a   : > { %v1116_v38 = vpop.permute.xlu1 %1115 }
 0x49d   : > { %v5666_v39 = vpop.eup %4852 }
 0x49e   : > { %v1228_v40 = vpop.permute.xlu1 %1227  ;;  %v953_v41 = vpack.c.bf16 %v5666_v39, %v5666_v39  ;;  %v950_v28 = vsel %vm943_vm9, %v5666_v39, 0.0 }
 0x49f   : > { %v1233_v42 = vsel %vm896_vm8, %v1228_v40, 0  ;;  %4345 = vmatmul.mubr.msk.bf16.vlgmr.msra.gmra.mrb[4].mxu0 %vm896_vm8, %v1116_v38  ;;  %v4646_v38 = vld [vmem:[#allocation10 + $0x20] sm:$0xff]   ;;  %v4647_v40 = vld [vmem:[#allocation10 + $0x28] sm:$0xff]  }
 0x4a0   : > { %4327 = vmatmul.mubr.msk.bf16.vlgmr.msra.gmra.mrb[8].mxu1 %vm943_vm9, %v953_v41  ;;  %4355 = vmatpush3.bf16.xpose.msra.mxu0 %v1233_v42  ;;  %v4648_v41 = vld [vmem:[#allocation10 + $0x30] sm:$0xff]  }
 0x4a1   : > { %4331 = vmatpush3.bf16.xpose.msra.mxu1 %v1012_v44  ;;  %4356 = vmatprep.mubr.msk.bf16.mxu0 %vm5250_vm7, %v5248_v26 }
 0x4a2   : > { %4332 = vmatprep.mubr.msk.bf16.mxu1 %vm5250_vm7, %v5248_v26  ;;  %4336 = vmatprep.subr.bf16.mxu1 %v5248_v26 }
 0x4a3   : > { %4366 = vmatprep.subr.bf16.mxu0 %v5248_v26 }
 0x4a7   : > { %4357 = vmatmul.mubr.msk.bf16.vlgmr.msra.gmra.mrb[8].mxu0 %vm896_vm8, %v1226_v45 }
 0x4a8   : > { %4333 = vmatmul.mubr.msk.bf16.vlgmr.msra.gmra.mrb[12].mxu1 %vm896_vm8, %v1004_v43  ;;  %4382 = vmatprep.mubr.msk.bf16.mxu0 %vm5250_vm7, %v5248_v26 }
 0x4a9   : > { %4338 = vmatprep.mubr.msk.bf16.mxu1 %vm5250_vm7, %v5248_v26  ;;  %4367 = vmatpush3.bf16.msra.mxu0 %v4642_v33 }
 0x4aa   : > { %4368 = vmatprep.subr.bf16.mxu0 %v5248_v26 }
 0x4ad   : > { %4369 = vmatpush3.bf16.msra.mxu0 %v4643_v34 }
 0x4ae   : > { %4370 = vmatprep.subr.bf16.mxu0 %v5248_v26 }
 0x4b1   : > { %4371 = vmatpush3.bf16.msra.mxu0 %v4644_v35 }
 0x4b2   : > { %4372 = vmatprep.subr.bf16.mxu0 %v5248_v26 }
 0x4b5   : > { %4373 = vmatpush3.bf16.msra.mxu0 %v4645_v37  ;;  %v4670_v37 = vld [vmem:[#allocation13 + $0x64] ss:$16 sps:$4 sm:$0xff]  }
 0x4b6   : > { %4374 = vmatprep.subr.bf16.mxu0 %v5248_v26 }
 0x4b9   : > { %4375 = vmatpush3.bf16.msra.mxu0 %v4646_v38  ;;  %v4673_v38 = vld [vmem:[#allocation13 + $0x6c] ss:$16 sps:$4 sm:$0xff]  }
 0x4ba   : > { %4376 = vmatprep.subr.bf16.mxu0 %v5248_v26 }
 0x4bd   : > { %4377 = vmatpush3.bf16.msra.mxu0 %v4647_v40  ;;  %v4671_v40 = vld [vmem:[#allocation13 + $0x68] ss:$16 sps:$4 sm:$0xff]  }
 0x4be   : > { %4378 = vmatprep.subr.bf16.mxu0 %v5248_v26 }
 0x4c1   : > { %4379 = vmatpush3.bf16.msra.mxu0 %v4648_v41  ;;  %v4676_v41 = vld [vmem:[#allocation13 + $0x84] ss:$16 sps:$4 sm:$0xff]  }
 0x4c2   : > { %4380 = vmatprep.subr.bf16.mxu0 %v5248_v26 }
 0x572   : > { %v1159_v46 = vpop.f32.mrb[4].mxu0 }
 0x573   : > { %v5686_v47 = vpop.f32.mrb[8].mxu1  ;;  %v4346_v49 = vpop.f32.mrb[5].mxu0  ;;  %v1165_v50 = vsel %vm943_vm9, %v1159_v46, -inf }
 0x574   : > { %1166 = vmax.xlane.f32.xlu0 %v1165_v50  ;;  %v4328_v51 = vpop.f32.mrb[9].mxu1  ;;  %v1162_v52 = vpop.f32.mrb[6].mxu0 }
 0x575   : > { %v997_v53 = vpop.f32.mrb[10].mxu1  ;;  %v4347_v54 = vpop.f32.mrb[7].mxu0  ;;  %v4649_v51 = vld [vmem:[#allocation10 + $0x38] sm:$0xff]  }
 0x576   : > { %v4329_v55 = vpop.f32.mrb[11].mxu1  ;;  %4381 = vmatpush3.bf16.msra.mxu0 %v4649_v51  ;;  %v4688_v51 = vld [vmem:[#allocation13 + $0xc4] ss:$16 sps:$4 sm:$0xff]  }
 0x57a   : > { %v1269_v56 = vpop.f32.mrb[8].mxu0 }
 0x57b   : > { %v1048_v57 = vpop.f32.mrb[12].mxu1  ;;  %v4358_v60 = vpop.f32.mrb[9].mxu0  ;;  %v1275_v62 = vsel %vm943_vm9, %v1269_v56, -inf }
 0x57c   : > { %1276 = vmax.xlane.f32.xlu0 %v1275_v62  ;;  %v4334_v63 = vpop.f32.mrb[13].mxu1  ;;  %v1272_v0 = vpop.f32.mrb[10].mxu0  ;;  %v1054_v1 = vsel %vm943_vm9, %v1048_v57, -inf }
 0x57d   : > { %v4359_v2 = vpop.f32.mrb[11].mxu0  ;;  %1055 = vmax.xlane.f32.xlu1 %v1054_v1  ;;  %v1051_v4 = vpop.f32.mrb[14].mxu1 }
 0x57e   : > { %v4335_v5 = vpop.f32.mrb[15].mxu1 }
 0x58e   : > { %1175 = vrot.lane.b32.xlu1 %v5651_v24, %s5253_s26 }
 0x592   : > { %1065 = vrot.lane.b32.xlu0 %v5651_v24, %s5251_s28  ;;  %1285 = vrot.lane.b32.xlu1 %v5651_v24, %s5252_s21 }
 0x601   : > { %v1167_v6 = vpop.xlane.xlu0 %1166 }
 0x602   : > { %v1168_v8 = vsub.f32 %v1159_v46, %v1167_v6 }
 0x604   : > { %v1169_v9 = vmul.f32 1.442695, %v1168_v8 }
 0x606   : > { %4854 = vpow2.f32 %v1169_v9 }
 0x609   : > { %v1277_v10 = vpop.xlane.xlu0 %1276 }
 0x60a   : > { %v1278_v11 = vsub.f32 %v1269_v56, %v1277_v10  ;;  %v1056_v12 = vpop.xlane.xlu1 %1055 }
 0x60b   : > { %v1057_v13 = vsub.f32 %v1048_v57, %v1056_v12 }
 0x60c   : > { %v1279_v14 = vmul.f32 1.442695, %v1278_v11 }
 0x60d   : > { %v1058_v15 = vmul.f32 1.442695, %v1057_v13  ;;  %v1066_v16 = vpop.permute.xlu0 %1065 }
 0x60e   : > { %4856 = vpow2.f32 %v1279_v14  ;;  %v1071_v17 = vsel %vm601_vm3, %v1066_v16, 0  ;;  %v1176_v22 = vpop.permute.xlu1 %1175 }
 0x60f   : > { %4858 = vpow2.f32 %v1058_v15  ;;  %4337 = vmatpush3.bf16.msra.mxu1 %v1071_v17  ;;  %v1181_v27 = vsel %vm601_vm3, %v1176_v22, 0  ;;  %v3954_v15 = vld [vmem:[#allocation12] ss:$0 sm:$0xff]  ;;  %v4652_v22 = vld [vmem:[#allocation13 + $0x4] ss:$16 sps:$4 sm:$0xff]  }
 0x610   : > { %v4855_v18 = vpop.eup %4854  ;;  %4348 = vmatprep.subr.bf16.mxu1 %v5248_v26 }
 0x611   : > { %v1171_v19 = vsel %vm943_vm9, %v4855_v18, 0.0  ;;  %v1174_v30 = vpack.c.bf16 %v4855_v18, %v4855_v18 }
 0x612   : > { %1172 = vadd.xlane.f32.xlu0 %v1171_v19  ;;  %v1286_v29 = vpop.permute.xlu1 %1285 }
 0x613   : > { %v1291_v31 = vsel %vm601_vm3, %v1286_v29, 0  ;;  %v4659_v29 = vld [vmem:[#allocation13 + $0x28] ss:$16 sps:$4 sm:$0xff]  }
 0x618   : > { %v4857_v20 = vpop.eup %4856 }
 0x619   : > { %v4859_v21 = vpop.eup %4858  ;;  %v1281_v23 = vsel %vm943_vm9, %v4857_v20, 0.0  ;;  %v1284_v32 = vpack.c.bf16 %v4857_v20, %v4857_v20 }
 0x61a   : > { %1282 = vadd.xlane.f32.xlu0 %v1281_v23  ;;  %v1060_v24 = vsel %vm943_vm9, %v4859_v21, 0.0  ;;  %v1063_v25 = vpack.c.bf16 %v4859_v21, %v4859_v21  ;;  %v4650_v21 = vld [vmem:[#allocation13] ss:$16 sps:$4 sm:$0xff]   ;;  %v4653_v23 = vld [vmem:[#allocation13 + $0x8] ss:$16 sps:$4 sm:$0xff]  }
 0x61b   : > { %1061 = vadd.xlane.f32.xlu1 %v1060_v24  ;;  %v4655_v24 = vld [vmem:[#allocation13 + $0xc] ss:$16 sps:$4 sm:$0xff]  }
 0x61c   : > { %4339 = vmatmul.mubr.msk.bf16.vlgmr.msra.gmra.mrb[16].mxu1 %vm943_vm9, %v1063_v25  ;;  %v4658_v25 = vld [vmem:[#allocation13 + $0x24] ss:$16 sps:$4 sm:$0xff]   ;;  %1743 = vmatprep.subr.bf16.mxu0 %v4655_v24  ;;  %v4712_v24 = vld [vmem:[#allocation15 + $0x18] sm:$0xff]  }
 0x61d   : > { %4349 = vmatpush3.bf16.msra.mxu1 %v1181_v27  ;;  %4350 = vmatprep.mubr.msk.bf16.mxu1 %vm5250_vm7, %v5248_v26  ;;  %v4661_v27 = vld [vmem:[#allocation13 + $0x2c] ss:$16 sps:$4 sm:$0xff]  }
 0x61e   : > { %951 = vadd.xlane.f32.xlu0 %v950_v28  ;;  %4360 = vmatprep.subr.bf16.mxu1 %v5248_v26  ;;  %v4656_v28 = vld [vmem:[#allocation13 + $0x20] ss:$16 sps:$4 sm:$0xff]  }
 0x624   : > { %4351 = vmatmul.mubr.msk.bf16.vlgmr.msra.gmra.mrb[20].mxu1 %vm943_vm9, %v1174_v30  ;;  %v4664_v30 = vld [vmem:[#allocation13 + $0x44] ss:$16 sps:$4 sm:$0xff]  }
 0x625   : > { %4361 = vmatpush3.bf16.msra.mxu1 %v1291_v31  ;;  %4362 = vmatprep.mubr.msk.bf16.mxu1 %vm5250_vm7, %v5248_v26  ;;  %v4667_v31 = vld [vmem:[#allocation13 + $0x4c] ss:$16 sps:$4 sm:$0xff]  }
 0x626   : > { %1702 = vmatprep.subr.bf16.mxu1 %v4652_v22  ;;  %v4710_v22 = vld [vmem:[#allocation15 + $0x58] sm:$0xff]  }
 0x62c   : > { %4363 = vmatmul.mubr.msk.bf16.vlgmr.msra.gmra.mrb[24].mxu1 %vm943_vm9, %v1284_v32  ;;  %v4662_v32 = vld [vmem:[#allocation13 + $0x40] ss:$16 sps:$4 sm:$0xff]  }
 0x62d   : > { %1734 = vmatprep.mubr.bf16.mxu1 %v5249_v48  ;;  %1703 = vmatpush1.bf16.msra.mxu1 %v4650_v21  ;;  %v4709_v21 = vld [vmem:[#allocation15 + $0x90] sm:$0xff]  }
 0x62e   : > { %1704 = vmatprep.subr.bf16.mxu1 %v4658_v25  ;;  %v4713_v25 = vld [vmem:[#allocation15 + $0x98] sm:$0xff]  }
 0x631   : > { %1705 = vmatpush1.bf16.msra.mxu1 %v4656_v28  ;;  %v4715_v28 = vld [vmem:[#allocation15 + $0xe0] sm:$0xff]  }
 0x632   : > { %1706 = vmatprep.subr.bf16.mxu1 %v4664_v30  ;;  %v4717_v30 = vld [vmem:[#allocation15 + $0xa0] sm:$0xff]  }
 0x635   : > { %1707 = vmatpush1.bf16.msra.mxu1 %v4662_v32  ;;  %v4719_v32 = vld [vmem:[#allocation15 + $0xe8] sm:$0xff]  }
 0x636   : > { %1708 = vmatprep.subr.bf16.mxu1 %v4670_v37  ;;  %v4725_v37 = vld [vmem:[#allocation15 + $0xb0] sm:$0xff]  }
 0x69f   : > { %v1173_v39 = vpop.xlane.xlu0 %1172 }
 0x6a7   : > { %v1283_v49 = vpop.xlane.xlu0 %1282 }
 0x6a8   : > { %v1062_v36 = vpop.xlane.xlu1 %1061 }
 0x6a9   : > { %4860 = vrcp.f32 %v1062_v36 }
 0x6aa   : > { %4862 = vrcp.f32 %v1173_v39  ;;  %v4668_v39 = vld [vmem:[#allocation13 + $0x60] ss:$16 sps:$4 sm:$0xff]  }
 0x6ab   : > { %4864 = vrcp.f32 %v1283_v49  ;;  %v952_v4 = vpop.xlane.xlu0 %951  ;;  %1709 = vmatpush1.bf16.msra.mxu1 %v4668_v39  ;;  %v4680_v49 = vld [vmem:[#allocation13 + $0xa0] ss:$16 sps:$4 sm:$0xff]   ;;  %v4727_v39 = vld [vmem:[#allocation15 + $0xf8] sm:$0xff]  }
 0x6ac   : > { %4866 = vrcp.f32 %v952_v4  ;;  %1710 = vmatprep.subr.bf16.mxu1 %v4676_v41  ;;  %v4729_v41 = vld [vmem:[#allocation15 + $0xb8] sm:$0xff]  }
 0x6b3   : > { %v4861_v42 = vpop.eup %4860 }
 0x6b4   : > { %v4863_v52 = vpop.eup %4862 }
 0x6b5   : > { %v4865_v60 = vpop.eup %4864 }
 0x6b6   : > { %v4867_v5 = vpop.eup %4866 }
 0x6b7   : > { %v1001_v8 = vmul.f32 %v4867_v5, %v5686_v47 }
 0x6ef   : > { %v1107_v43 = vpop.f32.mrb[16].mxu1 }
 0x6f0   : > { %v1114_v44 = vmul.f32 %v4861_v42, %v1107_v43  ;;  %v4340_v45 = vpop.f32.mrb[17].mxu1  ;;  %v4679_v42 = vld [vmem:[#allocation13 + $0x8c] ss:$16 sps:$4 sm:$0xff]   ;;  %v4674_v43 = vld [vmem:[#allocation13 + $0x80] ss:$16 sps:$4 sm:$0xff]  }
 0x6f1   : > { %v1110_v46 = vpop.f32.mrb[18].mxu1  ;;  %1711 = vmatpush1.bf16.msra.mxu1 %v4674_v43  ;;  %v4682_v45 = vld [vmem:[#allocation13 + $0xa4] ss:$16 sps:$4 sm:$0xff]   ;;  %v1536_v43 = vsub.s32 3, %v5620_v58 }
 0x6f2   : > { %1336 = vrot.lane.b32.xlu1 %v1114_v44, %s5252_s21  ;;  %v4341_v50 = vpop.f32.mrb[19].mxu1  ;;  %v4677_v44 = vld [vmem:[#allocation13 + $0x88] ss:$16 sps:$4 sm:$0xff]   ;;  %v4685_v46 = vld [vmem:[#allocation13 + $0xac] ss:$16 sps:$4 sm:$0xff]   ;;  %1712 = vmatprep.subr.bf16.mxu1 %v4682_v45 }
 0x6f3   : > { %v4683_v50 = vld [vmem:[#allocation13 + $0xa8] ss:$16 sps:$4 sm:$0xff]  }
 0x6f5   : > { %1713 = vmatpush1.bf16.msra.mxu1 %v4680_v49 }
 0x6f6   : > { %1714 = vmatprep.subr.bf16.mxu1 %v4688_v51 }
 0x6f7   : > { %v1217_v53 = vpop.f32.mrb[20].mxu1 }
 0x6f8   : > { %v1224_v54 = vmul.f32 %v4863_v52, %v1217_v53  ;;  %v4352_v55 = vpop.f32.mrb[21].mxu1  ;;  %v4691_v52 = vld [vmem:[#allocation13 + $0xcc] ss:$16 sps:$4 sm:$0xff]   ;;  %v4686_v53 = vld [vmem:[#allocation13 + $0xc0] ss:$16 sps:$4 sm:$0xff]  }
 0x6f9   : > { %v1220_v56 = vpop.f32.mrb[22].mxu1  ;;  %v4694_v55 = vld [vmem:[#allocation13 + $0xe4] ss:$16 sps:$4 sm:$0xff]   ;;  %1715 = vmatpush1.bf16.msra.mxu1 %v4686_v53 }
 0x6fa   : > { %1340 = vrot.lane.b32.xlu0 %v1224_v54, %s5253_s26  ;;  %v4353_v57 = vpop.f32.mrb[23].mxu1  ;;  %v4689_v54 = vld [vmem:[#allocation13 + $0xc8] ss:$16 sps:$4 sm:$0xff]   ;;  %v4697_v56 = vld [vmem:[#allocation13 + $0xec] ss:$16 sps:$4 sm:$0xff]   ;;  %1716 = vmatprep.subr.bf16.mxu1 %v4694_v55 }
 0x6fb   : > { %v4692_v57 = vld [vmem:[#allocation13 + $0xe0] ss:$16 sps:$4 sm:$0xff]  }
 0x6fd   : > { %1717 = vmatpush1.bf16.msra.mxu1 %v4692_v57 }
 0x6ff   : > { %v1327_v62 = vpop.f32.mrb[24].mxu1 }
 0x700   : > { %v1334_v63 = vmul.f32 %v4865_v60, %v1327_v62  ;;  %v4364_v0 = vpop.f32.mrb[25].mxu1  ;;  %v4695_v60 = vld [vmem:[#allocation13 + $0xe8] ss:$16 sps:$4 sm:$0xff]  }
 0x701   : > { %v1330_v1 = vpop.f32.mrb[26].mxu1 }
 0x702   : > { %1344 = vrot.lane.b32.xlu1 %v1334_v63, %s5251_s28  ;;  %v4365_v2 = vpop.f32.mrb[27].mxu1  ;;  %v1464_v1 = vld [vmem:[%s5939_s8] sm:$0x3] }
 0x703   : > { %v1480_v2 = vrot.slane %v1464_v1, %v5623_v59 }
 0x764   : > { %v1337_v6 = vpop.permute.xlu1 %1336 }
 0x765   : > { %v1347_v10 = vsel %vm896_vm8, %v1001_v8, %v1337_v6  ;;  %v1485_v6 = vrot.slane %v1464_v1, %v5626_v61 }
 0x76c   : > { %v1341_v9 = vpop.permute.xlu0 %1340 }
 0x76d   : > { %v1349_v11 = vsel %vm1348_vm10, %v1347_v10, %v1341_v9 }
 0x774   : > { %v1345_v12 = vpop.permute.xlu1 %1344 }
 0x775   : > { %v1351_v13 = vsel %vm1350_vm11, %v1349_v11, %v1345_v12  ;;  %v4698_v11 = vld [vmem:[#allocation15 + $0x40] sm:$0xff]  }
 0x776   : > { %v1352_v14 = vpack.c.bf16 %v1351_v13, %v1351_v13  ;;  %v4699_v12 = vld [vmem:[#allocation15 + $0xc0] sm:$0xff]   ;;  %4176 = vmatprep.subr.bf16.mxu1 %v4698_v11 }
 0x777   : > { %v4700_v13 = vld [vmem:[#allocation15] sm:$0xff]  }
 0x778   : > { %4383 = vmatmul.mubr.bf16.vlgmr.msra.gmra.mrb[12].mxu0 %v1352_v14  ;;  %v4701_v14 = vld [vmem:[#allocation15 + $0x80] sm:$0xff]  }
 0x779   : > { %1775 = vmatprep.mubr.bf16.mxu0 %v5249_v48  ;;  %1744 = vmatpush1.bf16.msra.mxu0 %v4653_v23  ;;  %v4711_v23 = vld [vmem:[#allocation15 + $0xd8] sm:$0xff]  }
 0x77a   : > { %1745 = vmatprep.subr.bf16.mxu0 %v4661_v27  ;;  %v4714_v27 = vld [vmem:[#allocation15 + $0x60] sm:$0xff]  }
 0x77d   : > { %1746 = vmatpush1.bf16.msra.mxu0 %v4659_v29  ;;  %v4716_v29 = vld [vmem:[#allocation15 + $0x20] sm:$0xff]  }
 0x77e   : > { %1747 = vmatprep.subr.bf16.mxu0 %v4667_v31  ;;  %v4718_v31 = vld [vmem:[#allocation15 + $0x68] sm:$0xff]  }
 0x84b   : > { %v1458_v16 = vpop.f32.mrb[12].mxu0 }
 0x84c   : > { %v1459_v17 = vadd.f32 %v3954_v15, %v1458_v16  ;;  %v4384_v18 = vpop.f32.mrb[13].mxu0  ;;  %v4702_v15 = vld [vmem:[#allocation15 + $0x48] sm:$0xff]  }
 0x84d   : > { %v1461_v19 = vpop.f32.mrb[14].mxu0  ;;  %v4703_v16 = vld [vmem:[#allocation15 + $0xc8] sm:$0xff]  }
 0x84e   : > { %v4385_v47 = vpop.f32.mrb[15].mxu0  ;;  %v1465_v20 = vadd.f32 %v1459_v17, %v5630_v3  ;;  %v4665_v3 = vld [vmem:[#allocation13 + $0x48] ss:$16 sps:$4 sm:$0xff]   ;;  %v4706_v19 = vld [vmem:[#allocation15 + $0x50] sm:$0xff]  }
 0x84f   : > { %1748 = vmatpush1.bf16.msra.mxu0 %v4665_v3  ;;  %v4704_v17 = vld [vmem:[#allocation15 + $0x8] sm:$0xff]   ;;  %v4707_v47 = vld [vmem:[#allocation15 + $0xd0] sm:$0xff]  }
 0x850   : > { %1466 = vadd.xlane.f32.xlu1 %v1465_v20  ;;  %1749 = vmatprep.subr.bf16.mxu0 %v4673_v38  ;;  %v4705_v18 = vld [vmem:[#allocation15 + $0x88] sm:$0xff]   ;;  %v4726_v38 = vld [vmem:[#allocation15 + $0x78] sm:$0xff]  }
 0x851   : > { %v4720_v3 = vld [vmem:[#allocation15 + $0x28] sm:$0xff]  }
 0x853   : > { %1750 = vmatpush1.bf16.msra.mxu0 %v4671_v40  ;;  %v4728_v40 = vld [vmem:[#allocation15 + $0x38] sm:$0xff]  }
 0x854   : > { %1751 = vmatprep.subr.bf16.mxu0 %v4679_v42  ;;  %v1520_v42 = vld [vmem:[%s5941_s10] sm:$0xf] }
 0x855   : > { %v1533_v45 = vrot.slane %v1520_v42, %v5643_v7  ;;  %v1537_v49 = vrot.slane %v1520_v42, %v1536_v43 }
 0x857   : > { %1752 = vmatpush1.bf16.msra.mxu0 %v4677_v44  ;;  %v1525_v44 = vrot.slane %v1520_v42, %v5623_v59 }
 0x858   : > { %1753 = vmatprep.subr.bf16.mxu0 %v4685_v46  ;;  %v1529_v46 = vrot.slane %v1520_v42, %v5626_v61 }
 0x85b   : > { %1754 = vmatpush1.bf16.msra.mxu0 %v4683_v50 }
 0x85c   : > { %1755 = vmatprep.subr.bf16.mxu0 %v4691_v52 }
 0x85f   : > { %1756 = vmatpush1.bf16.msra.mxu0 %v4689_v54 }
 0x860   : > { %1757 = vmatprep.subr.bf16.mxu0 %v4697_v56 }
 0x863   : > { %1758 = vmatpush1.bf16.msra.mxu0 %v4695_v60 }
 0x864   : > { %4198 = vmatprep.subr.bf16.mxu0 %v4699_v12 }
 0x8dd   : > { %v1467_v33 = vpop.xlane.xlu1 %1466 }
 0x8de   : > { %v1468_v34 = vmul.f32 0.0078125, %v1467_v33  ;;  %v4721_v33 = vld [vmem:[#allocation15 + $0xa8] sm:$0xff]  }
 0x8e0   : > { %v1469_v35 = vsub.f32 %v1465_v20, %v1468_v34  ;;  %v4708_v20 = vld [vmem:[#allocation15 + $0x10] sm:$0xff]  }
 0x8e1   : > { %v4722_v34 = vld [vmem:[#allocation15 + $0x70] sm:$0xff]  }
 0x8e2   : > { %v1470_v36 = vmul.f32 %v1469_v35, %v1469_v35 }
 0x8e4   : > { %1471 = vadd.xlane.f32.xlu0 %v1470_v36  ;;  %v4724_v36 = vld [vmem:[#allocation15 + $0x30] sm:$0xff]  }
 0x971   : > { %v1472_v62 = vpop.xlane.xlu0 %1471 }
 0x972   : > { %v1473_v63 = vmul.f32 0.0078125, %v1472_v62 }
 0x974   : > { %v1474_v0 = vadd.f32 1e-12, %v1473_v63 }
 0x976   : > { %4868 = vrsqrt.f32 %v1474_v0 }
 0x980   : > { %v4869_v4 = vpop.eup %4868 }
 0x981   : > { %v1476_v5 = vmul.f32 %v4869_v4, %v1469_v35  ;;  %v4723_v35 = vld [vmem:[#allocation15 + $0xf0] sm:$0xff]  }
 0x983   : > { %v1481_v8 = vmul.f32 %v1480_v2, %v1476_v5 }
 0x985   : > { %v5736_v9 = vadd.f32 %v1485_v6, %v1481_v8 }
 0x987   : > { %v1487_v10 = vpack.c.bf16 %v5736_v9, %v5736_v9 }
 0x989   : > { %1735 = vmatmul.mubr.bf16.vlgmr.msra.gmra.mrb[28].mxu1 %v1487_v10  ;;  %1776 = vmatmul.mubr.bf16.vlgmr.msra.gmra.mrb[16].mxu0 %v1487_v10 }
 0x98a   : > { %4177 = vmatpush3.bf16.msra.mxu1 %v4700_v13  ;;  %4199 = vmatpush3.bf16.msra.mxu0 %v4701_v14 }
 0x98b   : > { %4178 = vmatprep.subr.bf16.mxu1 %v4702_v15  ;;  %4200 = vmatprep.subr.bf16.mxu0 %v4703_v16 }
 0x98e   : > { %4179 = vmatpush3.bf16.msra.mxu1 %v4704_v17  ;;  %4201 = vmatpush3.bf16.msra.mxu0 %v4705_v18 }
 0x98f   : > { %4180 = vmatprep.subr.bf16.mxu1 %v4706_v19  ;;  %4202 = vmatprep.subr.bf16.mxu0 %v4707_v47 }
 0x992   : > { %4181 = vmatpush3.bf16.msra.mxu1 %v4708_v20  ;;  %4203 = vmatpush3.bf16.msra.mxu0 %v4709_v21 }
 0x993   : > { %4182 = vmatprep.subr.bf16.mxu1 %v4710_v22  ;;  %4204 = vmatprep.subr.bf16.mxu0 %v4711_v23 }
 0x996   : > { %4183 = vmatpush3.bf16.msra.mxu1 %v4712_v24  ;;  %4205 = vmatpush3.bf16.msra.mxu0 %v4713_v25 }
 0x997   : > { %4184 = vmatprep.subr.bf16.mxu1 %v4714_v27  ;;  %4206 = vmatprep.subr.bf16.mxu0 %v4715_v28 }
 0x99a   : > { %4185 = vmatpush3.bf16.msra.mxu1 %v4716_v29  ;;  %4207 = vmatpush3.bf16.msra.mxu0 %v4717_v30 }
 0x99b   : > { %4186 = vmatprep.subr.bf16.mxu1 %v4718_v31  ;;  %4208 = vmatprep.subr.bf16.mxu0 %v4719_v32 }
 0x99e   : > { %4187 = vmatpush3.bf16.msra.mxu1 %v4720_v3  ;;  %4209 = vmatpush3.bf16.msra.mxu0 %v4721_v33 }
 0x99f   : > { %4188 = vmatprep.subr.bf16.mxu1 %v4722_v34  ;;  %4210 = vmatprep.subr.bf16.mxu0 %v4723_v35 }
 0x9a2   : > { %4189 = vmatpush3.bf16.msra.mxu1 %v4724_v36  ;;  %4211 = vmatpush3.bf16.msra.mxu0 %v4725_v37 }
 0x9a3   : > { %4190 = vmatprep.subr.bf16.mxu1 %v4726_v38  ;;  %4212 = vmatprep.subr.bf16.mxu0 %v4727_v39 }
 0x9a6   : > { %4191 = vmatpush3.bf16.msra.mxu1 %v4728_v40  ;;  %4213 = vmatpush3.bf16.msra.mxu0 %v4729_v41 }
 0x9a7   : > { %4386 = vmatprep.subr.bf16.mxu0 %v5248_v26 }
 0xa5c   : > { %v1736_v50 = vpop.f32.mrb[28].mxu1  ;;  %v1777_v51 = vpop.f32.mrb[16].mxu0 }
 0xa5d   : > { %v1737_v52 = vadd.f32 %v1736_v50, %v1525_v44  ;;  %v1778_v53 = vadd.f32 %v1777_v51, %v1533_v45  ;;  %v1738_v54 = vpop.f32.mrb[29].mxu1  ;;  %v1779_v55 = vpop.f32.mrb[17].mxu0 }
 0xa5e   : > { %v1739_v56 = vadd.f32 %v1738_v54, %v1529_v46  ;;  %v1780_v57 = vadd.f32 %v1779_v55, %v1537_v49  ;;  %v1740_v60 = vpop.f32.mrb[30].mxu1  ;;  %v1781_v62 = vpop.f32.mrb[18].mxu0  ;;  %v3995_v46 = vld [vmem:[#allocation16] ss:$0 sm:$0xff] }
 0xa5f   : > { %v1788_v63 = vmul.f32 0.044715, %v1737_v52  ;;  %v1790_v0 = vmul.f32 0.044715, %v1778_v53  ;;  %v1741_v1 = vpop.f32.mrb[31].mxu1  ;;  %v1782_v2 = vpop.f32.mrb[19].mxu0 }
 0xa60   : > { %v1789_v4 = vmul.f32 0.044715, %v1739_v56  ;;  %v1791_v5 = vmul.f32 0.044715, %v1780_v57  ;;  %v1784_v25 = vmul.f32 0.5, %v1737_v52  ;;  %v1785_v29 = vmul.f32 0.5, %v1739_v56 }
 0xa61   : > { %v1792_v6 = vmul.f32 %v1788_v63, %v1737_v52  ;;  %v1794_v8 = vmul.f32 %v1790_v0, %v1778_v53  ;;  %v1787_v32 = vmul.f32 0.5, %v1780_v57  ;;  %v1786_v35 = vmul.f32 0.5, %v1778_v53  ;;  %v4730_v63 = vld [vmem:[#allocation9 + $0xc0] ss:$12 sps:$4 sm:$0xff]   ;;  %v4732_v0 = vld [vmem:[#allocation9 + $0xc4] ss:$12 sps:$4 sm:$0xff]  }
 0xa62   : > { %v1793_v10 = vmul.f32 %v1789_v4, %v1739_v56  ;;  %v1795_v11 = vmul.f32 %v1791_v5, %v1780_v57  ;;  %v4733_v1 = vld [vmem:[#allocation9 + $0xc8] ss:$12 sps:$4 sm:$0xff]   ;;  %2370 = vmatprep.subr.bf16.mxu1 %v4732_v0  ;;  %v4737_v4 = vld [vmem:[#allocation9 + $0xe0] ss:$12 sps:$4 sm:$0xff]   ;;  %v4734_v5 = vld [vmem:[#allocation9 + $0xd8] ss:$12 sps:$4 sm:$0xff]  }
 0xa63   : > { %v1796_v12 = vmul.f32 %v1792_v6, %v1737_v52  ;;  %v1798_v13 = vmul.f32 %v1794_v8, %v1778_v53  ;;  %v4736_v2 = vld [vmem:[#allocation9 + $0xdc] ss:$12 sps:$4 sm:$0xff]   ;;  %v4740_v6 = vld [vmem:[#allocation9 + $0xf4] ss:$12 sps:$4 sm:$0xff]  }
 0xa64   : > { %v1797_v14 = vmul.f32 %v1793_v10, %v1739_v56  ;;  %v1799_v15 = vmul.f32 %v1795_v11, %v1780_v57  ;;  %v4738_v8 = vld [vmem:[#allocation9 + $0xf0] ss:$12 sps:$4 sm:$0xff]  }
 0xa65   : > { %v1800_v16 = vadd.f32 %v1796_v12, %v1737_v52  ;;  %v1802_v17 = vadd.f32 %v1798_v13, %v1778_v53  ;;  %v4741_v13 = vld [vmem:[#allocation9 + $0xf8] ss:$12 sps:$4 sm:$0xff]  }
 0xa66   : > { %v1801_v18 = vadd.f32 %v1797_v14, %v1739_v56  ;;  %v1803_v19 = vadd.f32 %v1799_v15, %v1780_v57  ;;  %v4744_v14 = vld [vmem:[#allocation9 + $0x10c] ss:$12 sps:$4 sm:$0xff]   ;;  %v4742_v15 = vld [vmem:[#allocation9 + $0x108] ss:$12 sps:$4 sm:$0xff]  }
 0xa67   : > { %v1804_v47 = vmul.f32 0.7978846, %v1800_v16  ;;  %v1806_v22 = vmul.f32 0.7978846, %v1802_v17  ;;  %v4745_v16 = vld [vmem:[#allocation9 + $0x110] ss:$12 sps:$4 sm:$0xff]  }
 0xa68   : > { %v1805_v20 = vmul.f32 0.7978846, %v1801_v18  ;;  %v1807_v21 = vmul.f32 0.7978846, %v1803_v19  ;;  %v4748_v17 = vld [vmem:[#allocation9 + $0x124] ss:$12 sps:$4 sm:$0xff]  }
 0xa69   : > { %4870 = vtanh.f32 %v1804_v47  ;;  %v4746_v18 = vld [vmem:[#allocation9 + $0x120] ss:$12 sps:$4 sm:$0xff]   ;;  %v4749_v19 = vld [vmem:[#allocation9 + $0x128] ss:$12 sps:$4 sm:$0xff]  }
 0xa6a   : > { %4872 = vtanh.f32 %v1805_v20  ;;  %v4752_v47 = vld [vmem:[#allocation9 + $0x13c] ss:$12 sps:$4 sm:$0xff]   ;;  %v4750_v20 = vld [vmem:[#allocation9 + $0x138] ss:$12 sps:$4 sm:$0xff]  }
 0xa6b   : > { %4874 = vtanh.f32 %v1807_v21  ;;  %v4753_v21 = vld [vmem:[#allocation9 + $0x140] ss:$12 sps:$4 sm:$0xff]  }
 0xa6c   : > { %4876 = vtanh.f32 %v1806_v22  ;;  %v4754_v22 = vld [vmem:[#allocation9 + $0x150] ss:$12 sps:$4 sm:$0xff]  }
 0xa73   : > { %v4871_v23 = vpop.eup %4870 }
 0xa74   : > { %v4873_v24 = vpop.eup %4872  ;;  %v1812_v27 = vadd.f32 1.0, %v4871_v23  ;;  %v4756_v23 = vld [vmem:[#allocation9 + $0x154] ss:$12 sps:$4 sm:$0xff]  }
 0xa75   : > { %v4875_v28 = vpop.eup %4874  ;;  %v1813_v30 = vadd.f32 1.0, %v4873_v24  ;;  %v4757_v24 = vld [vmem:[#allocation9 + $0x158] ss:$12 sps:$4 sm:$0xff]  }
 0xa76   : > { %v4877_v31 = vpop.eup %4876  ;;  %v1815_v3 = vadd.f32 1.0, %v4875_v28  ;;  %v1816_v33 = vmul.f32 %v1812_v27, %v1784_v25  ;;  %v4760_v25 = vld [vmem:[#allocation9 + $0x16c] ss:$12 sps:$4 sm:$0xff]   ;;  %v4758_v27 = vld [vmem:[#allocation9 + $0x168] ss:$12 sps:$4 sm:$0xff]  }
 0xa77   : > { %v1817_v34 = vmul.f32 %v1813_v30, %v1785_v29  ;;  %v1814_v36 = vadd.f32 1.0, %v4877_v31  ;;  %v4761_v28 = vld [vmem:[#allocation9 + $0x170] ss:$12 sps:$4 sm:$0xff]  }
 0xa78   : > { %v1819_v37 = vmul.f32 %v1815_v3, %v1787_v32  ;;  %v1820_v41 = vpack.c.bf16 %v1816_v33, %v1816_v33  ;;  %v2167_v32 = vld [vmem:[%s5944_s13] sm:$0x3] }
 0xa79   : > { %v1821_v38 = vpack.c.bf16 %v1817_v34, %v1817_v34  ;;  %v1818_v39 = vmul.f32 %v1814_v36, %v1786_v35  ;;  %v2183_v3 = vrot.slane %v2167_v32, %v5623_v59  ;;  %v2188_v35 = vrot.slane %v2167_v32, %v5626_v61 }
 0xa7a   : > { %v1823_v40 = vpack.c.bf16 %v1819_v37, %v1819_v37 }
 0xa7b   : > { %2119 = vmatprep.mubr.bf16.mxu1 %v1821_v38  ;;  %v1822_v42 = vpack.c.bf16 %v1818_v39, %v1818_v39  ;;  %v4028_v39 = vld [vmem:[%s5936_s5 + $0x3] sm:$0x7] }
 0xa7c   : > { %2159 = vmatprep.mubr.bf16.mxu0 %v1823_v40  ;;  %2120 = vmatmul.mubr.bf16.vlgmr.msra.gmra.mrb[32].mxu1 %v1820_v41  ;;  %v2234_v40 = vrot.slane %v4028_v39, %v5626_v61 }
 0xa7d   : > { %2160 = vmatmul.mubr.bf16.vlgmr.msra.gmra.mrb[20].mxu0 %v1822_v42  ;;  %2402 = vmatprep.mubr.bf16.mxu1 %v5249_v48 }
 0xa7e   : > { %4402 = vmatprep.mubr.msk.bf16.mxu0 %vm5250_vm7, %v5248_v26  ;;  %4387 = vmatpush3.bf16.msra.mxu0 %v4733_v1 }
 0xa7f   : > { %2371 = vmatpush1.bf16.msra.mxu1 %v4730_v63  ;;  %4388 = vmatprep.subr.bf16.mxu0 %v5248_v26 }
 0xa80   : > { %2372 = vmatprep.subr.bf16.mxu1 %v4736_v2 }
 0xa82   : > { %4389 = vmatpush3.bf16.msra.mxu0 %v4737_v4 }
 0xa83   : > { %2373 = vmatpush1.bf16.msra.mxu1 %v4734_v5  ;;  %4390 = vmatprep.subr.bf16.mxu0 %v5248_v26 }
 0xa84   : > { %2374 = vmatprep.subr.bf16.mxu1 %v4740_v6 }
 0xa86   : > { %4391 = vmatpush3.bf16.msra.mxu0 %v4741_v13 }
 0xa87   : > { %2375 = vmatpush1.bf16.msra.mxu1 %v4738_v8  ;;  %4392 = vmatprep.subr.bf16.mxu0 %v5248_v26 }
 0xa88   : > { %2376 = vmatprep.subr.bf16.mxu1 %v4744_v14 }
 0xa8a   : > { %4393 = vmatpush3.bf16.msra.mxu0 %v4745_v16 }
 0xa8b   : > { %2377 = vmatpush1.bf16.msra.mxu1 %v4742_v15  ;;  %4394 = vmatprep.subr.bf16.mxu0 %v5248_v26 }
 0xa8c   : > { %2378 = vmatprep.subr.bf16.mxu1 %v4748_v17 }
 0xa8e   : > { %4395 = vmatpush3.bf16.msra.mxu0 %v4749_v19 }
 0xa8f   : > { %2379 = vmatpush1.bf16.msra.mxu1 %v4746_v18  ;;  %4396 = vmatprep.subr.bf16.mxu0 %v5248_v26 }
 0xa90   : > { %2380 = vmatprep.subr.bf16.mxu1 %v4752_v47 }
 0xa92   : > { %4397 = vmatpush3.bf16.msra.mxu0 %v4753_v21 }
 0xa93   : > { %2381 = vmatpush1.bf16.msra.mxu1 %v4750_v20  ;;  %4398 = vmatprep.subr.bf16.mxu0 %v5248_v26 }
 0xa94   : > { %2382 = vmatprep.subr.bf16.mxu1 %v4756_v23 }
 0xa96   : > { %4399 = vmatpush3.bf16.msra.mxu0 %v4757_v24 }
 0xa97   : > { %2383 = vmatpush1.bf16.msra.mxu1 %v4754_v22  ;;  %4400 = vmatprep.subr.bf16.mxu0 %v5248_v26 }
 0xa98   : > { %2384 = vmatprep.subr.bf16.mxu1 %v4760_v25 }
 0xa9a   : > { %4401 = vmatpush3.bf16.msra.mxu0 %v4761_v28 }
 0xa9b   : > { %2385 = vmatpush1.bf16.msra.mxu1 %v4758_v27  ;;  %4430 = vmatprep.subr.bf16.mxu0 %v5248_v26 }
 0xa9c   : > { %4406 = vmatprep.subr.bf16.mxu1 %v5248_v26 }
 0xb4f   : > { %v4192_v44 = vpop.f32.mrb[32].mxu1 }
 0xb50   : > { %v4214_v45 = vpop.f32.mrb[20].mxu0  ;;  %v4193_v49 = vpop.f32.mrb[33].mxu1 }
 0xb51   : > { %v4194_v50 = vadd.f32 %v4193_v49, %v4192_v44  ;;  %v4215_v51 = vpop.f32.mrb[21].mxu0  ;;  %v4195_v52 = vpop.f32.mrb[34].mxu1 }
 0xb52   : > { %v4216_v53 = vadd.f32 %v4215_v51, %v4214_v45  ;;  %v4217_v54 = vpop.f32.mrb[22].mxu0  ;;  %v4196_v55 = vpop.f32.mrb[35].mxu1 }
 0xb53   : > { %v2122_v56 = vadd.f32 %v4194_v50, %v3995_v46  ;;  %v4218_v57 = vpop.f32.mrb[23].mxu0  ;;  %v2238_v46 = vrot.slane %v4028_v39, %v5643_v7  ;;  %v2230_v54 = vrot.slane %v4028_v39, %v5623_v59 }
 0xb55   : > { %v2162_v60 = vadd.f32 %v4216_v53, %v2122_v56 }
 0xb57   : > { %v2168_v62 = vadd.f32 %v2162_v60, %v5736_v9 }
 0xb59   : > { %2169 = vadd.xlane.f32.xlu0 %v2168_v62 }
 0xbe6   : > { %v2170_v9 = vpop.xlane.xlu0 %2169 }
 0xbe7   : > { %v2171_v10 = vmul.f32 0.0078125, %v2170_v9 }
 0xbe9   : > { %v2172_v11 = vsub.f32 %v2168_v62, %v2171_v10 }
 0xbeb   : > { %v2173_v12 = vmul.f32 %v2172_v11, %v2172_v11 }
 0xbed   : > { %2174 = vadd.xlane.f32.xlu1 %v2173_v12 }
 0xc7a   : > { %v2175_v29 = vpop.xlane.xlu1 %2174 }
 0xc7b   : > { %v2176_v30 = vmul.f32 0.0078125, %v2175_v29 }
 0xc7d   : > { %v2177_v31 = vadd.f32 1e-12, %v2176_v30 }
 0xc7f   : > { %4878 = vrsqrt.f32 %v2177_v31 }
 0xc89   : > { %v4879_v33 = vpop.eup %4878 }
 0xc8a   : > { %v2179_v34 = vmul.f32 %v4879_v33, %v2172_v11 }
 0xc8c   : > { %v2184_v36 = vmul.f32 %v2183_v3, %v2179_v34 }
 0xc8e   : > { %v5768_v37 = vadd.f32 %v2188_v35, %v2184_v36 }
 0xc90   : > { %v2190_v38 = vpack.c.bf16 %v5768_v37, %v5768_v37 }
 0xc92   : > { %2403 = vmatmul.mubr.bf16.vlgmr.msra.gmra.mrb[36].mxu1 %v2190_v38  ;;  %4403 = vmatmul.mubr.bf16.vlgmr.msra.gmra.mrb[24].mxu0 %v2190_v38 }
 0xc93   : > { %4408 = vmatprep.mubr.msk.bf16.mxu1 %vm5250_vm7, %v5248_v26  ;;  %4432 = vmatprep.mubr.msk.bf16.mxu0 %vm5250_vm7, %v5248_v26 }
 0xd65   : > { %v2404_v41 = vpop.f32.mrb[36].mxu1  ;;  %v2445_v42 = vpop.f32.mrb[24].mxu0 }
 0xd66   : > { %v2406_v44 = vpop.f32.mrb[37].mxu1  ;;  %v4404_v45 = vpop.f32.mrb[25].mxu0  ;;  %v2446_v56 = vadd.f32 %v2445_v42, %v2238_v46  ;;  %v2405_v60 = vadd.f32 %v2404_v41, %v2230_v54 }
 0xd67   : > { %v2407_v49 = vadd.f32 %v2406_v44, %v2234_v40  ;;  %v2408_v50 = vpop.f32.mrb[38].mxu1  ;;  %v2448_v51 = vpop.f32.mrb[26].mxu0 }
 0xd68   : > { %v2409_v52 = vpop.f32.mrb[39].mxu1  ;;  %v4405_v53 = vpop.f32.mrb[27].mxu0  ;;  %v5785_v62 = vpack.c.bf16 %v2446_v56, %v2446_v56  ;;  %v2451_v63 = vpack.c.bf16 %v2405_v60, %v2405_v60 }
 0xd69   : > { %v2452_v55 = vpack.c.bf16 %v2407_v49, %v2407_v49 }
 0xd6a   : > { %v2514_v0 = vsel %vm601_vm3, %v5785_v62, 0 }
 0xd6b   : > { %2562 = vrot.lane.b32.xlu1 %v2452_v55, %s5251_s28  ;;  %v2458_v57 = vsel %vm896_vm8, %v2452_v55, 0 }
 0xd6c   : > { %4407 = vmatpush3.bf16.xpose.msra.mxu1 %v2458_v57 }
 0xd6d   : > { %4412 = vmatprep.subr.bf16.mxu1 %v5248_v26 }
 0xd6f   : > { %2673 = vrot.lane.b32.xlu1 %v2452_v55, %s5253_s26 }
 0xd73   : > { %2671 = vrot.lane.b32.xlu1 %v2451_v63, %s5253_s26  ;;  %4409 = vmatmul.mubr.msk.bf16.vlgmr.msra.gmra.mrb[40].mxu1 %vm896_vm8, %v2451_v63 }
 0xd74   : > { %4413 = vmatpush3.bf16.msra.mxu1 %v2514_v0  ;;  %4414 = vmatprep.mubr.msk.bf16.mxu1 %vm5250_vm7, %v5248_v26 }
 0xd75   : > { %4418 = vmatprep.subr.bf16.mxu1 %v5248_v26 }
 0xd77   : > { %2783 = vrot.lane.b32.xlu1 %v2452_v55, %s5252_s21 }
 0xddd   : > { %v2563_v1 = vpop.permute.xlu1 %2562 }
 0xdde   : > { %v2568_v25 = vsel %vm896_vm8, %v2563_v1, 0 }
 0xde1   : > { %v2674_v2 = vpop.permute.xlu1 %2673 }
 0xde2   : > { %v2679_v4 = vsel %vm896_vm8, %v2674_v2, 0 }
 0xde3   : > { %4431 = vmatpush3.bf16.xpose.msra.mxu0 %v2679_v4 }
 0xde4   : > { %4442 = vmatprep.subr.bf16.mxu0 %v5248_v26 }
 0xde5   : > { %v2672_v5 = vpop.permute.xlu1 %2671 }
 0xde9   : > { %v2784_v6 = vpop.permute.xlu1 %2783 }
 0xdea   : > { %v2789_v8 = vsel %vm896_vm8, %v2784_v6, 0  ;;  %4433 = vmatmul.mubr.msk.bf16.vlgmr.msra.gmra.mrb[28].mxu0 %vm896_vm8, %v2672_v5 }
 0xdeb   : > { %4443 = vmatpush3.bf16.xpose.msra.mxu0 %v2789_v8  ;;  %4444 = vmatprep.mubr.msk.bf16.mxu0 %vm5250_vm7, %v5248_v26 }
 0xdec   : > { %4454 = vmatprep.subr.bf16.mxu0 %v5248_v26 }
 0xe46   : > { %v2494_v9 = vpop.f32.mrb[40].mxu1 }
 0xe47   : > { %v4410_v10 = vpop.f32.mrb[41].mxu1  ;;  %v2500_v11 = vsel %vm943_vm9, %v2494_v9, -inf }
 0xe48   : > { %2501 = vmax.xlane.f32.xlu0 %v2500_v11  ;;  %v2497_v12 = vpop.f32.mrb[42].mxu1  ;;  %v4762_v10 = vld [vmem:[#allocation10 + $0x40] sm:$0xff]   ;;  %v4763_v11 = vld [vmem:[#allocation10 + $0x48] sm:$0xff]  }
 0xe49   : > { %v4411_v13 = vpop.f32.mrb[43].mxu1  ;;  %v4764_v12 = vld [vmem:[#allocation10 + $0x50] sm:$0xff]  }
 0xe5e   : > { %2559 = vrot.lane.b32.xlu0 %v2451_v63, %s5251_s28 }
 0xe62   : > { %2781 = vrot.lane.b32.xlu0 %v2451_v63, %s5252_s21 }
 0xebd   : > { %v2715_v14 = vpop.f32.mrb[28].mxu0 }
 0xebe   : > { %v4434_v15 = vpop.f32.mrb[29].mxu0  ;;  %v2721_v16 = vsel %vm943_vm9, %v2715_v14, -inf }
 0xebf   : > { %v2718_v17 = vpop.f32.mrb[30].mxu0  ;;  %2722 = vmax.xlane.f32.xlu0 %v2721_v16  ;;  %v4766_v15 = vld [vmem:[#allocation10 + $0x60] sm:$0xff]  }
 0xec0   : > { %v4435_v18 = vpop.f32.mrb[31].mxu0  ;;  %v4767_v17 = vld [vmem:[#allocation10 + $0x68] sm:$0xff]  }
 0xed5   : > { %v2502_v19 = vpop.xlane.xlu0 %2501 }
 0xed6   : > { %v2503_v47 = vsub.f32 %v2494_v9, %v2502_v19 }
 0xed8   : > { %v2504_v20 = vmul.f32 1.442695, %v2503_v47  ;;  %v4768_v47 = vld [vmem:[#allocation10 + $0x70] sm:$0xff]  }
 0xed9   : > { %v2560_v21 = vpop.permute.xlu0 %2559 }
 0xeda   : > { %4880 = vpow2.f32 %v2504_v20 }
 0xedd   : > { %v2782_v22 = vpop.permute.xlu0 %2781 }
 0xede   : > { %4445 = vmatmul.mubr.msk.bf16.vlgmr.msra.gmra.mrb[32].mxu0 %vm896_vm8, %v2782_v22 }
 0xedf   : > { %4470 = vmatprep.mubr.msk.bf16.mxu0 %vm5250_vm7, %v5248_v26  ;;  %4455 = vmatpush3.bf16.msra.mxu0 %v4762_v10 }
 0xee0   : > { %4456 = vmatprep.subr.bf16.mxu0 %v5248_v26 }
 0xee3   : > { %4457 = vmatpush3.bf16.msra.mxu0 %v4763_v11 }
 0xee4   : > { %v4881_v23 = vpop.eup %4880  ;;  %4458 = vmatprep.subr.bf16.mxu0 %v5248_v26 }
 0xee5   : > { %v2509_v24 = vpack.c.bf16 %v4881_v23, %v4881_v23 }
 0xee7   : > { %4415 = vmatmul.mubr.msk.bf16.vlgmr.msra.gmra.mrb[44].mxu1 %vm943_vm9, %v2509_v24  ;;  %4459 = vmatpush3.bf16.msra.mxu0 %v4764_v12 }
 0xee8   : > { %4419 = vmatpush3.bf16.xpose.msra.mxu1 %v2568_v25  ;;  %4420 = vmatprep.mubr.msk.bf16.mxu1 %vm5250_vm7, %v5248_v26  ;;  %v4769_v25 = vld [vmem:[#allocation10 + $0x78] sm:$0xff]  }
 0xee9   : > { %4424 = vmatprep.subr.bf16.mxu1 %v5248_v26  ;;  %4460 = vmatprep.subr.bf16.mxu0 %v5248_v26 }
 0xeef   : > { %4421 = vmatmul.mubr.msk.bf16.vlgmr.msra.gmra.mrb[48].mxu1 %vm896_vm8, %v2560_v21 }
 0xef0   : > { %4426 = vmatprep.mubr.msk.bf16.mxu1 %vm5250_vm7, %v5248_v26 }
 0xf4c   : > { %v2723_v41 = vpop.xlane.xlu0 %2722 }
 0xf4d   : > { %v2724_v42 = vsub.f32 %v2715_v14, %v2723_v41  ;;  %v4765_v14 = vld [vmem:[#allocation10 + $0x58] sm:$0xff]  }
 0xf4e   : > { %4461 = vmatpush3.bf16.msra.mxu0 %v4765_v14  ;;  %v4793_v14 = vld [vmem:[#allocation13 + $0x16c] ss:$16 sps:$4 sm:$0xff]  }
 0xf4f   : > { %v2725_v44 = vmul.f32 1.442695, %v2724_v42  ;;  %4462 = vmatprep.subr.bf16.mxu0 %v5248_v26 }
 0xf51   : > { %4882 = vpow2.f32 %v2725_v44 }
 0xf52   : > { %4463 = vmatpush3.bf16.msra.mxu0 %v4766_v15  ;;  %v4788_v15 = vld [vmem:[#allocation13 + $0x160] ss:$16 sps:$4 sm:$0xff]  }
 0xf53   : > { %4464 = vmatprep.subr.bf16.mxu0 %v5248_v26 }
 0xf56   : > { %4465 = vmatpush3.bf16.msra.mxu0 %v4767_v17  ;;  %v4796_v17 = vld [vmem:[#allocation13 + $0x184] ss:$16 sps:$4 sm:$0xff]  }
 0xf57   : > { %4466 = vmatprep.subr.bf16.mxu0 %v5248_v26 }
 0xf5a   : > { %4467 = vmatpush3.bf16.msra.mxu0 %v4768_v47  ;;  %v4797_v47 = vld [vmem:[#allocation13 + $0x188] ss:$16 sps:$4 sm:$0xff]  }
 0xf5b   : > { %v4883_v45 = vpop.eup %4882  ;;  %4468 = vmatprep.subr.bf16.mxu0 %v5248_v26 }
 0xf5c   : > { %v2727_v46 = vsel %vm943_vm9, %v4883_v45, 0.0  ;;  %v2730_v6 = vpack.c.bf16 %v4883_v45, %v4883_v45 }
 0xf5e   : > { %4469 = vmatpush3.bf16.msra.mxu0 %v4769_v25  ;;  %v4808_v25 = vld [vmem:[#allocation13 + $0x1c4] ss:$16 sps:$4 sm:$0xff]  }
 0xfb1   : > { %v2825_v27 = vpop.f32.mrb[32].mxu0 }
 0xfb2   : > { %v4446_v28 = vpop.f32.mrb[33].mxu0  ;;  %v2831_v29 = vsel %vm943_vm9, %v2825_v27, -inf }
 0xfb3   : > { %2832 = vmax.xlane.f32.xlu0 %v2831_v29  ;;  %v2828_v30 = vpop.f32.mrb[34].mxu0 }
 0xfb4   : > { %v4447_v31 = vpop.f32.mrb[35].mxu0 }
 0xfba   : > { %v5819_v32 = vpop.f32.mrb[44].mxu1 }
 0xfbb   : > { %v4416_v3 = vpop.f32.mrb[45].mxu1 }
 0xfbc   : > { %v2553_v33 = vpop.f32.mrb[46].mxu1 }
 0xfbd   : > { %v4417_v34 = vpop.f32.mrb[47].mxu1 }
 0xfc2   : > { %v2604_v35 = vpop.f32.mrb[48].mxu1 }
 0xfc3   : > { %v4422_v36 = vpop.f32.mrb[49].mxu1  ;;  %v2610_v38 = vsel %vm943_vm9, %v2604_v35, -inf }
 0xfc4   : > { %2611 = vmax.xlane.f32.xlu1 %v2610_v38  ;;  %v2607_v39 = vpop.f32.mrb[50].mxu1 }
 0xfc5   : > { %v4423_v40 = vpop.f32.mrb[51].mxu1 }
 0xfc9   : > { %2621 = vrot.lane.b32.xlu0 %v5785_v62, %s5251_s28 }
 0xfd5   : > { %2731 = vrot.lane.b32.xlu1 %v5785_v62, %s5253_s26 }
 0xfd9   : > { %2841 = vrot.lane.b32.xlu1 %v5785_v62, %s5252_s21  ;;  %v2506_v62 = vsel %vm943_vm9, %v4881_v23, 0.0 }
 0xfe8   : > { %2728 = vadd.xlane.f32.xlu0 %v2727_v46 }
0x1040   : > { %v2833_v49 = vpop.xlane.xlu0 %2832 }
0x1041   : > { %v2834_v50 = vsub.f32 %v2825_v27, %v2833_v49 }
0x1043   : > { %v2835_v51 = vmul.f32 1.442695, %v2834_v50 }
0x1044   : > { %v2622_v52 = vpop.permute.xlu0 %2621 }
0x1045   : > { %4884 = vpow2.f32 %v2835_v51  ;;  %v2627_v53 = vsel %vm601_vm3, %v2622_v52, 0  ;;  %v4061_v52 = vld [vmem:[#allocation12 + $0x1] ss:$0 sm:$0xff] }
0x1046   : > { %4425 = vmatpush3.bf16.msra.mxu1 %v2627_v53 }
0x1047   : > { %4436 = vmatprep.subr.bf16.mxu1 %v5248_v26 }
0x104f   : > { %v4885_v54 = vpop.eup %4884 }
0x1050   : > { %v2837_v55 = vsel %vm943_vm9, %v4885_v54, 0.0  ;;  %v2840_v9 = vpack.c.bf16 %v4885_v54, %v4885_v54 }
0x1051   : > { %2838 = vadd.xlane.f32.xlu0 %v2837_v55  ;;  %v2612_v56 = vpop.xlane.xlu1 %2611 }
0x1052   : > { %v2613_v57 = vsub.f32 %v2604_v35, %v2612_v56 }
0x1054   : > { %v2614_v60 = vmul.f32 1.442695, %v2613_v57 }
0x1055   : > { %2507 = vadd.xlane.f32.xlu0 %v2506_v62  ;;  %v2732_v0 = vpop.permute.xlu1 %2731  ;;  %v4772_v62 = vld [vmem:[#allocation13 + $0x104] ss:$16 sps:$4 sm:$0xff]  }
0x1056   : > { %4886 = vpow2.f32 %v2614_v60  ;;  %v2737_v4 = vsel %vm601_vm3, %v2732_v0, 0  ;;  %v4770_v60 = vld [vmem:[#allocation13 + $0x100] ss:$16 sps:$4 sm:$0xff]   ;;  %v4775_v0 = vld [vmem:[#allocation13 + $0x10c] ss:$16 sps:$4 sm:$0xff]  }
0x1057   : > { %3302 = vmatprep.subr.bf16.mxu0 %v4775_v0  ;;  %v4833_v0 = vld [vmem:[#allocation15 + $0x198] sm:$0xff]  }
0x1059   : > { %v2842_v5 = vpop.permute.xlu1 %2841 }
0x105a   : > { %v2847_v8 = vsel %vm601_vm3, %v2842_v5, 0  ;;  %v4784_v5 = vld [vmem:[#allocation13 + $0x144] ss:$16 sps:$4 sm:$0xff]  }
0x1060   : > { %v4887_v63 = vpop.eup %4886 }
0x1061   : > { %v2616_v1 = vsel %vm943_vm9, %v4887_v63, 0.0  ;;  %v2619_v2 = vpack.c.bf16 %v4887_v63, %v4887_v63  ;;  %v4773_v63 = vld [vmem:[#allocation13 + $0x108] ss:$16 sps:$4 sm:$0xff]  }
0x1062   : > { %2617 = vadd.xlane.f32.xlu1 %v2616_v1  ;;  %v4778_v1 = vld [vmem:[#allocation13 + $0x124] ss:$16 sps:$4 sm:$0xff]  }
0x1063   : > { %4427 = vmatmul.mubr.msk.bf16.vlgmr.msra.gmra.mrb[52].mxu1 %vm943_vm9, %v2619_v2  ;;  %v4781_v2 = vld [vmem:[#allocation13 + $0x12c] ss:$16 sps:$4 sm:$0xff]  }
0x1064   : > { %4437 = vmatpush3.bf16.msra.mxu1 %v2737_v4  ;;  %4438 = vmatprep.mubr.msk.bf16.mxu1 %vm5250_vm7, %v5248_v26  ;;  %v4776_v4 = vld [vmem:[#allocation13 + $0x120] ss:$16 sps:$4 sm:$0xff]  }
0x1065   : > { %4448 = vmatprep.subr.bf16.mxu1 %v5248_v26 }
0x106b   : > { %4439 = vmatmul.mubr.msk.bf16.vlgmr.msra.gmra.mrb[56].mxu1 %vm943_vm9, %v2730_v6  ;;  %v4787_v6 = vld [vmem:[#allocation13 + $0x14c] ss:$16 sps:$4 sm:$0xff]  }
0x106c   : > { %4449 = vmatpush3.bf16.msra.mxu1 %v2847_v8  ;;  %4450 = vmatprep.mubr.msk.bf16.mxu1 %vm5250_vm7, %v5248_v26  ;;  %v4782_v8 = vld [vmem:[#allocation13 + $0x140] ss:$16 sps:$4 sm:$0xff]  }
0x106d   : > { %3261 = vmatprep.subr.bf16.mxu1 %v4772_v62  ;;  %v4831_v62 = vld [vmem:[#allocation15 + $0x1d8] sm:$0xff]  }
0x1073   : > { %4451 = vmatmul.mubr.msk.bf16.vlgmr.msra.gmra.mrb[60].mxu1 %vm943_vm9, %v2840_v9 }
0x1074   : > { %3293 = vmatprep.mubr.bf16.mxu1 %v5249_v48  ;;  %3262 = vmatpush1.bf16.msra.mxu1 %v4770_v60  ;;  %v4830_v60 = vld [vmem:[#allocation15 + $0x158] sm:$0xff]  }
0x1075   : > { %v2729_v16 = vpop.xlane.xlu0 %2728  ;;  %3263 = vmatprep.subr.bf16.mxu1 %v4778_v1  ;;  %v4834_v1 = vld [vmem:[#allocation15 + $0x160] sm:$0xff]  }
0x1078   : > { %3264 = vmatpush1.bf16.msra.mxu1 %v4776_v4  ;;  %v4836_v4 = vld [vmem:[#allocation15 + $0x120] sm:$0xff]  }
0x1079   : > { %3265 = vmatprep.subr.bf16.mxu1 %v4784_v5  ;;  %v4838_v5 = vld [vmem:[#allocation15 + $0x168] sm:$0xff]  }
0x107c   : > { %3266 = vmatpush1.bf16.msra.mxu1 %v4782_v8  ;;  %v4840_v8 = vld [vmem:[#allocation15 + $0x128] sm:$0xff]  }
0x10de   : > { %v2839_v23 = vpop.xlane.xlu0 %2838 }
0x10e2   : > { %v2508_v26 = vpop.xlane.xlu0 %2507 }
0x10ef   : > { %v2618_v13 = vpop.xlane.xlu1 %2617 }
0x10f0   : > { %4888 = vrcp.f32 %v2618_v13  ;;  %v4790_v13 = vld [vmem:[#allocation13 + $0x164] ss:$16 sps:$4 sm:$0xff]  }
0x10f1   : > { %4890 = vrcp.f32 %v2729_v16  ;;  %v4791_v16 = vld [vmem:[#allocation13 + $0x168] ss:$16 sps:$4 sm:$0xff]   ;;  %3267 = vmatprep.subr.bf16.mxu1 %v4790_v13 }
0x10f2   : > { %4892 = vrcp.f32 %v2839_v23  ;;  %3268 = vmatpush1.bf16.msra.mxu1 %v4788_v15  ;;  %v4803_v23 = vld [vmem:[#allocation13 + $0x1a8] ss:$16 sps:$4 sm:$0xff]  }
0x10f3   : > { %4894 = vrcp.f32 %v2508_v26  ;;  %3269 = vmatprep.subr.bf16.mxu1 %v4796_v17  ;;  %v4846_v13 = vld [vmem:[#allocation15 + $0x178] sm:$0xff]   ;;  %v4071_v17 = vld [vmem:[%s5941_s10 + $0x4] sm:$0xf] }
0x10f4   : > { %v4848_v15 = vld [vmem:[#allocation15 + $0x138] sm:$0xff]  }
0x10fa   : > { %v4889_v18 = vpop.eup %4888 }
0x10fb   : > { %v4891_v27 = vpop.eup %4890 }
0x10fc   : > { %v4893_v33 = vpop.eup %4892 }
0x10fd   : > { %v4895_v40 = vpop.eup %4894 }
0x10fe   : > { %v2557_v42 = vmul.f32 %v4895_v40, %v5819_v32 }
0x1136   : > { %v2663_v19 = vpop.f32.mrb[52].mxu1 }
0x1137   : > { %v2670_v20 = vmul.f32 %v4889_v18, %v2663_v19  ;;  %v4428_v21 = vpop.f32.mrb[53].mxu1  ;;  %v4799_v18 = vld [vmem:[#allocation13 + $0x18c] ss:$16 sps:$4 sm:$0xff]   ;;  %v4794_v19 = vld [vmem:[#allocation13 + $0x180] ss:$16 sps:$4 sm:$0xff]  }
0x1138   : > { %v2666_v22 = vpop.f32.mrb[54].mxu1  ;;  %3270 = vmatpush1.bf16.msra.mxu1 %v4794_v19  ;;  %v4805_v21 = vld [vmem:[#allocation13 + $0x1ac] ss:$16 sps:$4 sm:$0xff]   ;;  %v3092_v19 = vrot.slane %v4071_v17, %v5643_v7 }
0x1139   : > { %2892 = vrot.lane.b32.xlu1 %v2670_v20, %s5252_s21  ;;  %v4429_v24 = vpop.f32.mrb[55].mxu1  ;;  %v4802_v20 = vld [vmem:[#allocation13 + $0x1a4] ss:$16 sps:$4 sm:$0xff]   ;;  %v4800_v22 = vld [vmem:[#allocation13 + $0x1a0] ss:$16 sps:$4 sm:$0xff]   ;;  %s5993_s21 = sld [smem:[#allocation31_spill]] }
0x113a   : > { %3271 = vmatprep.subr.bf16.mxu1 %v4802_v20  ;;  %v4806_v24 = vld [vmem:[#allocation13 + $0x1c0] ss:$16 sps:$4 sm:$0xff]   ;;  %v3096_v20 = vrot.slane %v4071_v17, %v1536_v43 }
0x113c   : > { %3272 = vmatpush1.bf16.msra.mxu1 %v4800_v22 }
0x113d   : > { %3273 = vmatprep.subr.bf16.mxu1 %v4808_v25 }
0x113e   : > { %v2773_v28 = vpop.f32.mrb[56].mxu1 }
0x113f   : > { %v2780_v29 = vmul.f32 %v4891_v27, %v2773_v28  ;;  %v4440_v30 = vpop.f32.mrb[57].mxu1  ;;  %v4809_v27 = vld [vmem:[#allocation13 + $0x1c8] ss:$16 sps:$4 sm:$0xff]   ;;  %v4811_v28 = vld [vmem:[#allocation13 + $0x1cc] ss:$16 sps:$4 sm:$0xff]   ;;  %p5995_p13 = scmp.ne.s32.totalorder %s5993_s21, 0 }
0x1140   : > { %v2776_v31 = vpop.f32.mrb[58].mxu1  ;;  %v4817_v30 = vld [vmem:[#allocation13 + $0x1ec] ss:$16 sps:$4 sm:$0xff]   ;;  %3274 = vmatpush1.bf16.msra.mxu1 %v4806_v24 }
0x1141   : > { %2896 = vrot.lane.b32.xlu0 %v2780_v29, %s5253_s26  ;;  %v4441_v3 = vpop.f32.mrb[59].mxu1  ;;  %v4814_v29 = vld [vmem:[#allocation13 + $0x1e4] ss:$16 sps:$4 sm:$0xff]   ;;  %v4812_v31 = vld [vmem:[#allocation13 + $0x1e0] ss:$16 sps:$4 sm:$0xff]   ;;  %s540_s26 = scalar_lea.vmem [#allocation18], %s3920_s15 }
0x1142   : > { %v4815_v3 = vld [vmem:[#allocation13 + $0x1e8] ss:$16 sps:$4 sm:$0xff]   ;;  %3275 = vmatprep.subr.bf16.mxu1 %v4814_v29  ;;  %s3767_s23 = sshll.u32 %s540_s26, 4  ;;  %s5891_s23 = int_to_ptr.vmem [resolvable:$true] %s3767_s23 }
0x1143   : > { %s5144_s30 = scalar_lea.vmem %s5891_s23, 128  ;;  %p5151_p5 = scmp.lt.s32.totalorder %s5891_s23, %s5149_s20 }
0x1144   : > { %3276 = vmatpush1.bf16.msra.mxu1 %v4812_v31  ;;  %p5145_p12 = scmp.ne.s32.totalorder %s5891_s23, %s5144_s30  ;;  %p5152_p6 = scmp.lt.s32.totalorder %s5150_s22, %s5144_s30 }
0x1146   : > { %v2883_v34 = vpop.f32.mrb[60].mxu1  ;;  %p5146_p2 = pnand %p5145_p12, %p5995_p13  ;;  %p5153_p11 = por %p5152_p6, %p5151_p5 }
0x1147   : > { %v2890_v35 = vmul.f32 %v4893_v33, %v2883_v34  ;;  %v4452_v36 = vpop.f32.mrb[61].mxu1 }
0x1148   : > { %v2886_v38 = vpop.f32.mrb[62].mxu1  ;;  %v4070_v36 = vld [vmem:[%s5939_s8 + $0x2] sm:$0x3]  ;;  %p5147_p4 = pneg %p5146_p2 }
0x1149   : > { %2900 = vrot.lane.b32.xlu1 %v2890_v35, %s5251_s28  ;;  %v4453_v39 = vpop.f32.mrb[63].mxu1  ;;  %v3037_v38 = vrot.slane %v4070_v36, %v5623_v59  ;;  %v3042_v40 = vrot.slane %v4070_v36, %v5626_v61 }
0x114a   : > { %p5154_p10 = pnand %p5153_p11, %p5147_p4 }
0x11ab   : > { %v2893_v41 = vpop.permute.xlu1 %2892 }
0x11ac   : > { %v2903_v45 = vsel %vm896_vm8, %v2557_v42, %v2893_v41 }
0x11b3   : > { %v2897_v44 = vpop.permute.xlu0 %2896 }
0x11b4   : > { %v2904_v46 = vsel %vm1348_vm10, %v2903_v45, %v2897_v44  ;;  %v4818_v45 = vld [vmem:[#allocation15 + $0x140] sm:$0xff]  }
0x11b5   : > { %4254 = vmatprep.subr.bf16.mxu1 %v4818_v45 }
0x11bb   : > { %v2901_v49 = vpop.permute.xlu1 %2900 }
0x11bc   : > { %v2905_v50 = vsel %vm1350_vm11, %v2904_v46, %v2901_v49  ;;  %v4819_v46 = vld [vmem:[#allocation15 + $0x1c0] sm:$0xff]  }
0x11bd   : > { %v2906_v51 = vpack.c.bf16 %v2905_v50, %v2905_v50  ;;  %v4820_v49 = vld [vmem:[#allocation15 + $0x100] sm:$0xff]  }
0x11be   : > { %v4821_v50 = vld [vmem:[#allocation15 + $0x180] sm:$0xff]  }
0x11bf   : > { %4471 = vmatmul.mubr.bf16.vlgmr.msra.gmra.mrb[36].mxu0 %v2906_v51  ;;  %v4822_v51 = vld [vmem:[#allocation15 + $0x148] sm:$0xff]  }
0x11c0   : > { %3334 = vmatprep.mubr.bf16.mxu0 %v5249_v48  ;;  %3303 = vmatpush1.bf16.msra.mxu0 %v4773_v63  ;;  %v4779_v48 = vld [vmem:[#allocation13 + $0x128] ss:$16 sps:$4 sm:$0xff]  }
0x11c1   : > { %3304 = vmatprep.subr.bf16.mxu0 %v4781_v2  ;;  %v4832_v63 = vld [vmem:[#allocation15 + $0x118] sm:$0xff]   ;;  %v4835_v2 = vld [vmem:[#allocation15 + $0x1e0] sm:$0xff]  }
0x11c4   : > { %3305 = vmatpush1.bf16.msra.mxu0 %v4779_v48  ;;  %v4837_v48 = vld [vmem:[#allocation15 + $0x1a0] sm:$0xff]  }
0x11c5   : > { %3306 = vmatprep.subr.bf16.mxu0 %v4787_v6  ;;  %v4839_v6 = vld [vmem:[#allocation15 + $0x1e8] sm:$0xff]  }
0x1292   : > { %v3014_v53 = vpop.f32.mrb[36].mxu0 }
0x1293   : > { %v3015_v54 = vadd.f32 %v4061_v52, %v3014_v53  ;;  %v4472_v55 = vpop.f32.mrb[37].mxu0  ;;  %v4823_v52 = vld [vmem:[#allocation15 + $0x1c8] sm:$0xff]  }
0x1294   : > { %v3017_v56 = vpop.f32.mrb[38].mxu0  ;;  %v4824_v53 = vld [vmem:[#allocation15 + $0x108] sm:$0xff]   ;;  %v4826_v55 = vld [vmem:[#allocation15 + $0x150] sm:$0xff]  }
0x1295   : > { %v4473_v57 = vpop.f32.mrb[39].mxu0  ;;  %v3022_v32 = vadd.f32 %v3015_v54, %v5768_v37  ;;  %v4785_v37 = vld [vmem:[#allocation13 + $0x148] ss:$16 sps:$4 sm:$0xff]   ;;  %v4827_v56 = vld [vmem:[#allocation15 + $0x1d0] sm:$0xff]  }
0x1296   : > { %3307 = vmatpush1.bf16.msra.mxu0 %v4785_v37  ;;  %v4825_v54 = vld [vmem:[#allocation15 + $0x188] sm:$0xff]   ;;  %v4828_v57 = vld [vmem:[#allocation15 + $0x110] sm:$0xff]  }
0x1297   : > { %3023 = vadd.xlane.f32.xlu1 %v3022_v32  ;;  %3308 = vmatprep.subr.bf16.mxu0 %v4793_v14  ;;  %v4841_v37 = vld [vmem:[#allocation15 + $0x1a8] sm:$0xff]   ;;  %v4847_v14 = vld [vmem:[#allocation15 + $0x1f8] sm:$0xff]  }
0x129a   : > { %3309 = vmatpush1.bf16.msra.mxu0 %v4791_v16  ;;  %v4849_v16 = vld [vmem:[#allocation15 + $0x1b8] sm:$0xff]  }
0x129b   : > { %3310 = vmatprep.subr.bf16.mxu0 %v4799_v18  ;;  %v3084_v18 = vrot.slane %v4071_v17, %v5623_v59 }
0x129e   : > { %3311 = vmatpush1.bf16.msra.mxu0 %v4797_v47  ;;  %v3088_v47 = vrot.slane %v4071_v17, %v5626_v61 }
0x129f   : > { %3312 = vmatprep.subr.bf16.mxu0 %v4805_v21 }
0x12a2   : > { %3313 = vmatpush1.bf16.msra.mxu0 %v4803_v23 }
0x12a3   : > { %3314 = vmatprep.subr.bf16.mxu0 %v4811_v28 }
0x12a6   : > { %3315 = vmatpush1.bf16.msra.mxu0 %v4809_v27 }
0x12a7   : > { %3316 = vmatprep.subr.bf16.mxu0 %v4817_v30 }
0x12aa   : > { %3317 = vmatpush1.bf16.msra.mxu0 %v4815_v3 }
0x12ab   : > { %4276 = vmatprep.subr.bf16.mxu0 %v4819_v46 }
0x1324   : > { %v3024_v9 = vpop.xlane.xlu1 %3023 }
0x1325   : > { %v3025_v10 = vmul.f32 0.0078125, %v3024_v9  ;;  %v4842_v9 = vld [vmem:[#allocation15 + $0x170] sm:$0xff]  }
0x1327   : > { %v3026_v11 = vsub.f32 %v3022_v32, %v3025_v10  ;;  %v4829_v32 = vld [vmem:[#allocation15 + $0x190] sm:$0xff]  }
0x1328   : > { %v4843_v10 = vld [vmem:[#allocation15 + $0x1f0] sm:$0xff]  }
0x1329   : > { %v3027_v12 = vmul.f32 %v3026_v11, %v3026_v11 }
0x132b   : > { %3028 = vadd.xlane.f32.xlu0 %v3027_v12  ;;  %v4845_v12 = vld [vmem:[#allocation15 + $0x1b0] sm:$0xff]  }
0x13b8   : > { %v3029_v33 = vpop.xlane.xlu0 %3028 }
0x13b9   : > { %v3030_v34 = vmul.f32 0.0078125, %v3029_v33 }
0x13bb   : > { %v3031_v35 = vadd.f32 1e-12, %v3030_v34 }
0x13bd   : > { %4896 = vrsqrt.f32 %v3031_v35 }
0x13c7   : > { %v4897_v39 = vpop.eup %4896 }
0x13c8   : > { %v3033_v26 = vmul.f32 %v4897_v39, %v3026_v11  ;;  %v4844_v11 = vld [vmem:[#allocation15 + $0x130] sm:$0xff]  }
0x13ca   : > { %v3038_v41 = vmul.f32 %v3037_v38, %v3033_v26 }
0x13cc   : > { %v5866_v42 = vadd.f32 %v3042_v40, %v3038_v41 }
0x13ce   : > { %v3044_v44 = vpack.c.bf16 %v5866_v42, %v5866_v42 }
0x13d0   : > { %3294 = vmatmul.mubr.bf16.vlgmr.msra.gmra.mrb[64].mxu1 %v3044_v44  ;;  %3335 = vmatmul.mubr.bf16.vlgmr.msra.gmra.mrb[40].mxu0 %v3044_v44 }
0x13d1   : > { %4255 = vmatpush3.bf16.msra.mxu1 %v4820_v49  ;;  %4277 = vmatpush3.bf16.msra.mxu0 %v4821_v50 }
0x13d2   : > { %4256 = vmatprep.subr.bf16.mxu1 %v4822_v51  ;;  %4278 = vmatprep.subr.bf16.mxu0 %v4823_v52 }
0x13d5   : > { %4257 = vmatpush3.bf16.msra.mxu1 %v4824_v53  ;;  %4279 = vmatpush3.bf16.msra.mxu0 %v4825_v54 }
0x13d6   : > { %4258 = vmatprep.subr.bf16.mxu1 %v4826_v55  ;;  %4280 = vmatprep.subr.bf16.mxu0 %v4827_v56 }
0x13d9   : > { %4259 = vmatpush3.bf16.msra.mxu1 %v4828_v57  ;;  %4281 = vmatpush3.bf16.msra.mxu0 %v4829_v32 }
0x13da   : > { %4260 = vmatprep.subr.bf16.mxu1 %v4830_v60  ;;  %4282 = vmatprep.subr.bf16.mxu0 %v4831_v62 }
0x13dd   : > { %4261 = vmatpush3.bf16.msra.mxu1 %v4832_v63  ;;  %4283 = vmatpush3.bf16.msra.mxu0 %v4833_v0 }
0x13de   : > { %4262 = vmatprep.subr.bf16.mxu1 %v4834_v1  ;;  %4284 = vmatprep.subr.bf16.mxu0 %v4835_v2 }
0x13e1   : > { %4263 = vmatpush3.bf16.msra.mxu1 %v4836_v4  ;;  %4285 = vmatpush3.bf16.msra.mxu0 %v4837_v48 }
0x13e2   : > { %4264 = vmatprep.subr.bf16.mxu1 %v4838_v5  ;;  %4286 = vmatprep.subr.bf16.mxu0 %v4839_v6 }
0x13e5   : > { %4265 = vmatpush3.bf16.msra.mxu1 %v4840_v8  ;;  %4287 = vmatpush3.bf16.msra.mxu0 %v4841_v37 }
0x13e6   : > { %4266 = vmatprep.subr.bf16.mxu1 %v4842_v9  ;;  %4288 = vmatprep.subr.bf16.mxu0 %v4843_v10 }
0x13e9   : > { %4267 = vmatpush3.bf16.msra.mxu1 %v4844_v11  ;;  %4289 = vmatpush3.bf16.msra.mxu0 %v4845_v12 }
0x13ea   : > { %4268 = vmatprep.subr.bf16.mxu1 %v4846_v13  ;;  %4290 = vmatprep.subr.bf16.mxu0 %v4847_v14 }
0x13ed   : > { %4269 = vmatpush3.bf16.msra.mxu1 %v4848_v15  ;;  %4291 = vmatpush3.bf16.msra.mxu0 %v4849_v16  ;;  %v4104_v15 = vld [vmem:[#allocation16 + $0x1] ss:$0 sm:$0xff] }
0x14a3   : > { %v3295_v21 = vpop.f32.mrb[64].mxu1  ;;  %v3336_v22 = vpop.f32.mrb[40].mxu0 }
0x14a4   : > { %v3296_v23 = vadd.f32 %v3295_v21, %v3084_v18  ;;  %v3337_v24 = vadd.f32 %v3336_v22, %v3092_v19  ;;  %v3297_v25 = vpop.f32.mrb[65].mxu1  ;;  %v3338_v27 = vpop.f32.mrb[41].mxu0 }
0x14a5   : > { %v3298_v28 = vadd.f32 %v3297_v25, %v3088_v47  ;;  %v3339_v29 = vadd.f32 %v3338_v27, %v3096_v20  ;;  %v3299_v30 = vpop.f32.mrb[66].mxu1  ;;  %v3340_v31 = vpop.f32.mrb[42].mxu0 }
0x14a6   : > { %v3347_v3 = vmul.f32 0.044715, %v3296_v23  ;;  %v3349_v33 = vmul.f32 0.044715, %v3337_v24  ;;  %v3300_v34 = vpop.f32.mrb[67].mxu1  ;;  %v3341_v35 = vpop.f32.mrb[43].mxu0 }
0x14a7   : > { %v3348_v7 = vmul.f32 0.044715, %v3298_v28  ;;  %v3350_v36 = vmul.f32 0.044715, %v3339_v29  ;;  %v3343_v57 = vmul.f32 0.5, %v3296_v23  ;;  %v3344_v62 = vmul.f32 0.5, %v3298_v28 }
0x14a8   : > { %v3351_v38 = vmul.f32 %v3347_v3, %v3296_v23  ;;  %v3353_v39 = vmul.f32 %v3349_v33, %v3337_v24  ;;  %v3346_v1 = vmul.f32 0.5, %v3339_v29  ;;  %v3345_v5 = vmul.f32 0.5, %v3337_v24  ;;  %v4137_v34 = vld [vmem:[%s5944_s13 + $0x2] sm:$0x3] }
0x14a9   : > { %v3352_v58 = vmul.f32 %v3348_v7, %v3298_v28  ;;  %v3354_v43 = vmul.f32 %v3350_v36, %v3339_v29  ;;  %v3750_v36 = vrot.slane %v4137_v34, %v5626_v61 }
0x14aa   : > { %v3355_v26 = vmul.f32 %v3351_v38, %v3296_v23  ;;  %v3357_v40 = vmul.f32 %v3353_v39, %v3337_v24 }
0x14ab   : > { %v3356_v41 = vmul.f32 %v3352_v58, %v3298_v28  ;;  %v3358_v44 = vmul.f32 %v3354_v43, %v3339_v29 }
0x14ac   : > { %v3359_v45 = vadd.f32 %v3355_v26, %v3296_v23  ;;  %v3361_v46 = vadd.f32 %v3357_v40, %v3337_v24 }
0x14ad   : > { %v3360_v49 = vadd.f32 %v3356_v41, %v3298_v28  ;;  %v3362_v50 = vadd.f32 %v3358_v44, %v3339_v29 }
0x14ae   : > { %v3363_v51 = vmul.f32 0.7978846, %v3359_v45  ;;  %v3365_v54 = vmul.f32 0.7978846, %v3361_v46 }
0x14af   : > { %v3364_v52 = vmul.f32 0.7978846, %v3360_v49  ;;  %v3366_v53 = vmul.f32 0.7978846, %v3362_v50 }
0x14b0   : > { %4898 = vtanh.f32 %v3363_v51 }
0x14b1   : > { %4900 = vtanh.f32 %v3364_v52 }
0x14b2   : > { %4902 = vtanh.f32 %v3366_v53 }
0x14b3   : > { %4904 = vtanh.f32 %v3365_v54 }
0x14ba   : > { %v4899_v55 = vpop.eup %4898 }
0x14bb   : > { %v4901_v56 = vpop.eup %4900  ;;  %v3371_v32 = vadd.f32 1.0, %v4899_v55 }
0x14bc   : > { %v4903_v60 = vpop.eup %4902  ;;  %v3372_v63 = vadd.f32 1.0, %v4901_v56 }
0x14bd   : > { %v4905_v0 = vpop.eup %4904  ;;  %v3374_v2 = vadd.f32 1.0, %v4903_v60  ;;  %v3375_v4 = vmul.f32 %v3371_v32, %v3343_v57 }
0x14be   : > { %v3376_v48 = vmul.f32 %v3372_v63, %v3344_v62  ;;  %v3373_v6 = vadd.f32 1.0, %v4905_v0 }
0x14bf   : > { %v3378_v8 = vmul.f32 %v3374_v2, %v3346_v1  ;;  %v3379_v11 = vpack.c.bf16 %v3375_v4, %v3375_v4 }
0x14c0   : > { %v3380_v37 = vpack.c.bf16 %v3376_v48, %v3376_v48  ;;  %v3377_v9 = vmul.f32 %v3373_v6, %v3345_v5 }
0x14c1   : > { %v3382_v10 = vpack.c.bf16 %v3378_v8, %v3378_v8 }
0x14c2   : > { %3680 = vmatprep.mubr.bf16.mxu1 %v3380_v37  ;;  %v3381_v12 = vpack.c.bf16 %v3377_v9, %v3377_v9 }
0x14c3   : > { %3720 = vmatprep.mubr.bf16.mxu0 %v3382_v10  ;;  %3681 = vmatmul.mubr.bf16.vlgmr.msra.gmra.mrb[68].mxu1 %v3379_v11 }
0x14c4   : > { %3721 = vmatmul.mubr.bf16.vlgmr.msra.gmra.mrb[44].mxu0 %v3381_v12 }
0x1596   : > { %v4270_v13 = vpop.f32.mrb[68].mxu1 }
0x1597   : > { %v4292_v14 = vpop.f32.mrb[44].mxu0  ;;  %v4271_v16 = vpop.f32.mrb[69].mxu1 }
0x1598   : > { %v4272_v17 = vadd.f32 %v4271_v16, %v4270_v13  ;;  %v4293_v18 = vpop.f32.mrb[45].mxu0  ;;  %v4273_v19 = vpop.f32.mrb[70].mxu1 }
0x1599   : > { %v4294_v47 = vadd.f32 %v4293_v18, %v4292_v14  ;;  %v4295_v20 = vpop.f32.mrb[46].mxu0  ;;  %v4274_v21 = vpop.f32.mrb[71].mxu1 }
0x159a   : > { %v3683_v22 = vadd.f32 %v4272_v17, %v4104_v15  ;;  %v4296_v23 = vpop.f32.mrb[47].mxu0 }
0x159c   : > { %v3723_v24 = vadd.f32 %v4294_v47, %v3683_v22 }
0x159e   : > { %v3730_v25 = vadd.f32 %v3723_v24, %v5866_v42  ;;  %v3745_v42 = vrot.slane %v4137_v34, %v5623_v59 }
0x15a0   : > { %3731 = vadd.xlane.f32.xlu0 %v3730_v25 }
0x162d   : > { %v3732_v27 = vpop.xlane.xlu0 %3731 }
0x162e   : > { %v3733_v28 = vmul.f32 0.0078125, %v3732_v27 }
0x1630   : > { %v3734_v29 = vsub.f32 %v3730_v25, %v3733_v28 }
0x1632   : > { %v3735_v30 = vmul.f32 %v3734_v29, %v3734_v29 }
0x1634   : > { %3736 = vadd.xlane.f32.xlu1 %v3735_v30 }
0x16c1   : > { %v3737_v31 = vpop.xlane.xlu1 %3736 }
0x16c2   : > { %v3738_v3 = vmul.f32 0.0078125, %v3737_v31 }
0x16c4   : > { %v3739_v33 = vadd.f32 1e-12, %v3738_v3 }
0x16c6   : > { %4906 = vrsqrt.f32 %v3739_v33 }
0x16d0   : > { %v4907_v35 = vpop.eup %4906 }
0x16d1   : > { %v3741_v7 = vmul.f32 %v4907_v35, %v3734_v29 }
0x16d3   : > { %v3746_v38 = vmul.f32 %v3745_v42, %v3741_v7 }
0x16d5   : > { %v3751_v39 = vadd.f32 %v3750_v36, %v3746_v38 }
0x16d7   : > { %3752 = vst [vmem:[%s540_s26] sm:$0xff] %v3751_v39 }
0x16d8   : > { %5157 = shalt.err (!%p5154_p10)
}
0x16d9   : > { %s5158_s29 = scalar_lea.hbm %s5889_s25, 128  ;;  %s5162_s16 = scalar_lea.hbm %s5994_s1, 256 }
0x16da   : > { %p5159_p0 = scmp.ne.s32.totalorder %s5889_s25, %s5158_s29  ;;  %p5163_p7 = scmp.lt.u32.totalorder %s5889_s25, %s5994_s1 }
0x16db   : > { %p5164_p8 = scmp.lt.u32.totalorder %s5162_s16, %s5158_s29  ;;  %p5166_p12 = scmp.lt.u32.totalorder %s5158_s29, %s5889_s25 }
0x16dc   : > { %p5160_p3 = pnand %p5159_p0, %p5995_p13 }
0x16dd   : > { %p5165_p9 = por %p5164_p8, %p5163_p7 }
0x16de   : > { %p5161_p1 = pneg %p5160_p3 }
0x16df   : > { %p5167_p2 = por %p5166_p12, %p5165_p9 }
0x16e1   : > { %p5168_p4 = pnand %p5167_p2, %p5161_p1 }
0x16e3   : > { %5171 = shalt.err (!%p5168_p4)
}
0x16e4   : > { %4506 = dma.vmem_to_hbm [thread:$0]  (%p5995_p13), %s5891_s23, 128, %s5889_s25, %s3754_s0  }
0x16e5 PF: > { %s5996_s28 = sld [smem:[#allocation28_spill]]  ;;  %s5997_s26 = sld [smem:[#allocation26_spill]] }
0x16e6   : > { %s5998_s19 = sld [smem:[#allocation32_spill]] }
0x16eb   : > { %p4553_p5 = scmp.ge.s32.totalorder %s5996_s28, 2  ;;  %s3779_s27 = sand.u32 1, %s5997_s26  }
0x16ec   : > { %p5999_p6 = scmp.ne.s32.totalorder %s5998_s19, 0  ;;  %s3780_s30 = scalar_lea.sflag [#allocation6], %s3779_s27 }
0x16ee   : > { %p4534_p11 = pnand %p4553_p5, %p5999_p6 }
0x16f0   : > { %5211 = dma.done.wait (!%p4534_p11), %s3780_s30, 128  }
0x16f1   : > { %5213 = vsyncadd (!%p4534_p11), %s3780_s30, 4294967168  ;;  %s6000_s20 = sld [smem:[#allocation29_spill]]  ;;  %s6001_s14 = sld [smem:[#allocation27_spill]] }
0x16f2   : > { %s6002_s19 = sld [smem:[#allocation30_spill]]  ;;  %s6003_s0 = smov %s5220_s18 }
0x16f7   : > { %p35_p10 = scmp.ge.s32.totalorder %s6000_s20, 4   ;;  %s6004_s18 = smov %s6001_s14 }
0x16f9   :  { %37 = sbr.rel (!%p35_p10) target bundleno = 24 (0x18), region = 155 }
0x1700   :  { %3785 = vsyncpa [#allocation5], 1 }
0x1701   :  { %3787 = vsyncpa [#allocation5 + $0x1], 1 }
0x1702   :  { %3788 = vsyncpa [#allocation8], 1 }
0x1703   :  { %3789 = vsyncpa [#allocation11], 1 }
0x1704   :  { %3790 = vsyncpa [#allocation14], 1 }
0x1705   :  { %3791 = vsyncpa [#allocation17], 1 }
0x1706   :  { %3792 = vsyncpa [#allocation6], 1 }
0x1707   :  { %3794 = vsyncpa [#allocation6 + $0x1], 1 }

</bundles_post_ra>
